<compile_context>
chip_gen: v7x
topology: tpu7x:2x2x1
jax: 0.10.0
libtpu: 0.0.40
codegen_flags: <defaults>
</compile_context>

<pallas_src>
import functools

import jax
import jax.numpy as jnp
from jax import lax
from jax.experimental import pallas as pl
from jax.experimental.pallas import tpu as pltpu


# ----------------------------------------------------------------------------
# Pallas kernel
# ----------------------------------------------------------------------------
def _vis_lstm_kernel(*refs, fuse_output_proj, unroll):
    if fuse_output_proj:
        (gates_ref,   # (T+1, Bn, 4H) pre-projected input gates (x@W_ih1 + b1)
         whh1_ref,    # (H, 4H)
         wih2_ref,    # (H, 4H)
         whh2_ref,    # (H, 4H)
         b2_ref,      # (1, 4H) f32
         wout_ref,    # (H, Vpad)
         bout_ref,    # (1, Vpad) f32
         out_ref) = refs            # (Bn, Vpad)
    else:
        (gates_ref, whh1_ref, wih2_ref, whh2_ref, b2_ref,
         out_ref) = refs            # (Bn, H) -> h2_last only

    f32 = jnp.float32
    T1, Bn, H4 = gates_ref.shape
    H = whh1_ref.shape[0]

    whh1 = whh1_ref[...]
    wih2 = wih2_ref[...]
    whh2 = whh2_ref[...]
    b2 = b2_ref[...]                 # (1, 4H): broadcast happens in the add

    def split_act(g):
        # PyTorch LSTMCell gate order: i, f, g, o (gate math kept in f32).
        i = jax.nn.sigmoid(g[:, 0 * H:1 * H])
        f = jax.nn.sigmoid(g[:, 1 * H:2 * H])
        gg = jnp.tanh(g[:, 2 * H:3 * H])
        o = jax.nn.sigmoid(g[:, 3 * H:4 * H])
        return i, f, gg, o

    def step(t, state):
        h1, c1, h2, c2 = state
        # Layer-2 recurrent dot depends only on the PREVIOUS h2 -> issue it
        # first so the MXU work overlaps layer-1 EUP/VPU gate math.
        g2_rec = jnp.dot(h2.astype(whh2.dtype), whh2,
                         preferred_element_type=f32) + b2
        # Layer 1: input projection already folded into the gates stream.
        g1 = gates_ref[t].astype(f32) + jnp.dot(
            h1.astype(whh1.dtype), whh1, preferred_element_type=f32)
        i1, f1, gg1, o1 = split_act(g1)
        c1n = f1 * c1 + i1 * gg1
        h1n = o1 * jnp.tanh(c1n)
        # Layer 2: separate input dot (no per-step lane concat).
        g2 = g2_rec + jnp.dot(h1n.astype(wih2.dtype), wih2,
                              preferred_element_type=f32)
        i2, f2, gg2, o2 = split_act(g2)
        c2n = f2 * c2 + i2 * gg2
        h2n = o2 * jnp.tanh(c2n)
        return h1n, c1n, h2n, c2n

    zeros = jnp.zeros((Bn, H), f32)
    state = lax.fori_loop(0, T1, step, (zeros, zeros, zeros, zeros),
                          unroll=unroll)
    h2_last = state[2]

    if fuse_output_proj:
        out_ref[...] = (jnp.dot(h2_last.astype(wout_ref.dtype), wout_ref[...],
                                preferred_element_type=f32)
                        + bout_ref[...]).astype(out_ref.dtype)
    else:
        out_ref[...] = h2_last.astype(out_ref.dtype)


# ----------------------------------------------------------------------------
# Wrapper
# ----------------------------------------------------------------------------
def _pick_batch_block(n_padded):
    # Prefer >=2 grid blocks so v7x's second TensorCore gets independent work
    # (costs nothing on single-TC v5e/v6e); cap blocks at 256 rows.
    for cand in (256, 128, 64, 32, 16, 8):
        if n_padded % cand == 0 and n_padded // cand >= 2:
            return cand
    for cand in (256, 128, 64, 32, 16, 8):
        if n_padded % cand == 0:
            return cand
    return n_padded


def vis_lstm_forward(img_features, questions, params, image_first=True,
                     use_bf16=True, fuse_output_proj=None):
    """img_features: (N, D_img) f32; questions: (N, T) int32 -> (N, vocab) f32."""
    N, _ = img_features.shape
    _, T = questions.shape
    H = params["w_hh1"].shape[0]
    H4 = 4 * H
    V = params["w_out"].shape[1]
    Vpad = ((V + 127) // 128) * 128
    T1 = T + 1

    f32 = jnp.float32
    wdt = jnp.bfloat16 if use_bf16 else f32

    if fuse_output_proj is None:
        # Large vocab projections dominate VMEM (esp. v7x's 64 MiB) -> do them
        # as a standalone XLA GEMM outside the recurrence kernel.
        fuse_output_proj = V <= 4096

    # -- one-time, non-recurrent work stays in plain XLA ----------------------
    # Embedding lookup + layer-1 input projection == gather from the
    # pre-projected table (emb_table @ W_ih1); dropout is identity (eval).
    proj_table = params["emb_table"].astype(f32) @ params["w_ih1"].astype(f32)
    q_gates = jnp.take(proj_table, questions, axis=0)            # (N, T, 4H)
    q_gates = jnp.transpose(q_gates, (1, 0, 2)) + params["b1"].astype(f32)

    # Image step hoisted entirely out of the kernel and spliced into stream.
    emb_img = jnp.tanh(img_features.astype(f32) @ params["w_img"].astype(f32)
                       + params["b_img"].astype(f32))
    img_gates = (emb_img @ params["w_ih1"].astype(f32)
                 + params["b1"].astype(f32))[None]               # (1, N, 4H)
    if image_first:
        gates = jnp.concatenate([img_gates, q_gates], axis=0)    # (T+1, N, 4H)
    else:
        gates = jnp.concatenate([q_gates, img_gates], axis=0)

    # Pad batch up to a multiple of 8 (sublane granularity); padded rows are
    # zeros and sliced off at the end.
    N_pad = ((N + 7) // 8) * 8
    if N_pad != N:
        gates = jnp.pad(gates, ((0, 0), (0, N_pad - N), (0, 0)))
    gates = gates.astype(wdt)        # bf16 halves the dominant HBM stream

    whh1 = params["w_hh1"].astype(wdt)
    wih2 = params["w_ih2"].astype(wdt)
    whh2 = params["w_hh2"].astype(wdt)
    b2 = params["b2"].astype(f32)

    Bn = _pick_batch_block(N_pad)
    unroll = T1 if T1 <= 16 else 8   # partial unroll for long sequences
    kernel = functools.partial(_vis_lstm_kernel,
                               fuse_output_proj=fuse_output_proj,
                               unroll=unroll)

    const = lambda b: (0, 0)
    in_specs = [
        pl.BlockSpec((T1, Bn, H4), lambda b: (0, b, 0)),
        pl.BlockSpec((H, H4), const),
        pl.BlockSpec((H, H4), const),
        pl.BlockSpec((H, H4), const),
        pl.BlockSpec((1, H4), const),
    ]
    args = [gates, whh1, wih2, whh2, b2]

    if fuse_output_proj:
        w_out = params["w_out"].astype(wdt)
        b_out = params["b_out"].astype(f32)
        if Vpad != V:
            w_out = jnp.pad(w_out, ((0, 0), (0, Vpad - V)))
            b_out = jnp.pad(b_out, ((0, 0), (0, Vpad - V)))
        in_specs += [pl.BlockSpec((H, Vpad), const),
                     pl.BlockSpec((1, Vpad), const)]
        args += [w_out, b_out]
        out_cols = Vpad
    else:
        out_cols = H

    # Explicit VMEM budget with headroom (clamped so it is v7x-safe).
    itemsize = 2 if use_bf16 else 4
    est = T1 * Bn * H4 * itemsize * 2                       # gates (2 bufs)
    est += (3 * H * H4 * itemsize + H4 * 4) * 2             # recurrent weights
    if fuse_output_proj:
        est += (H * Vpad * itemsize + Vpad * 4) * 2         # output weights
    est += Bn * out_cols * 4 * 2                            # output block
    vmem_limit = int(min(64 * 1024 * 1024, max(32 * 1024 * 1024, 2 * est)))

    out = pl.pallas_call(
        kernel,
        out_shape=jax.ShapeDtypeStruct((N_pad, out_cols), f32),
        grid_spec=pltpu.PrefetchScalarGridSpec(
            num_scalar_prefetch=0,
            grid=(N_pad // Bn,),
            in_specs=in_specs,
            out_specs=pl.BlockSpec((Bn, out_cols), lambda b: (b, 0)),
        ),
        compiler_params=pltpu.CompilerParams(
            dimension_semantics=("parallel",),
            vmem_limit_bytes=vmem_limit),
    )(*args)

    if fuse_output_proj:
        return out[:N, :V]
    # Standalone XLA GEMM for the vocab projection (tiles properly at scale).
    return out[:N] @ params["w_out"].astype(f32) + params["b_out"].astype(f32)


# ----------------------------------------------------------------------------
# Pure-JAX reference (for correctness check)
# ----------------------------------------------------------------------------
def vis_lstm_reference(img_features, questions, params, image_first=True):
    H = params["w_hh1"].shape[0]
    N = img_features.shape[0]

    emb_q = jnp.take(params["emb_table"], questions, axis=0)
    emb_q = jnp.transpose(emb_q, (1, 0, 2))                    # (T, N, E)
    emb_img = jnp.tanh(img_features @ params["w_img"] + params["b_img"])

    T = emb_q.shape[0]
    if image_first:
        inputs = jnp.concatenate([emb_img[None], emb_q], axis=0)
    else:
        inputs = jnp.concatenate([emb_q, emb_img[None]], axis=0)

    def cell(x, h, c, wih, whh, b):
        g = x @ wih + h @ whh + b
        i = jax.nn.sigmoid(g[:, 0 * H:1 * H])
        f = jax.nn.sigmoid(g[:, 1 * H:2 * H])
        gg = jnp.tanh(g[:, 2 * H:3 * H])
        o = jax.nn.sigmoid(g[:, 3 * H:4 * H])
        c_new = f * c + i * gg
        return o * jnp.tanh(c_new), c_new

    h1 = c1 = h2 = c2 = jnp.zeros((N, H), jnp.float32)
    for t in range(T + 1):
        h1, c1 = cell(inputs[t], h1, c1, params["w_ih1"], params["w_hh1"], params["b1"])
        h2, c2 = cell(h1, h2, c2, params["w_ih2"], params["w_hh2"], params["b2"])
    return h2 @ params["w_out"] + params["b_out"]


# ----------------------------------------------------------------------------
# Main
# ----------------------------------------------------------------------------
if __name__ == "__main__":
    # Pin XLA-side f32 matmuls to highest precision so the f32 kernel path and
    # the pure-JAX reference agree tightly.
    jax.config.update("jax_default_matmul_precision", "highest")

    # cfg: hidden_dim == emb_dim (required by the assert in the PyTorch forward)
    T = 8
    emb_dim = hidden_dim = 32
    vocab_size = 64
    img_dim = 48
    H4 = 4 * hidden_dim

    key = jax.random.PRNGKey(0)
    keys = jax.random.split(key, 16)

    def init(k, shape, scale=0.1):
        return (scale * jax.random.normal(k, shape)).astype(jnp.float32)

    params = {
        "emb_table": init(keys[0], (vocab_size, emb_dim)),
        "w_img": init(keys[1], (img_dim, hidden_dim)),
        "b_img": init(keys[2], (1, hidden_dim)),
        "w_ih1": init(keys[3], (emb_dim, H4)),
        "w_hh1": init(keys[4], (hidden_dim, H4)),
        "b1":    init(keys[5], (1, H4)),          # b_ih + b_hh pre-summed
        "w_ih2": init(keys[6], (hidden_dim, H4)),
        "w_hh2": init(keys[7], (hidden_dim, H4)),
        "b2":    init(keys[8], (1, H4)),
        "w_out": init(keys[9], (hidden_dim, vocab_size)),
        "b_out": init(keys[10], (1, vocab_size)),
    }

    N = 2
    img_features = init(keys[11], (N, img_dim), scale=1.0)
    questions = jax.random.randint(keys[12], (N, T), 0, vocab_size, dtype=jnp.int32)
    ref = vis_lstm_reference(img_features, questions, params, image_first=True)

    # 1) f32 path, fused output projection (tight check).
    out_f32 = vis_lstm_forward(img_features, questions, params,
                               image_first=True, use_bf16=False)
    out_f32 = jax.block_until_ready(out_f32)
    assert out_f32.shape == (N, vocab_size)
    assert jnp.allclose(out_f32, ref, atol=1e-4, rtol=1e-4), "f32 mismatch vs reference"

    # 2) bf16 weights + gates stream (f32 accumulation), looser tolerance.
    out_bf16 = vis_lstm_forward(img_features, questions, params,
                                image_first=True, use_bf16=True)
    out_bf16 = jax.block_until_ready(out_bf16)
    assert jnp.allclose(out_bf16, ref, atol=2e-2, rtol=2e-2), "bf16 mismatch vs reference"

    # 3) Multi-block batch grid (N=16 -> 2 blocks), image last, un-fused
    #    vocab projection path, f32.
    N2 = 16
    img2 = init(keys[13], (N2, img_dim), scale=1.0)
    q2 = jax.random.randint(keys[14], (N2, T), 0, vocab_size, dtype=jnp.int32)
    ref2 = vis_lstm_reference(img2, q2, params, image_first=False)
    out2 = vis_lstm_forward(img2, q2, params, image_first=False,
                            use_bf16=False, fuse_output_proj=False)
    out2 = jax.block_until_ready(out2)
    assert out2.shape == (N2, vocab_size)
    assert jnp.allclose(out2, ref2, atol=1e-4, rtol=1e-4), "unfused-path mismatch vs reference"

    print("KERNEL_OK")
</pallas_src>

<mosaic_0001>
module attributes {stable_mosaic.version = 11 : i64} {
  func.func @_vis_lstm_kernel(%arg0: i32, %arg1: memref<9x8x128xf32, #tpu.memory_space<vmem>>, %arg2: memref<32x128xf32, #tpu.memory_space<vmem>>, %arg3: memref<32x128xf32, #tpu.memory_space<vmem>>, %arg4: memref<32x128xf32, #tpu.memory_space<vmem>>, %arg5: memref<1x128xf32, #tpu.memory_space<vmem>>, %arg6: memref<32x128xf32, #tpu.memory_space<vmem>>, %arg7: memref<1x128xf32, #tpu.memory_space<vmem>>, %arg8: memref<8x128xf32, #tpu.memory_space<vmem>>) attributes {dimension_semantics = [#tpu.dimension_semantics<parallel>], iteration_bounds = array<i64: 1>, scalar_prefetch = 0 : i64, scratch_operands = 0 : i64, tpu.core_type = #tpu.core_type<tc>, window_params = [{transform_indices = @transform_0, window_bounds = array<i64: 9, 8, 128>}, {pipeline_mode = #tpu.pipeline_mode<synchronous>, transform_indices = @transform_1, window_bounds = array<i64: 32, 128>}, {pipeline_mode = #tpu.pipeline_mode<synchronous>, transform_indices = @transform_2, window_bounds = array<i64: 32, 128>}, {pipeline_mode = #tpu.pipeline_mode<synchronous>, transform_indices = @transform_3, window_bounds = array<i64: 32, 128>}, {pipeline_mode = #tpu.pipeline_mode<synchronous>, transform_indices = @transform_4, window_bounds = array<i64: 1, 128>}, {pipeline_mode = #tpu.pipeline_mode<synchronous>, transform_indices = @transform_5, window_bounds = array<i64: 32, 128>}, {pipeline_mode = #tpu.pipeline_mode<synchronous>, transform_indices = @transform_6, window_bounds = array<i64: 1, 128>}, {transform_indices = @transform_7, window_bounds = array<i64: 8, 128>}]} {
    %c0 = arith.constant 0 : index
    %c0_0 = arith.constant 0 : index
    %0 = vector.load %arg2[%c0, %c0_0] : memref<32x128xf32, #tpu.memory_space<vmem>>, vector<32x128xf32>
    %c0_1 = arith.constant 0 : index
    %c0_2 = arith.constant 0 : index
    %1 = vector.load %arg3[%c0_1, %c0_2] : memref<32x128xf32, #tpu.memory_space<vmem>>, vector<32x128xf32>
    %c0_3 = arith.constant 0 : index
    %c0_4 = arith.constant 0 : index
    %2 = vector.load %arg4[%c0_3, %c0_4] : memref<32x128xf32, #tpu.memory_space<vmem>>, vector<32x128xf32>
    %c0_5 = arith.constant 0 : index
    %c0_6 = arith.constant 0 : index
    %3 = vector.load %arg5[%c0_5, %c0_6] : memref<1x128xf32, #tpu.memory_space<vmem>>, vector<1x128xf32>
    %cst = arith.constant 0.000000e+00 : f32
    %4 = vector.broadcast %cst : f32 to vector<8x32xf32>
    %c0_i32 = arith.constant 0 : i32
    %cst_7 = arith.constant dense<0.000000e+00> : vector<8x128xf32>
    %5 = tpu.matmul %4, %2, %cst_7 {dimension_numbers = #tpu.dot_dimension_numbers<[1], [0], [0], [1], [0, 0, 1, 1], [], []>, precision = #tpu.contract_precision<fp32>} : vector<8x32xf32>, vector<32x128xf32>, vector<8x128xf32> -> vector<8x128xf32>
    %6 = vector.broadcast %3 : vector<1x128xf32> to vector<8x128xf32>
    %7 = arith.addf %5, %6 : vector<8x128xf32>
    %8 = arith.index_cast %c0_i32 : i32 to index
    %c0_8 = arith.constant 0 : index
    %c0_9 = arith.constant 0 : index
    %9 = vector.load %arg1[%8, %c0_8, %c0_9] : memref<9x8x128xf32, #tpu.memory_space<vmem>>, vector<1x8x128xf32>
    %10 = vector.shape_cast %9 : vector<1x8x128xf32> to vector<8x128xf32>
    %cst_10 = arith.constant dense<0.000000e+00> : vector<8x128xf32>
    %11 = tpu.matmul %4, %0, %cst_10 {dimension_numbers = #tpu.dot_dimension_numbers<[1], [0], [0], [1], [0, 0, 1, 1], [], []>, precision = #tpu.contract_precision<fp32>} : vector<8x32xf32>, vector<32x128xf32>, vector<8x128xf32> -> vector<8x128xf32>
    %12 = arith.addf %10, %11 : vector<8x128xf32>
    %13 = vector.extract_strided_slice %12 {offsets = [0, 0], sizes = [8, 32], strides = [1, 1]} : vector<8x128xf32> to vector<8x32xf32>
    %14 = arith.negf %13 : vector<8x32xf32>
    %15 = math.exp %14 : vector<8x32xf32>
    %cst_11 = arith.constant 1.000000e+00 : f32
    %16 = vector.broadcast %cst_11 : f32 to vector<8x32xf32>
    %17 = arith.addf %16, %15 : vector<8x32xf32>
    %18 = arith.divf %16, %17 : vector<8x32xf32>
    %19 = vector.extract_strided_slice %12 {offsets = [0, 32], sizes = [8, 32], strides = [1, 1]} : vector<8x128xf32> to vector<8x32xf32>
    %20 = arith.negf %19 : vector<8x32xf32>
    %21 = math.exp %20 : vector<8x32xf32>
    %cst_12 = arith.constant 1.000000e+00 : f32
    %22 = vector.broadcast %cst_12 : f32 to vector<8x32xf32>
    %23 = arith.addf %22, %21 : vector<8x32xf32>
    %24 = arith.divf %22, %23 : vector<8x32xf32>
    %25 = vector.extract_strided_slice %12 {offsets = [0, 64], sizes = [8, 32], strides = [1, 1]} : vector<8x128xf32> to vector<8x32xf32>
    %26 = math.tanh %25 : vector<8x32xf32>
    %27 = vector.extract_strided_slice %12 {offsets = [0, 96], sizes = [8, 32], strides = [1, 1]} : vector<8x128xf32> to vector<8x32xf32>
    %28 = arith.negf %27 : vector<8x32xf32>
    %29 = math.exp %28 : vector<8x32xf32>
    %cst_13 = arith.constant 1.000000e+00 : f32
    %30 = vector.broadcast %cst_13 : f32 to vector<8x32xf32>
    %31 = arith.addf %30, %29 : vector<8x32xf32>
    %32 = arith.divf %30, %31 : vector<8x32xf32>
    %33 = arith.mulf %24, %4 : vector<8x32xf32>
    %34 = arith.mulf %18, %26 : vector<8x32xf32>
    %35 = arith.addf %33, %34 : vector<8x32xf32>
    %36 = math.tanh %35 : vector<8x32xf32>
    %37 = arith.mulf %32, %36 : vector<8x32xf32>
    %cst_14 = arith.constant dense<0.000000e+00> : vector<8x128xf32>
    %38 = tpu.matmul %37, %1, %cst_14 {dimension_numbers = #tpu.dot_dimension_numbers<[1], [0], [0], [1], [0, 0, 1, 1], [], []>, precision = #tpu.contract_precision<fp32>} : vector<8x32xf32>, vector<32x128xf32>, vector<8x128xf32> -> vector<8x128xf32>
    %39 = arith.addf %7, %38 : vector<8x128xf32>
    %40 = vector.extract_strided_slice %39 {offsets = [0, 0], sizes = [8, 32], strides = [1, 1]} : vector<8x128xf32> to vector<8x32xf32>
    %41 = arith.negf %40 : vector<8x32xf32>
    %42 = math.exp %41 : vector<8x32xf32>
    %cst_15 = arith.constant 1.000000e+00 : f32
    %43 = vector.broadcast %cst_15 : f32 to vector<8x32xf32>
    %44 = arith.addf %43, %42 : vector<8x32xf32>
    %45 = arith.divf %43, %44 : vector<8x32xf32>
    %46 = vector.extract_strided_slice %39 {offsets = [0, 32], sizes = [8, 32], strides = [1, 1]} : vector<8x128xf32> to vector<8x32xf32>
    %47 = arith.negf %46 : vector<8x32xf32>
    %48 = math.exp %47 : vector<8x32xf32>
    %cst_16 = arith.constant 1.000000e+00 : f32
    %49 = vector.broadcast %cst_16 : f32 to vector<8x32xf32>
    %50 = arith.addf %49, %48 : vector<8x32xf32>
    %51 = arith.divf %49, %50 : vector<8x32xf32>
    %52 = vector.extract_strided_slice %39 {offsets = [0, 64], sizes = [8, 32], strides = [1, 1]} : vector<8x128xf32> to vector<8x32xf32>
    %53 = math.tanh %52 : vector<8x32xf32>
    %54 = vector.extract_strided_slice %39 {offsets = [0, 96], sizes = [8, 32], strides = [1, 1]} : vector<8x128xf32> to vector<8x32xf32>
    %55 = arith.negf %54 : vector<8x32xf32>
    %56 = math.exp %55 : vector<8x32xf32>
    %cst_17 = arith.constant 1.000000e+00 : f32
    %57 = vector.broadcast %cst_17 : f32 to vector<8x32xf32>
    %58 = arith.addf %57, %56 : vector<8x32xf32>
    %59 = arith.divf %57, %58 : vector<8x32xf32>
    %60 = arith.mulf %51, %4 : vector<8x32xf32>
    %61 = arith.mulf %45, %53 : vector<8x32xf32>
    %62 = arith.addf %60, %61 : vector<8x32xf32>
    %63 = math.tanh %62 : vector<8x32xf32>
    %64 = arith.mulf %59, %63 : vector<8x32xf32>
    %c1_i32 = arith.constant 1 : i32
    %cst_18 = arith.constant dense<0.000000e+00> : vector<8x128xf32>
    %65 = tpu.matmul %64, %2, %cst_18 {dimension_numbers = #tpu.dot_dimension_numbers<[1], [0], [0], [1], [0, 0, 1, 1], [], []>, precision = #tpu.contract_precision<fp32>} : vector<8x32xf32>, vector<32x128xf32>, vector<8x128xf32> -> vector<8x128xf32>
    %66 = vector.broadcast %3 : vector<1x128xf32> to vector<8x128xf32>
    %67 = arith.addf %65, %66 : vector<8x128xf32>
    %68 = arith.index_cast %c1_i32 : i32 to index
    %c0_19 = arith.constant 0 : index
    %c0_20 = arith.constant 0 : index
    %69 = vector.load %arg1[%68, %c0_19, %c0_20] : memref<9x8x128xf32, #tpu.memory_space<vmem>>, vector<1x8x128xf32>
    %70 = vector.shape_cast %69 : vector<1x8x128xf32> to vector<8x128xf32>
    %cst_21 = arith.constant dense<0.000000e+00> : vector<8x128xf32>
    %71 = tpu.matmul %37, %0, %cst_21 {dimension_numbers = #tpu.dot_dimension_numbers<[1], [0], [0], [1], [0, 0, 1, 1], [], []>, precision = #tpu.contract_precision<fp32>} : vector<8x32xf32>, vector<32x128xf32>, vector<8x128xf32> -> vector<8x128xf32>
    %72 = arith.addf %70, %71 : vector<8x128xf32>
    %73 = vector.extract_strided_slice %72 {offsets = [0, 0], sizes = [8, 32], strides = [1, 1]} : vector<8x128xf32> to vector<8x32xf32>
    %74 = arith.negf %73 : vector<8x32xf32>
    %75 = math.exp %74 : vector<8x32xf32>
    %cst_22 = arith.constant 1.000000e+00 : f32
    %76 = vector.broadcast %cst_22 : f32 to vector<8x32xf32>
    %77 = arith.addf %76, %75 : vector<8x32xf32>
    %78 = arith.divf %76, %77 : vector<8x32xf32>
    %79 = vector.extract_strided_slice %72 {offsets = [0, 32], sizes = [8, 32], strides = [1, 1]} : vector<8x128xf32> to vector<8x32xf32>
    %80 = arith.negf %79 : vector<8x32xf32>
    %81 = math.exp %80 : vector<8x32xf32>
    %cst_23 = arith.constant 1.000000e+00 : f32
    %82 = vector.broadcast %cst_23 : f32 to vector<8x32xf32>
    %83 = arith.addf %82, %81 : vector<8x32xf32>
    %84 = arith.divf %82, %83 : vector<8x32xf32>
    %85 = vector.extract_strided_slice %72 {offsets = [0, 64], sizes = [8, 32], strides = [1, 1]} : vector<8x128xf32> to vector<8x32xf32>
    %86 = math.tanh %85 : vector<8x32xf32>
    %87 = vector.extract_strided_slice %72 {offsets = [0, 96], sizes = [8, 32], strides = [1, 1]} : vector<8x128xf32> to vector<8x32xf32>
    %88 = arith.negf %87 : vector<8x32xf32>
    %89 = math.exp %88 : vector<8x32xf32>
    %cst_24 = arith.constant 1.000000e+00 : f32
    %90 = vector.broadcast %cst_24 : f32 to vector<8x32xf32>
    %91 = arith.addf %90, %89 : vector<8x32xf32>
    %92 = arith.divf %90, %91 : vector<8x32xf32>
    %93 = arith.mulf %84, %35 : vector<8x32xf32>
    %94 = arith.mulf %78, %86 : vector<8x32xf32>
    %95 = arith.addf %93, %94 : vector<8x32xf32>
    %96 = math.tanh %95 : vector<8x32xf32>
    %97 = arith.mulf %92, %96 : vector<8x32xf32>
    %cst_25 = arith.constant dense<0.000000e+00> : vector<8x128xf32>
    %98 = tpu.matmul %97, %1, %cst_25 {dimension_numbers = #tpu.dot_dimension_numbers<[1], [0], [0], [1], [0, 0, 1, 1], [], []>, precision = #tpu.contract_precision<fp32>} : vector<8x32xf32>, vector<32x128xf32>, vector<8x128xf32> -> vector<8x128xf32>
    %99 = arith.addf %67, %98 : vector<8x128xf32>
    %100 = vector.extract_strided_slice %99 {offsets = [0, 0], sizes = [8, 32], strides = [1, 1]} : vector<8x128xf32> to vector<8x32xf32>
    %101 = arith.negf %100 : vector<8x32xf32>
    %102 = math.exp %101 : vector<8x32xf32>
    %cst_26 = arith.constant 1.000000e+00 : f32
    %103 = vector.broadcast %cst_26 : f32 to vector<8x32xf32>
    %104 = arith.addf %103, %102 : vector<8x32xf32>
    %105 = arith.divf %103, %104 : vector<8x32xf32>
    %106 = vector.extract_strided_slice %99 {offsets = [0, 32], sizes = [8, 32], strides = [1, 1]} : vector<8x128xf32> to vector<8x32xf32>
    %107 = arith.negf %106 : vector<8x32xf32>
    %108 = math.exp %107 : vector<8x32xf32>
    %cst_27 = arith.constant 1.000000e+00 : f32
    %109 = vector.broadcast %cst_27 : f32 to vector<8x32xf32>
    %110 = arith.addf %109, %108 : vector<8x32xf32>
    %111 = arith.divf %109, %110 : vector<8x32xf32>
    %112 = vector.extract_strided_slice %99 {offsets = [0, 64], sizes = [8, 32], strides = [1, 1]} : vector<8x128xf32> to vector<8x32xf32>
    %113 = math.tanh %112 : vector<8x32xf32>
    %114 = vector.extract_strided_slice %99 {offsets = [0, 96], sizes = [8, 32], strides = [1, 1]} : vector<8x128xf32> to vector<8x32xf32>
    %115 = arith.negf %114 : vector<8x32xf32>
    %116 = math.exp %115 : vector<8x32xf32>
    %cst_28 = arith.constant 1.000000e+00 : f32
    %117 = vector.broadcast %cst_28 : f32 to vector<8x32xf32>
    %118 = arith.addf %117, %116 : vector<8x32xf32>
    %119 = arith.divf %117, %118 : vector<8x32xf32>
    %120 = arith.mulf %111, %62 : vector<8x32xf32>
    %121 = arith.mulf %105, %113 : vector<8x32xf32>
    %122 = arith.addf %120, %121 : vector<8x32xf32>
    %123 = math.tanh %122 : vector<8x32xf32>
    %124 = arith.mulf %119, %123 : vector<8x32xf32>
    %c2_i32 = arith.constant 2 : i32
    %cst_29 = arith.constant dense<0.000000e+00> : vector<8x128xf32>
    %125 = tpu.matmul %124, %2, %cst_29 {dimension_numbers = #tpu.dot_dimension_numbers<[1], [0], [0], [1], [0, 0, 1, 1], [], []>, precision = #tpu.contract_precision<fp32>} : vector<8x32xf32>, vector<32x128xf32>, vector<8x128xf32> -> vector<8x128xf32>
    %126 = vector.broadcast %3 : vector<1x128xf32> to vector<8x128xf32>
    %127 = arith.addf %125, %126 : vector<8x128xf32>
    %128 = arith.index_cast %c2_i32 : i32 to index
    %c0_30 = arith.constant 0 : index
    %c0_31 = arith.constant 0 : index
    %129 = vector.load %arg1[%128, %c0_30, %c0_31] : memref<9x8x128xf32, #tpu.memory_space<vmem>>, vector<1x8x128xf32>
    %130 = vector.shape_cast %129 : vector<1x8x128xf32> to vector<8x128xf32>
    %cst_32 = arith.constant dense<0.000000e+00> : vector<8x128xf32>
    %131 = tpu.matmul %97, %0, %cst_32 {dimension_numbers = #tpu.dot_dimension_numbers<[1], [0], [0], [1], [0, 0, 1, 1], [], []>, precision = #tpu.contract_precision<fp32>} : vector<8x32xf32>, vector<32x128xf32>, vector<8x128xf32> -> vector<8x128xf32>
    %132 = arith.addf %130, %131 : vector<8x128xf32>
    %133 = vector.extract_strided_slice %132 {offsets = [0, 0], sizes = [8, 32], strides = [1, 1]} : vector<8x128xf32> to vector<8x32xf32>
    %134 = arith.negf %133 : vector<8x32xf32>
    %135 = math.exp %134 : vector<8x32xf32>
    %cst_33 = arith.constant 1.000000e+00 : f32
    %136 = vector.broadcast %cst_33 : f32 to vector<8x32xf32>
    %137 = arith.addf %136, %135 : vector<8x32xf32>
    %138 = arith.divf %136, %137 : vector<8x32xf32>
    %139 = vector.extract_strided_slice %132 {offsets = [0, 32], sizes = [8, 32], strides = [1, 1]} : vector<8x128xf32> to vector<8x32xf32>
    %140 = arith.negf %139 : vector<8x32xf32>
    %141 = math.exp %140 : vector<8x32xf32>
    %cst_34 = arith.constant 1.000000e+00 : f32
    %142 = vector.broadcast %cst_34 : f32 to vector<8x32xf32>
    %143 = arith.addf %142, %141 : vector<8x32xf32>
    %144 = arith.divf %142, %143 : vector<8x32xf32>
    %145 = vector.extract_strided_slice %132 {offsets = [0, 64], sizes = [8, 32], strides = [1, 1]} : vector<8x128xf32> to vector<8x32xf32>
    %146 = math.tanh %145 : vector<8x32xf32>
    %147 = vector.extract_strided_slice %132 {offsets = [0, 96], sizes = [8, 32], strides = [1, 1]} : vector<8x128xf32> to vector<8x32xf32>
    %148 = arith.negf %147 : vector<8x32xf32>
    %149 = math.exp %148 : vector<8x32xf32>
    %cst_35 = arith.constant 1.000000e+00 : f32
    %150 = vector.broadcast %cst_35 : f32 to vector<8x32xf32>
    %151 = arith.addf %150, %149 : vector<8x32xf32>
    %152 = arith.divf %150, %151 : vector<8x32xf32>
    %153 = arith.mulf %144, %95 : vector<8x32xf32>
    %154 = arith.mulf %138, %146 : vector<8x32xf32>
    %155 = arith.addf %153, %154 : vector<8x32xf32>
    %156 = math.tanh %155 : vector<8x32xf32>
    %157 = arith.mulf %152, %156 : vector<8x32xf32>
    %cst_36 = arith.constant dense<0.000000e+00> : vector<8x128xf32>
    %158 = tpu.matmul %157, %1, %cst_36 {dimension_numbers = #tpu.dot_dimension_numbers<[1], [0], [0], [1], [0, 0, 1, 1], [], []>, precision = #tpu.contract_precision<fp32>} : vector<8x32xf32>, vector<32x128xf32>, vector<8x128xf32> -> vector<8x128xf32>
    %159 = arith.addf %127, %158 : vector<8x128xf32>
    %160 = vector.extract_strided_slice %159 {offsets = [0, 0], sizes = [8, 32], strides = [1, 1]} : vector<8x128xf32> to vector<8x32xf32>
    %161 = arith.negf %160 : vector<8x32xf32>
    %162 = math.exp %161 : vector<8x32xf32>
    %cst_37 = arith.constant 1.000000e+00 : f32
    %163 = vector.broadcast %cst_37 : f32 to vector<8x32xf32>
    %164 = arith.addf %163, %162 : vector<8x32xf32>
    %165 = arith.divf %163, %164 : vector<8x32xf32>
    %166 = vector.extract_strided_slice %159 {offsets = [0, 32], sizes = [8, 32], strides = [1, 1]} : vector<8x128xf32> to vector<8x32xf32>
    %167 = arith.negf %166 : vector<8x32xf32>
    %168 = math.exp %167 : vector<8x32xf32>
    %cst_38 = arith.constant 1.000000e+00 : f32
    %169 = vector.broadcast %cst_38 : f32 to vector<8x32xf32>
    %170 = arith.addf %169, %168 : vector<8x32xf32>
    %171 = arith.divf %169, %170 : vector<8x32xf32>
    %172 = vector.extract_strided_slice %159 {offsets = [0, 64], sizes = [8, 32], strides = [1, 1]} : vector<8x128xf32> to vector<8x32xf32>
    %173 = math.tanh %172 : vector<8x32xf32>
    %174 = vector.extract_strided_slice %159 {offsets = [0, 96], sizes = [8, 32], strides = [1, 1]} : vector<8x128xf32> to vector<8x32xf32>
    %175 = arith.negf %174 : vector<8x32xf32>
    %176 = math.exp %175 : vector<8x32xf32>
    %cst_39 = arith.constant 1.000000e+00 : f32
    %177 = vector.broadcast %cst_39 : f32 to vector<8x32xf32>
    %178 = arith.addf %177, %176 : vector<8x32xf32>
    %179 = arith.divf %177, %178 : vector<8x32xf32>
    %180 = arith.mulf %171, %122 : vector<8x32xf32>
    %181 = arith.mulf %165, %173 : vector<8x32xf32>
    %182 = arith.addf %180, %181 : vector<8x32xf32>
    %183 = math.tanh %182 : vector<8x32xf32>
    %184 = arith.mulf %179, %183 : vector<8x32xf32>
    %c3_i32 = arith.constant 3 : i32
    %cst_40 = arith.constant dense<0.000000e+00> : vector<8x128xf32>
    %185 = tpu.matmul %184, %2, %cst_40 {dimension_numbers = #tpu.dot_dimension_numbers<[1], [0], [0], [1], [0, 0, 1, 1], [], []>, precision = #tpu.contract_precision<fp32>} : vector<8x32xf32>, vector<32x128xf32>, vector<8x128xf32> -> vector<8x128xf32>
    %186 = vector.broadcast %3 : vector<1x128xf32> to vector<8x128xf32>
    %187 = arith.addf %185, %186 : vector<8x128xf32>
    %188 = arith.index_cast %c3_i32 : i32 to index
    %c0_41 = arith.constant 0 : index
    %c0_42 = arith.constant 0 : index
    %189 = vector.load %arg1[%188, %c0_41, %c0_42] : memref<9x8x128xf32, #tpu.memory_space<vmem>>, vector<1x8x128xf32>
    %190 = vector.shape_cast %189 : vector<1x8x128xf32> to vector<8x128xf32>
    %cst_43 = arith.constant dense<0.000000e+00> : vector<8x128xf32>
    %191 = tpu.matmul %157, %0, %cst_43 {dimension_numbers = #tpu.dot_dimension_numbers<[1], [0], [0], [1], [0, 0, 1, 1], [], []>, precision = #tpu.contract_precision<fp32>} : vector<8x32xf32>, vector<32x128xf32>, vector<8x128xf32> -> vector<8x128xf32>
    %192 = arith.addf %190, %191 : vector<8x128xf32>
    %193 = vector.extract_strided_slice %192 {offsets = [0, 0], sizes = [8, 32], strides = [1, 1]} : vector<8x128xf32> to vector<8x32xf32>
    %194 = arith.negf %193 : vector<8x32xf32>
    %195 = math.exp %194 : vector<8x32xf32>
    %cst_44 = arith.constant 1.000000e+00 : f32
    %196 = vector.broadcast %cst_44 : f32 to vector<8x32xf32>
    %197 = arith.addf %196, %195 : vector<8x32xf32>
    %198 = arith.divf %196, %197 : vector<8x32xf32>
    %199 = vector.extract_strided_slice %192 {offsets = [0, 32], sizes = [8, 32], strides = [1, 1]} : vector<8x128xf32> to vector<8x32xf32>
    %200 = arith.negf %199 : vector<8x32xf32>
    %201 = math.exp %200 : vector<8x32xf32>
    %cst_45 = arith.constant 1.000000e+00 : f32
    %202 = vector.broadcast %cst_45 : f32 to vector<8x32xf32>
    %203 = arith.addf %202, %201 : vector<8x32xf32>
    %204 = arith.divf %202, %203 : vector<8x32xf32>
    %205 = vector.extract_strided_slice %192 {offsets = [0, 64], sizes = [8, 32], strides = [1, 1]} : vector<8x128xf32> to vector<8x32xf32>
    %206 = math.tanh %205 : vector<8x32xf32>
    %207 = vector.extract_strided_slice %192 {offsets = [0, 96], sizes = [8, 32], strides = [1, 1]} : vector<8x128xf32> to vector<8x32xf32>
    %208 = arith.negf %207 : vector<8x32xf32>
    %209 = math.exp %208 : vector<8x32xf32>
    %cst_46 = arith.constant 1.000000e+00 : f32
    %210 = vector.broadcast %cst_46 : f32 to vector<8x32xf32>
    %211 = arith.addf %210, %209 : vector<8x32xf32>
    %212 = arith.divf %210, %211 : vector<8x32xf32>
    %213 = arith.mulf %204, %155 : vector<8x32xf32>
    %214 = arith.mulf %198, %206 : vector<8x32xf32>
    %215 = arith.addf %213, %214 : vector<8x32xf32>
    %216 = math.tanh %215 : vector<8x32xf32>
    %217 = arith.mulf %212, %216 : vector<8x32xf32>
    %cst_47 = arith.constant dense<0.000000e+00> : vector<8x128xf32>
    %218 = tpu.matmul %217, %1, %cst_47 {dimension_numbers = #tpu.dot_dimension_numbers<[1], [0], [0], [1], [0, 0, 1, 1], [], []>, precision = #tpu.contract_precision<fp32>} : vector<8x32xf32>, vector<32x128xf32>, vector<8x128xf32> -> vector<8x128xf32>
    %219 = arith.addf %187, %218 : vector<8x128xf32>
    %220 = vector.extract_strided_slice %219 {offsets = [0, 0], sizes = [8, 32], strides = [1, 1]} : vector<8x128xf32> to vector<8x32xf32>
    %221 = arith.negf %220 : vector<8x32xf32>
    %222 = math.exp %221 : vector<8x32xf32>
    %cst_48 = arith.constant 1.000000e+00 : f32
    %223 = vector.broadcast %cst_48 : f32 to vector<8x32xf32>
    %224 = arith.addf %223, %222 : vector<8x32xf32>
    %225 = arith.divf %223, %224 : vector<8x32xf32>
    %226 = vector.extract_strided_slice %219 {offsets = [0, 32], sizes = [8, 32], strides = [1, 1]} : vector<8x128xf32> to vector<8x32xf32>
    %227 = arith.negf %226 : vector<8x32xf32>
    %228 = math.exp %227 : vector<8x32xf32>
    %cst_49 = arith.constant 1.000000e+00 : f32
    %229 = vector.broadcast %cst_49 : f32 to vector<8x32xf32>
    %230 = arith.addf %229, %228 : vector<8x32xf32>
    %231 = arith.divf %229, %230 : vector<8x32xf32>
    %232 = vector.extract_strided_slice %219 {offsets = [0, 64], sizes = [8, 32], strides = [1, 1]} : vector<8x128xf32> to vector<8x32xf32>
    %233 = math.tanh %232 : vector<8x32xf32>
    %234 = vector.extract_strided_slice %219 {offsets = [0, 96], sizes = [8, 32], strides = [1, 1]} : vector<8x128xf32> to vector<8x32xf32>
    %235 = arith.negf %234 : vector<8x32xf32>
    %236 = math.exp %235 : vector<8x32xf32>
    %cst_50 = arith.constant 1.000000e+00 : f32
    %237 = vector.broadcast %cst_50 : f32 to vector<8x32xf32>
    %238 = arith.addf %237, %236 : vector<8x32xf32>
    %239 = arith.divf %237, %238 : vector<8x32xf32>
    %240 = arith.mulf %231, %182 : vector<8x32xf32>
    %241 = arith.mulf %225, %233 : vector<8x32xf32>
    %242 = arith.addf %240, %241 : vector<8x32xf32>
    %243 = math.tanh %242 : vector<8x32xf32>
    %244 = arith.mulf %239, %243 : vector<8x32xf32>
    %c4_i32 = arith.constant 4 : i32
    %cst_51 = arith.constant dense<0.000000e+00> : vector<8x128xf32>
    %245 = tpu.matmul %244, %2, %cst_51 {dimension_numbers = #tpu.dot_dimension_numbers<[1], [0], [0], [1], [0, 0, 1, 1], [], []>, precision = #tpu.contract_precision<fp32>} : vector<8x32xf32>, vector<32x128xf32>, vector<8x128xf32> -> vector<8x128xf32>
    %246 = vector.broadcast %3 : vector<1x128xf32> to vector<8x128xf32>
    %247 = arith.addf %245, %246 : vector<8x128xf32>
    %248 = arith.index_cast %c4_i32 : i32 to index
    %c0_52 = arith.constant 0 : index
    %c0_53 = arith.constant 0 : index
    %249 = vector.load %arg1[%248, %c0_52, %c0_53] : memref<9x8x128xf32, #tpu.memory_space<vmem>>, vector<1x8x128xf32>
    %250 = vector.shape_cast %249 : vector<1x8x128xf32> to vector<8x128xf32>
    %cst_54 = arith.constant dense<0.000000e+00> : vector<8x128xf32>
    %251 = tpu.matmul %217, %0, %cst_54 {dimension_numbers = #tpu.dot_dimension_numbers<[1], [0], [0], [1], [0, 0, 1, 1], [], []>, precision = #tpu.contract_precision<fp32>} : vector<8x32xf32>, vector<32x128xf32>, vector<8x128xf32> -> vector<8x128xf32>
    %252 = arith.addf %250, %251 : vector<8x128xf32>
    %253 = vector.extract_strided_slice %252 {offsets = [0, 0], sizes = [8, 32], strides = [1, 1]} : vector<8x128xf32> to vector<8x32xf32>
    %254 = arith.negf %253 : vector<8x32xf32>
    %255 = math.exp %254 : vector<8x32xf32>
    %cst_55 = arith.constant 1.000000e+00 : f32
    %256 = vector.broadcast %cst_55 : f32 to vector<8x32xf32>
    %257 = arith.addf %256, %255 : vector<8x32xf32>
    %258 = arith.divf %256, %257 : vector<8x32xf32>
    %259 = vector.extract_strided_slice %252 {offsets = [0, 32], sizes = [8, 32], strides = [1, 1]} : vector<8x128xf32> to vector<8x32xf32>
    %260 = arith.negf %259 : vector<8x32xf32>
    %261 = math.exp %260 : vector<8x32xf32>
    %cst_56 = arith.constant 1.000000e+00 : f32
    %262 = vector.broadcast %cst_56 : f32 to vector<8x32xf32>
    %263 = arith.addf %262, %261 : vector<8x32xf32>
    %264 = arith.divf %262, %263 : vector<8x32xf32>
    %265 = vector.extract_strided_slice %252 {offsets = [0, 64], sizes = [8, 32], strides = [1, 1]} : vector<8x128xf32> to vector<8x32xf32>
    %266 = math.tanh %265 : vector<8x32xf32>
    %267 = vector.extract_strided_slice %252 {offsets = [0, 96], sizes = [8, 32], strides = [1, 1]} : vector<8x128xf32> to vector<8x32xf32>
    %268 = arith.negf %267 : vector<8x32xf32>
    %269 = math.exp %268 : vector<8x32xf32>
    %cst_57 = arith.constant 1.000000e+00 : f32
    %270 = vector.broadcast %cst_57 : f32 to vector<8x32xf32>
    %271 = arith.addf %270, %269 : vector<8x32xf32>
    %272 = arith.divf %270, %271 : vector<8x32xf32>
    %273 = arith.mulf %264, %215 : vector<8x32xf32>
    %274 = arith.mulf %258, %266 : vector<8x32xf32>
    %275 = arith.addf %273, %274 : vector<8x32xf32>
    %276 = math.tanh %275 : vector<8x32xf32>
    %277 = arith.mulf %272, %276 : vector<8x32xf32>
    %cst_58 = arith.constant dense<0.000000e+00> : vector<8x128xf32>
    %278 = tpu.matmul %277, %1, %cst_58 {dimension_numbers = #tpu.dot_dimension_numbers<[1], [0], [0], [1], [0, 0, 1, 1], [], []>, precision = #tpu.contract_precision<fp32>} : vector<8x32xf32>, vector<32x128xf32>, vector<8x128xf32> -> vector<8x128xf32>
    %279 = arith.addf %247, %278 : vector<8x128xf32>
    %280 = vector.extract_strided_slice %279 {offsets = [0, 0], sizes = [8, 32], strides = [1, 1]} : vector<8x128xf32> to vector<8x32xf32>
    %281 = arith.negf %280 : vector<8x32xf32>
    %282 = math.exp %281 : vector<8x32xf32>
    %cst_59 = arith.constant 1.000000e+00 : f32
    %283 = vector.broadcast %cst_59 : f32 to vector<8x32xf32>
    %284 = arith.addf %283, %282 : vector<8x32xf32>
    %285 = arith.divf %283, %284 : vector<8x32xf32>
    %286 = vector.extract_strided_slice %279 {offsets = [0, 32], sizes = [8, 32], strides = [1, 1]} : vector<8x128xf32> to vector<8x32xf32>
    %287 = arith.negf %286 : vector<8x32xf32>
    %288 = math.exp %287 : vector<8x32xf32>
    %cst_60 = arith.constant 1.000000e+00 : f32
    %289 = vector.broadcast %cst_60 : f32 to vector<8x32xf32>
    %290 = arith.addf %289, %288 : vector<8x32xf32>
    %291 = arith.divf %289, %290 : vector<8x32xf32>
    %292 = vector.extract_strided_slice %279 {offsets = [0, 64], sizes = [8, 32], strides = [1, 1]} : vector<8x128xf32> to vector<8x32xf32>
    %293 = math.tanh %292 : vector<8x32xf32>
    %294 = vector.extract_strided_slice %279 {offsets = [0, 96], sizes = [8, 32], strides = [1, 1]} : vector<8x128xf32> to vector<8x32xf32>
    %295 = arith.negf %294 : vector<8x32xf32>
    %296 = math.exp %295 : vector<8x32xf32>
    %cst_61 = arith.constant 1.000000e+00 : f32
    %297 = vector.broadcast %cst_61 : f32 to vector<8x32xf32>
    %298 = arith.addf %297, %296 : vector<8x32xf32>
    %299 = arith.divf %297, %298 : vector<8x32xf32>
    %300 = arith.mulf %291, %242 : vector<8x32xf32>
    %301 = arith.mulf %285, %293 : vector<8x32xf32>
    %302 = arith.addf %300, %301 : vector<8x32xf32>
    %303 = math.tanh %302 : vector<8x32xf32>
    %304 = arith.mulf %299, %303 : vector<8x32xf32>
    %c5_i32 = arith.constant 5 : i32
    %cst_62 = arith.constant dense<0.000000e+00> : vector<8x128xf32>
    %305 = tpu.matmul %304, %2, %cst_62 {dimension_numbers = #tpu.dot_dimension_numbers<[1], [0], [0], [1], [0, 0, 1, 1], [], []>, precision = #tpu.contract_precision<fp32>} : vector<8x32xf32>, vector<32x128xf32>, vector<8x128xf32> -> vector<8x128xf32>
    %306 = vector.broadcast %3 : vector<1x128xf32> to vector<8x128xf32>
    %307 = arith.addf %305, %306 : vector<8x128xf32>
    %308 = arith.index_cast %c5_i32 : i32 to index
    %c0_63 = arith.constant 0 : index
    %c0_64 = arith.constant 0 : index
    %309 = vector.load %arg1[%308, %c0_63, %c0_64] : memref<9x8x128xf32, #tpu.memory_space<vmem>>, vector<1x8x128xf32>
    %310 = vector.shape_cast %309 : vector<1x8x128xf32> to vector<8x128xf32>
    %cst_65 = arith.constant dense<0.000000e+00> : vector<8x128xf32>
    %311 = tpu.matmul %277, %0, %cst_65 {dimension_numbers = #tpu.dot_dimension_numbers<[1], [0], [0], [1], [0, 0, 1, 1], [], []>, precision = #tpu.contract_precision<fp32>} : vector<8x32xf32>, vector<32x128xf32>, vector<8x128xf32> -> vector<8x128xf32>
    %312 = arith.addf %310, %311 : vector<8x128xf32>
    %313 = vector.extract_strided_slice %312 {offsets = [0, 0], sizes = [8, 32], strides = [1, 1]} : vector<8x128xf32> to vector<8x32xf32>
    %314 = arith.negf %313 : vector<8x32xf32>
    %315 = math.exp %314 : vector<8x32xf32>
    %cst_66 = arith.constant 1.000000e+00 : f32
    %316 = vector.broadcast %cst_66 : f32 to vector<8x32xf32>
    %317 = arith.addf %316, %315 : vector<8x32xf32>
    %318 = arith.divf %316, %317 : vector<8x32xf32>
    %319 = vector.extract_strided_slice %312 {offsets = [0, 32], sizes = [8, 32], strides = [1, 1]} : vector<8x128xf32> to vector<8x32xf32>
    %320 = arith.negf %319 : vector<8x32xf32>
    %321 = math.exp %320 : vector<8x32xf32>
    %cst_67 = arith.constant 1.000000e+00 : f32
    %322 = vector.broadcast %cst_67 : f32 to vector<8x32xf32>
    %323 = arith.addf %322, %321 : vector<8x32xf32>
    %324 = arith.divf %322, %323 : vector<8x32xf32>
    %325 = vector.extract_strided_slice %312 {offsets = [0, 64], sizes = [8, 32], strides = [1, 1]} : vector<8x128xf32> to vector<8x32xf32>
    %326 = math.tanh %325 : vector<8x32xf32>
    %327 = vector.extract_strided_slice %312 {offsets = [0, 96], sizes = [8, 32], strides = [1, 1]} : vector<8x128xf32> to vector<8x32xf32>
    %328 = arith.negf %327 : vector<8x32xf32>
    %329 = math.exp %328 : vector<8x32xf32>
    %cst_68 = arith.constant 1.000000e+00 : f32
    %330 = vector.broadcast %cst_68 : f32 to vector<8x32xf32>
    %331 = arith.addf %330, %329 : vector<8x32xf32>
    %332 = arith.divf %330, %331 : vector<8x32xf32>
    %333 = arith.mulf %324, %275 : vector<8x32xf32>
    %334 = arith.mulf %318, %326 : vector<8x32xf32>
    %335 = arith.addf %333, %334 : vector<8x32xf32>
    %336 = math.tanh %335 : vector<8x32xf32>
    %337 = arith.mulf %332, %336 : vector<8x32xf32>
    %cst_69 = arith.constant dense<0.000000e+00> : vector<8x128xf32>
    %338 = tpu.matmul %337, %1, %cst_69 {dimension_numbers = #tpu.dot_dimension_numbers<[1], [0], [0], [1], [0, 0, 1, 1], [], []>, precision = #tpu.contract_precision<fp32>} : vector<8x32xf32>, vector<32x128xf32>, vector<8x128xf32> -> vector<8x128xf32>
    %339 = arith.addf %307, %338 : vector<8x128xf32>
    %340 = vector.extract_strided_slice %339 {offsets = [0, 0], sizes = [8, 32], strides = [1, 1]} : vector<8x128xf32> to vector<8x32xf32>
    %341 = arith.negf %340 : vector<8x32xf32>
    %342 = math.exp %341 : vector<8x32xf32>
    %cst_70 = arith.constant 1.000000e+00 : f32
    %343 = vector.broadcast %cst_70 : f32 to vector<8x32xf32>
    %344 = arith.addf %343, %342 : vector<8x32xf32>
    %345 = arith.divf %343, %344 : vector<8x32xf32>
    %346 = vector.extract_strided_slice %339 {offsets = [0, 32], sizes = [8, 32], strides = [1, 1]} : vector<8x128xf32> to vector<8x32xf32>
    %347 = arith.negf %346 : vector<8x32xf32>
    %348 = math.exp %347 : vector<8x32xf32>
    %cst_71 = arith.constant 1.000000e+00 : f32
    %349 = vector.broadcast %cst_71 : f32 to vector<8x32xf32>
    %350 = arith.addf %349, %348 : vector<8x32xf32>
    %351 = arith.divf %349, %350 : vector<8x32xf32>
    %352 = vector.extract_strided_slice %339 {offsets = [0, 64], sizes = [8, 32], strides = [1, 1]} : vector<8x128xf32> to vector<8x32xf32>
    %353 = math.tanh %352 : vector<8x32xf32>
    %354 = vector.extract_strided_slice %339 {offsets = [0, 96], sizes = [8, 32], strides = [1, 1]} : vector<8x128xf32> to vector<8x32xf32>
    %355 = arith.negf %354 : vector<8x32xf32>
    %356 = math.exp %355 : vector<8x32xf32>
    %cst_72 = arith.constant 1.000000e+00 : f32
    %357 = vector.broadcast %cst_72 : f32 to vector<8x32xf32>
    %358 = arith.addf %357, %356 : vector<8x32xf32>
    %359 = arith.divf %357, %358 : vector<8x32xf32>
    %360 = arith.mulf %351, %302 : vector<8x32xf32>
    %361 = arith.mulf %345, %353 : vector<8x32xf32>
    %362 = arith.addf %360, %361 : vector<8x32xf32>
    %363 = math.tanh %362 : vector<8x32xf32>
    %364 = arith.mulf %359, %363 : vector<8x32xf32>
    %c6_i32 = arith.constant 6 : i32
    %cst_73 = arith.constant dense<0.000000e+00> : vector<8x128xf32>
    %365 = tpu.matmul %364, %2, %cst_73 {dimension_numbers = #tpu.dot_dimension_numbers<[1], [0], [0], [1], [0, 0, 1, 1], [], []>, precision = #tpu.contract_precision<fp32>} : vector<8x32xf32>, vector<32x128xf32>, vector<8x128xf32> -> vector<8x128xf32>
    %366 = vector.broadcast %3 : vector<1x128xf32> to vector<8x128xf32>
    %367 = arith.addf %365, %366 : vector<8x128xf32>
    %368 = arith.index_cast %c6_i32 : i32 to index
    %c0_74 = arith.constant 0 : index
    %c0_75 = arith.constant 0 : index
    %369 = vector.load %arg1[%368, %c0_74, %c0_75] : memref<9x8x128xf32, #tpu.memory_space<vmem>>, vector<1x8x128xf32>
    %370 = vector.shape_cast %369 : vector<1x8x128xf32> to vector<8x128xf32>
    %cst_76 = arith.constant dense<0.000000e+00> : vector<8x128xf32>
    %371 = tpu.matmul %337, %0, %cst_76 {dimension_numbers = #tpu.dot_dimension_numbers<[1], [0], [0], [1], [0, 0, 1, 1], [], []>, precision = #tpu.contract_precision<fp32>} : vector<8x32xf32>, vector<32x128xf32>, vector<8x128xf32> -> vector<8x128xf32>
    %372 = arith.addf %370, %371 : vector<8x128xf32>
    %373 = vector.extract_strided_slice %372 {offsets = [0, 0], sizes = [8, 32], strides = [1, 1]} : vector<8x128xf32> to vector<8x32xf32>
    %374 = arith.negf %373 : vector<8x32xf32>
    %375 = math.exp %374 : vector<8x32xf32>
    %cst_77 = arith.constant 1.000000e+00 : f32
    %376 = vector.broadcast %cst_77 : f32 to vector<8x32xf32>
    %377 = arith.addf %376, %375 : vector<8x32xf32>
    %378 = arith.divf %376, %377 : vector<8x32xf32>
    %379 = vector.extract_strided_slice %372 {offsets = [0, 32], sizes = [8, 32], strides = [1, 1]} : vector<8x128xf32> to vector<8x32xf32>
    %380 = arith.negf %379 : vector<8x32xf32>
    %381 = math.exp %380 : vector<8x32xf32>
    %cst_78 = arith.constant 1.000000e+00 : f32
    %382 = vector.broadcast %cst_78 : f32 to vector<8x32xf32>
    %383 = arith.addf %382, %381 : vector<8x32xf32>
    %384 = arith.divf %382, %383 : vector<8x32xf32>
    %385 = vector.extract_strided_slice %372 {offsets = [0, 64], sizes = [8, 32], strides = [1, 1]} : vector<8x128xf32> to vector<8x32xf32>
    %386 = math.tanh %385 : vector<8x32xf32>
    %387 = vector.extract_strided_slice %372 {offsets = [0, 96], sizes = [8, 32], strides = [1, 1]} : vector<8x128xf32> to vector<8x32xf32>
    %388 = arith.negf %387 : vector<8x32xf32>
    %389 = math.exp %388 : vector<8x32xf32>
    %cst_79 = arith.constant 1.000000e+00 : f32
    %390 = vector.broadcast %cst_79 : f32 to vector<8x32xf32>
    %391 = arith.addf %390, %389 : vector<8x32xf32>
    %392 = arith.divf %390, %391 : vector<8x32xf32>
    %393 = arith.mulf %384, %335 : vector<8x32xf32>
    %394 = arith.mulf %378, %386 : vector<8x32xf32>
    %395 = arith.addf %393, %394 : vector<8x32xf32>
    %396 = math.tanh %395 : vector<8x32xf32>
    %397 = arith.mulf %392, %396 : vector<8x32xf32>
    %cst_80 = arith.constant dense<0.000000e+00> : vector<8x128xf32>
    %398 = tpu.matmul %397, %1, %cst_80 {dimension_numbers = #tpu.dot_dimension_numbers<[1], [0], [0], [1], [0, 0, 1, 1], [], []>, precision = #tpu.contract_precision<fp32>} : vector<8x32xf32>, vector<32x128xf32>, vector<8x128xf32> -> vector<8x128xf32>
    %399 = arith.addf %367, %398 : vector<8x128xf32>
    %400 = vector.extract_strided_slice %399 {offsets = [0, 0], sizes = [8, 32], strides = [1, 1]} : vector<8x128xf32> to vector<8x32xf32>
    %401 = arith.negf %400 : vector<8x32xf32>
    %402 = math.exp %401 : vector<8x32xf32>
    %cst_81 = arith.constant 1.000000e+00 : f32
    %403 = vector.broadcast %cst_81 : f32 to vector<8x32xf32>
    %404 = arith.addf %403, %402 : vector<8x32xf32>
    %405 = arith.divf %403, %404 : vector<8x32xf32>
    %406 = vector.extract_strided_slice %399 {offsets = [0, 32], sizes = [8, 32], strides = [1, 1]} : vector<8x128xf32> to vector<8x32xf32>
    %407 = arith.negf %406 : vector<8x32xf32>
    %408 = math.exp %407 : vector<8x32xf32>
    %cst_82 = arith.constant 1.000000e+00 : f32
    %409 = vector.broadcast %cst_82 : f32 to vector<8x32xf32>
    %410 = arith.addf %409, %408 : vector<8x32xf32>
    %411 = arith.divf %409, %410 : vector<8x32xf32>
    %412 = vector.extract_strided_slice %399 {offsets = [0, 64], sizes = [8, 32], strides = [1, 1]} : vector<8x128xf32> to vector<8x32xf32>
    %413 = math.tanh %412 : vector<8x32xf32>
    %414 = vector.extract_strided_slice %399 {offsets = [0, 96], sizes = [8, 32], strides = [1, 1]} : vector<8x128xf32> to vector<8x32xf32>
    %415 = arith.negf %414 : vector<8x32xf32>
    %416 = math.exp %415 : vector<8x32xf32>
    %cst_83 = arith.constant 1.000000e+00 : f32
    %417 = vector.broadcast %cst_83 : f32 to vector<8x32xf32>
    %418 = arith.addf %417, %416 : vector<8x32xf32>
    %419 = arith.divf %417, %418 : vector<8x32xf32>
    %420 = arith.mulf %411, %362 : vector<8x32xf32>
    %421 = arith.mulf %405, %413 : vector<8x32xf32>
    %422 = arith.addf %420, %421 : vector<8x32xf32>
    %423 = math.tanh %422 : vector<8x32xf32>
    %424 = arith.mulf %419, %423 : vector<8x32xf32>
    %c7_i32 = arith.constant 7 : i32
    %cst_84 = arith.constant dense<0.000000e+00> : vector<8x128xf32>
    %425 = tpu.matmul %424, %2, %cst_84 {dimension_numbers = #tpu.dot_dimension_numbers<[1], [0], [0], [1], [0, 0, 1, 1], [], []>, precision = #tpu.contract_precision<fp32>} : vector<8x32xf32>, vector<32x128xf32>, vector<8x128xf32> -> vector<8x128xf32>
    %426 = vector.broadcast %3 : vector<1x128xf32> to vector<8x128xf32>
    %427 = arith.addf %425, %426 : vector<8x128xf32>
    %428 = arith.index_cast %c7_i32 : i32 to index
    %c0_85 = arith.constant 0 : index
    %c0_86 = arith.constant 0 : index
    %429 = vector.load %arg1[%428, %c0_85, %c0_86] : memref<9x8x128xf32, #tpu.memory_space<vmem>>, vector<1x8x128xf32>
    %430 = vector.shape_cast %429 : vector<1x8x128xf32> to vector<8x128xf32>
    %cst_87 = arith.constant dense<0.000000e+00> : vector<8x128xf32>
    %431 = tpu.matmul %397, %0, %cst_87 {dimension_numbers = #tpu.dot_dimension_numbers<[1], [0], [0], [1], [0, 0, 1, 1], [], []>, precision = #tpu.contract_precision<fp32>} : vector<8x32xf32>, vector<32x128xf32>, vector<8x128xf32> -> vector<8x128xf32>
    %432 = arith.addf %430, %431 : vector<8x128xf32>
    %433 = vector.extract_strided_slice %432 {offsets = [0, 0], sizes = [8, 32], strides = [1, 1]} : vector<8x128xf32> to vector<8x32xf32>
    %434 = arith.negf %433 : vector<8x32xf32>
    %435 = math.exp %434 : vector<8x32xf32>
    %cst_88 = arith.constant 1.000000e+00 : f32
    %436 = vector.broadcast %cst_88 : f32 to vector<8x32xf32>
    %437 = arith.addf %436, %435 : vector<8x32xf32>
    %438 = arith.divf %436, %437 : vector<8x32xf32>
    %439 = vector.extract_strided_slice %432 {offsets = [0, 32], sizes = [8, 32], strides = [1, 1]} : vector<8x128xf32> to vector<8x32xf32>
    %440 = arith.negf %439 : vector<8x32xf32>
    %441 = math.exp %440 : vector<8x32xf32>
    %cst_89 = arith.constant 1.000000e+00 : f32
    %442 = vector.broadcast %cst_89 : f32 to vector<8x32xf32>
    %443 = arith.addf %442, %441 : vector<8x32xf32>
    %444 = arith.divf %442, %443 : vector<8x32xf32>
    %445 = vector.extract_strided_slice %432 {offsets = [0, 64], sizes = [8, 32], strides = [1, 1]} : vector<8x128xf32> to vector<8x32xf32>
    %446 = math.tanh %445 : vector<8x32xf32>
    %447 = vector.extract_strided_slice %432 {offsets = [0, 96], sizes = [8, 32], strides = [1, 1]} : vector<8x128xf32> to vector<8x32xf32>
    %448 = arith.negf %447 : vector<8x32xf32>
    %449 = math.exp %448 : vector<8x32xf32>
    %cst_90 = arith.constant 1.000000e+00 : f32
    %450 = vector.broadcast %cst_90 : f32 to vector<8x32xf32>
    %451 = arith.addf %450, %449 : vector<8x32xf32>
    %452 = arith.divf %450, %451 : vector<8x32xf32>
    %453 = arith.mulf %444, %395 : vector<8x32xf32>
    %454 = arith.mulf %438, %446 : vector<8x32xf32>
    %455 = arith.addf %453, %454 : vector<8x32xf32>
    %456 = math.tanh %455 : vector<8x32xf32>
    %457 = arith.mulf %452, %456 : vector<8x32xf32>
    %cst_91 = arith.constant dense<0.000000e+00> : vector<8x128xf32>
    %458 = tpu.matmul %457, %1, %cst_91 {dimension_numbers = #tpu.dot_dimension_numbers<[1], [0], [0], [1], [0, 0, 1, 1], [], []>, precision = #tpu.contract_precision<fp32>} : vector<8x32xf32>, vector<32x128xf32>, vector<8x128xf32> -> vector<8x128xf32>
    %459 = arith.addf %427, %458 : vector<8x128xf32>
    %460 = vector.extract_strided_slice %459 {offsets = [0, 0], sizes = [8, 32], strides = [1, 1]} : vector<8x128xf32> to vector<8x32xf32>
    %461 = arith.negf %460 : vector<8x32xf32>
    %462 = math.exp %461 : vector<8x32xf32>
    %cst_92 = arith.constant 1.000000e+00 : f32
    %463 = vector.broadcast %cst_92 : f32 to vector<8x32xf32>
    %464 = arith.addf %463, %462 : vector<8x32xf32>
    %465 = arith.divf %463, %464 : vector<8x32xf32>
    %466 = vector.extract_strided_slice %459 {offsets = [0, 32], sizes = [8, 32], strides = [1, 1]} : vector<8x128xf32> to vector<8x32xf32>
    %467 = arith.negf %466 : vector<8x32xf32>
    %468 = math.exp %467 : vector<8x32xf32>
    %cst_93 = arith.constant 1.000000e+00 : f32
    %469 = vector.broadcast %cst_93 : f32 to vector<8x32xf32>
    %470 = arith.addf %469, %468 : vector<8x32xf32>
    %471 = arith.divf %469, %470 : vector<8x32xf32>
    %472 = vector.extract_strided_slice %459 {offsets = [0, 64], sizes = [8, 32], strides = [1, 1]} : vector<8x128xf32> to vector<8x32xf32>
    %473 = math.tanh %472 : vector<8x32xf32>
    %474 = vector.extract_strided_slice %459 {offsets = [0, 96], sizes = [8, 32], strides = [1, 1]} : vector<8x128xf32> to vector<8x32xf32>
    %475 = arith.negf %474 : vector<8x32xf32>
    %476 = math.exp %475 : vector<8x32xf32>
    %cst_94 = arith.constant 1.000000e+00 : f32
    %477 = vector.broadcast %cst_94 : f32 to vector<8x32xf32>
    %478 = arith.addf %477, %476 : vector<8x32xf32>
    %479 = arith.divf %477, %478 : vector<8x32xf32>
    %480 = arith.mulf %471, %422 : vector<8x32xf32>
    %481 = arith.mulf %465, %473 : vector<8x32xf32>
    %482 = arith.addf %480, %481 : vector<8x32xf32>
    %483 = math.tanh %482 : vector<8x32xf32>
    %484 = arith.mulf %479, %483 : vector<8x32xf32>
    %c8_i32 = arith.constant 8 : i32
    %cst_95 = arith.constant dense<0.000000e+00> : vector<8x128xf32>
    %485 = tpu.matmul %484, %2, %cst_95 {dimension_numbers = #tpu.dot_dimension_numbers<[1], [0], [0], [1], [0, 0, 1, 1], [], []>, precision = #tpu.contract_precision<fp32>} : vector<8x32xf32>, vector<32x128xf32>, vector<8x128xf32> -> vector<8x128xf32>
    %486 = vector.broadcast %3 : vector<1x128xf32> to vector<8x128xf32>
    %487 = arith.addf %485, %486 : vector<8x128xf32>
    %488 = arith.index_cast %c8_i32 : i32 to index
    %c0_96 = arith.constant 0 : index
    %c0_97 = arith.constant 0 : index
    %489 = vector.load %arg1[%488, %c0_96, %c0_97] : memref<9x8x128xf32, #tpu.memory_space<vmem>>, vector<1x8x128xf32>
    %490 = vector.shape_cast %489 : vector<1x8x128xf32> to vector<8x128xf32>
    %cst_98 = arith.constant dense<0.000000e+00> : vector<8x128xf32>
    %491 = tpu.matmul %457, %0, %cst_98 {dimension_numbers = #tpu.dot_dimension_numbers<[1], [0], [0], [1], [0, 0, 1, 1], [], []>, precision = #tpu.contract_precision<fp32>} : vector<8x32xf32>, vector<32x128xf32>, vector<8x128xf32> -> vector<8x128xf32>
    %492 = arith.addf %490, %491 : vector<8x128xf32>
    %493 = vector.extract_strided_slice %492 {offsets = [0, 0], sizes = [8, 32], strides = [1, 1]} : vector<8x128xf32> to vector<8x32xf32>
    %494 = arith.negf %493 : vector<8x32xf32>
    %495 = math.exp %494 : vector<8x32xf32>
    %cst_99 = arith.constant 1.000000e+00 : f32
    %496 = vector.broadcast %cst_99 : f32 to vector<8x32xf32>
    %497 = arith.addf %496, %495 : vector<8x32xf32>
    %498 = arith.divf %496, %497 : vector<8x32xf32>
    %499 = vector.extract_strided_slice %492 {offsets = [0, 32], sizes = [8, 32], strides = [1, 1]} : vector<8x128xf32> to vector<8x32xf32>
    %500 = arith.negf %499 : vector<8x32xf32>
    %501 = math.exp %500 : vector<8x32xf32>
    %cst_100 = arith.constant 1.000000e+00 : f32
    %502 = vector.broadcast %cst_100 : f32 to vector<8x32xf32>
    %503 = arith.addf %502, %501 : vector<8x32xf32>
    %504 = arith.divf %502, %503 : vector<8x32xf32>
    %505 = vector.extract_strided_slice %492 {offsets = [0, 64], sizes = [8, 32], strides = [1, 1]} : vector<8x128xf32> to vector<8x32xf32>
    %506 = math.tanh %505 : vector<8x32xf32>
    %507 = vector.extract_strided_slice %492 {offsets = [0, 96], sizes = [8, 32], strides = [1, 1]} : vector<8x128xf32> to vector<8x32xf32>
    %508 = arith.negf %507 : vector<8x32xf32>
    %509 = math.exp %508 : vector<8x32xf32>
    %cst_101 = arith.constant 1.000000e+00 : f32
    %510 = vector.broadcast %cst_101 : f32 to vector<8x32xf32>
    %511 = arith.addf %510, %509 : vector<8x32xf32>
    %512 = arith.divf %510, %511 : vector<8x32xf32>
    %513 = arith.mulf %504, %455 : vector<8x32xf32>
    %514 = arith.mulf %498, %506 : vector<8x32xf32>
    %515 = arith.addf %513, %514 : vector<8x32xf32>
    %516 = math.tanh %515 : vector<8x32xf32>
    %517 = arith.mulf %512, %516 : vector<8x32xf32>
    %cst_102 = arith.constant dense<0.000000e+00> : vector<8x128xf32>
    %518 = tpu.matmul %517, %1, %cst_102 {dimension_numbers = #tpu.dot_dimension_numbers<[1], [0], [0], [1], [0, 0, 1, 1], [], []>, precision = #tpu.contract_precision<fp32>} : vector<8x32xf32>, vector<32x128xf32>, vector<8x128xf32> -> vector<8x128xf32>
    %519 = arith.addf %487, %518 : vector<8x128xf32>
    %520 = vector.extract_strided_slice %519 {offsets = [0, 0], sizes = [8, 32], strides = [1, 1]} : vector<8x128xf32> to vector<8x32xf32>
    %521 = arith.negf %520 : vector<8x32xf32>
    %522 = math.exp %521 : vector<8x32xf32>
    %cst_103 = arith.constant 1.000000e+00 : f32
    %523 = vector.broadcast %cst_103 : f32 to vector<8x32xf32>
    %524 = arith.addf %523, %522 : vector<8x32xf32>
    %525 = arith.divf %523, %524 : vector<8x32xf32>
    %526 = vector.extract_strided_slice %519 {offsets = [0, 32], sizes = [8, 32], strides = [1, 1]} : vector<8x128xf32> to vector<8x32xf32>
    %527 = arith.negf %526 : vector<8x32xf32>
    %528 = math.exp %527 : vector<8x32xf32>
    %cst_104 = arith.constant 1.000000e+00 : f32
    %529 = vector.broadcast %cst_104 : f32 to vector<8x32xf32>
    %530 = arith.addf %529, %528 : vector<8x32xf32>
    %531 = arith.divf %529, %530 : vector<8x32xf32>
    %532 = vector.extract_strided_slice %519 {offsets = [0, 64], sizes = [8, 32], strides = [1, 1]} : vector<8x128xf32> to vector<8x32xf32>
    %533 = math.tanh %532 : vector<8x32xf32>
    %534 = vector.extract_strided_slice %519 {offsets = [0, 96], sizes = [8, 32], strides = [1, 1]} : vector<8x128xf32> to vector<8x32xf32>
    %535 = arith.negf %534 : vector<8x32xf32>
    %536 = math.exp %535 : vector<8x32xf32>
    %cst_105 = arith.constant 1.000000e+00 : f32
    %537 = vector.broadcast %cst_105 : f32 to vector<8x32xf32>
    %538 = arith.addf %537, %536 : vector<8x32xf32>
    %539 = arith.divf %537, %538 : vector<8x32xf32>
    %540 = arith.mulf %531, %482 : vector<8x32xf32>
    %541 = arith.mulf %525, %533 : vector<8x32xf32>
    %542 = arith.addf %540, %541 : vector<8x32xf32>
    %543 = math.tanh %542 : vector<8x32xf32>
    %544 = arith.mulf %539, %543 : vector<8x32xf32>
    %c9_i32 = arith.constant 9 : i32
    %c0_106 = arith.constant 0 : index
    %c0_107 = arith.constant 0 : index
    %545 = vector.load %arg6[%c0_106, %c0_107] : memref<32x128xf32, #tpu.memory_space<vmem>>, vector<32x128xf32>
    %cst_108 = arith.constant dense<0.000000e+00> : vector<8x128xf32>
    %546 = tpu.matmul %544, %545, %cst_108 {dimension_numbers = #tpu.dot_dimension_numbers<[1], [0], [0], [1], [0, 0, 1, 1], [], []>, precision = #tpu.contract_precision<fp32>} : vector<8x32xf32>, vector<32x128xf32>, vector<8x128xf32> -> vector<8x128xf32>
    %c0_109 = arith.constant 0 : index
    %c0_110 = arith.constant 0 : index
    %547 = vector.load %arg7[%c0_109, %c0_110] : memref<1x128xf32, #tpu.memory_space<vmem>>, vector<1x128xf32>
    %548 = vector.broadcast %547 : vector<1x128xf32> to vector<8x128xf32>
    %549 = arith.addf %546, %548 : vector<8x128xf32>
    %c0_111 = arith.constant 0 : index
    %c0_112 = arith.constant 0 : index
    %550 = vector.load %arg8[%c0_111, %c0_112] : memref<8x128xf32, #tpu.memory_space<vmem>>, vector<8x128xf32>
    tpu.vector_store %arg8[%c0_111, %c0_112], %549 {strides = array<i32>} : memref<8x128xf32, #tpu.memory_space<vmem>>, vector<8x128xf32>,
    return
  }
  func.func @transform_0(%arg0: i32) -> (i32, i32, i32) {
    %c0_i32 = arith.constant 0 : i32
    %c0_i32_0 = arith.constant 0 : i32
    %c0_i32_1 = arith.constant 0 : i32
    return %c0_i32, %arg0, %c0_i32_0 : i32, i32, i32
  }
  func.func @transform_1(%arg0: i32) -> (i32, i32) {
    %c0_i32 = arith.constant 0 : i32
    %c0_i32_0 = arith.constant 0 : i32
    %c0_i32_1 = arith.constant 0 : i32
    return %c0_i32, %c0_i32_0 : i32, i32
  }
  func.func @transform_2(%arg0: i32) -> (i32, i32) {
    %c0_i32 = arith.constant 0 : i32
    %c0_i32_0 = arith.constant 0 : i32
    %c0_i32_1 = arith.constant 0 : i32
    return %c0_i32, %c0_i32_0 : i32, i32
  }
  func.func @transform_3(%arg0: i32) -> (i32, i32) {
    %c0_i32 = arith.constant 0 : i32
    %c0_i32_0 = arith.constant 0 : i32
    %c0_i32_1 = arith.constant 0 : i32
    return %c0_i32, %c0_i32_0 : i32, i32
  }
  func.func @transform_4(%arg0: i32) -> (i32, i32) {
    %c0_i32 = arith.constant 0 : i32
    %c0_i32_0 = arith.constant 0 : i32
    %c0_i32_1 = arith.constant 0 : i32
    return %c0_i32, %c0_i32_0 : i32, i32
  }
  func.func @transform_5(%arg0: i32) -> (i32, i32) {
    %c0_i32 = arith.constant 0 : i32
    %c0_i32_0 = arith.constant 0 : i32
    %c0_i32_1 = arith.constant 0 : i32
    return %c0_i32, %c0_i32_0 : i32, i32
  }
  func.func @transform_6(%arg0: i32) -> (i32, i32) {
    %c0_i32 = arith.constant 0 : i32
    %c0_i32_0 = arith.constant 0 : i32
    %c0_i32_1 = arith.constant 0 : i32
    return %c0_i32, %c0_i32_0 : i32, i32
  }
  func.func @transform_7(%arg0: i32) -> (i32, i32) {
    %c0_i32 = arith.constant 0 : i32
    %c0_i32_0 = arith.constant 0 : i32
    return %arg0, %c0_i32 : i32, i32
  }
}

</mosaic_0001>

<bundles_post_ra>
// kernel: tpu_custom_call.1
= control target key start
LH: loop header
LB: loop body
LE: loop exit
PB: predicated region body
PF: predicated region fallthrough
CT: control target
= control target key end

     0   :  { %12 = vsyncpa [#allocation3], 0  ;;  %s20122_s0 = inlined_call_operand.hbm [shape: f32[9,8,128], index: 0, kind: input, shape index: {}]   ;;  %s20123_s1 = inlined_call_operand.hbm [shape: f32[32,128], index: 1, kind: input, shape index: {}]   ;;  %s20124_s2 = inlined_call_operand.hbm [shape: f32[32,128], index: 2, kind: input, shape index: {}]   ;;  %s20125_s3 = inlined_call_operand.hbm [shape: f32[32,128], index: 3, kind: input, shape index: {}]   ;;  %s20126_s4 = inlined_call_operand.vmem [shape: f32[1,128], index: 4, kind: input, shape index: {}]   ;;  %s20127_s5 = inlined_call_operand.hbm [shape: f32[32,128], index: 5, kind: input, shape index: {}]   ;;  %s20128_s6 = inlined_call_operand.vmem [shape: f32[1,128], index: 6, kind: input, shape index: {}]   ;;  %s20129_s7 = inlined_call_operand.hbm [shape: f32[8,128], index: 7, kind: output, shape index: {}]  }
   0x1   :  { %13 = vsyncpa [#allocation6], 0 }
   0x2   :  { %14 = vsyncpa [#allocation9], 0 }
   0x3   :  { %15 = vsyncpa [#allocation4], 0  ;;  %s18517_s24 = smov [#allocation5]   ;;  %s18518_s26 = smov [#allocation8]  }
   0x4   :  { %s33_s25 = sshll.u32 %s18517_s24, 4  ;;  %s57_s27 = sshll.u32 %s18518_s26, 4  ;;  %s34_s25 = int_to_ptr.vmem [resolvable:$true] %s33_s25  ;;  %s18570_s27 = int_to_ptr.vmem [resolvable:$true] %s57_s27 }
   0x5   :  { %s18377_s30 = scalar_lea.hbm %s20123_s1, 512 }
   0x6   :  { %p18378_p0 = scmp.ne.s32.totalorder %s20123_s1, %s18377_s30  ;;  %p18381_p1 = scmp.lt.u32.totalorder %s18377_s30, %s20123_s1 }
   0x8   :  { %p18383_p2 = pnand %p18381_p1, %p18378_p0 }
   0xa   :  { %18386 = shalt.err (!%p18383_p2)
}
   0xb   :  { %s18387_s12 = scalar_lea.vmem %s34_s25, 512  ;;  %p18392_p4 = scmp.lt.s32.totalorder %s34_s25, %s34_s25 }
   0xc   :  { %p18388_p3 = scmp.ne.s32.totalorder %s34_s25, %s18387_s12  ;;  %p18393_p5 = scmp.lt.s32.totalorder %s18387_s12, %s18387_s12 }
   0xe   :  { %p18394_p6 = por %p18393_p5, %p18392_p4 }
  0x10   :  { %p18395_p7 = pnand %p18394_p6, %p18388_p3 }
  0x12   :  { %18398 = shalt.err (!%p18395_p7)
}
  0x13   :  { %s18519_s13 = smov 128   ;;  %s18520_s14 = smov 8  }
  0x14   :  { %39 = dma.hbm_to_vmem [thread:$0]  %s20123_s1, 512, %s34_s25, [#allocation6], %s18519_s13, %s18519_s13, %s18520_s14  }
  0x15   :  { %s18399_s19 = scalar_lea.hbm %s20125_s3, 512 }
  0x16   :  { %p18400_p8 = scmp.ne.s32.totalorder %s20125_s3, %s18399_s19  ;;  %p18403_p9 = scmp.lt.u32.totalorder %s18399_s19, %s20125_s3 }
  0x18   :  { %p18405_p10 = pnand %p18403_p9, %p18400_p8 }
  0x1a   :  { %18408 = shalt.err (!%p18405_p10)
}
  0x1b   :  { %s18409_s24 = scalar_lea.vmem %s18570_s27, 512  ;;  %p18414_p12 = scmp.lt.s32.totalorder %s18570_s27, %s18570_s27 }
  0x1c   :  { %p18410_p11 = scmp.ne.s32.totalorder %s18570_s27, %s18409_s24  ;;  %p18415_p13 = scmp.lt.s32.totalorder %s18409_s24, %s18409_s24 }
  0x1e   :  { %p18416_p0 = por %p18415_p13, %p18414_p12 }
  0x20   :  { %p18417_p1 = pnand %p18416_p0, %p18410_p11 }
  0x22   :  { %18420 = shalt.err (!%p18417_p1)
}
  0x23   :  { %63 = dma.hbm_to_vmem [thread:$0]  %s20125_s3, 512, %s18570_s27, [#allocation9], %s18519_s13, %s18519_s13, %s18520_s14  }
  0x24   :  { %s18521_s26 = smov [#allocation2]   ;;  %s18522_s29 = smov [#allocation7]  }
  0x25   :  { %s21_s28 = sshll.u32 %s18521_s26, 4  ;;  %s45_s30 = sshll.u32 %s18522_s29, 4  ;;  %s22_s28 = int_to_ptr.vmem [resolvable:$true] %s21_s28  ;;  %s18607_s30 = int_to_ptr.vmem [resolvable:$true] %s45_s30 }
  0x26   :  { %s18421_s10 = scalar_lea.hbm %s20122_s0, 1152 }
  0x27   :  { %p18422_p2 = scmp.ne.s32.totalorder %s20122_s0, %s18421_s10  ;;  %p18425_p3 = scmp.lt.u32.totalorder %s18421_s10, %s20122_s0 }
  0x29   :  { %p18427_p4 = pnand %p18425_p3, %p18422_p2 }
  0x2b   :  { %18430 = shalt.err (!%p18427_p4)
}
  0x2c   :  { %s18431_s3 = scalar_lea.vmem %s22_s28, 1152  ;;  %p18436_p6 = scmp.lt.s32.totalorder %s22_s28, %s22_s28 }
  0x2d   :  { %p18432_p5 = scmp.ne.s32.totalorder %s22_s28, %s18431_s3  ;;  %p18437_p7 = scmp.lt.s32.totalorder %s18431_s3, %s18431_s3 }
  0x2f   :  { %p18438_p8 = por %p18437_p7, %p18436_p6 }
  0x31   :  { %p18439_p9 = pnand %p18438_p8, %p18432_p5 }
  0x33   :  { %18442 = shalt.err (!%p18439_p9)
}
  0x34   :  { %27 = dma.hbm_to_vmem [thread:$0]  %s20122_s0, 1152, %s22_s28, [#allocation3], %s18519_s13, %s18519_s13, %s18520_s14  }
  0x35   :  { %s18443_s20 = scalar_lea.hbm %s20124_s2, 512 }
  0x36   :  { %p18444_p10 = scmp.ne.s32.totalorder %s20124_s2, %s18443_s20  ;;  %p18447_p11 = scmp.lt.u32.totalorder %s18443_s20, %s20124_s2 }
  0x38   :  { %p18449_p12 = pnand %p18447_p11, %p18444_p10 }
  0x3a   :  { %18452 = shalt.err (!%p18449_p12)
}
  0x3b   :  { %s18453_s1 = scalar_lea.vmem %s18607_s30, 512  ;;  %p18458_p0 = scmp.lt.s32.totalorder %s18607_s30, %s18607_s30 }
  0x3c   :  { %p18454_p13 = scmp.ne.s32.totalorder %s18607_s30, %s18453_s1  ;;  %p18459_p1 = scmp.lt.s32.totalorder %s18453_s1, %s18453_s1 }
  0x3e   :  { %p18460_p2 = por %p18459_p1, %p18458_p0 }
  0x40   :  { %p18461_p3 = pnand %p18460_p2, %p18454_p13 }
  0x42   :  { %18464 = shalt.err (!%p18461_p3)
}
  0x43   :  { %51 = dma.hbm_to_vmem [thread:$0]  %s20124_s2, 512, %s18607_s30, [#allocation6], %s18519_s13, %s18519_s13, %s18520_s14  }
  0x44   :  { %s18523_s26 = smov [#allocation10]   ;;  %s18465_s9 = scalar_lea.hbm %s20127_s5, 512 }
  0x45   :  { %s71_s28 = sshll.u32 %s18523_s26, 4  ;;  %p18466_p4 = scmp.ne.s32.totalorder %s20127_s5, %s18465_s9  ;;  %s72_s28 = int_to_ptr.vmem [resolvable:$true] %s71_s28 }
  0x46   :  { %p18469_p5 = scmp.lt.u32.totalorder %s18465_s9, %s20127_s5 }
  0x48   :  { %p18471_p6 = pnand %p18469_p5, %p18466_p4 }
  0x4a   :  { %18474 = shalt.err (!%p18471_p6)
}
  0x4b   :  { %s18475_s16 = scalar_lea.vmem %s72_s28, 512  ;;  %p18480_p8 = scmp.lt.s32.totalorder %s72_s28, %s72_s28 }
  0x4c   :  { %p18476_p7 = scmp.ne.s32.totalorder %s72_s28, %s18475_s16  ;;  %p18481_p9 = scmp.lt.s32.totalorder %s18475_s16, %s18475_s16 }
  0x4e   :  { %p18482_p10 = por %p18481_p9, %p18480_p8 }
  0x50   :  { %p18483_p11 = pnand %p18482_p10, %p18476_p7 }
  0x52   :  { %18486 = shalt.err (!%p18483_p11)
}
  0x53   :  { %77 = dma.hbm_to_vmem [thread:$0]  %s20127_s5, 512, %s72_s28, [#allocation9], %s18519_s13, %s18519_s13, %s18520_s14  }
  0x54   :  { %18509 = dma.done.wait [#allocation3], 1152  }
  0x55   :  { %18510 = vsyncadd [#allocation3], 4294966144 }
  0x56   :  { %18511 = dma.done.wait [#allocation6], 1024  }
  0x57   :  { %18512 = vsyncadd [#allocation6], 4294966272 }
  0x58   :  { %18513 = dma.done.wait [#allocation9], 1024  }
  0x59   :  { %18514 = vsyncadd [#allocation9], 4294966272  ;;  %v18524_v0 = vmov 0.0|0.0   ;;  %vm18525_vm0 = vmmov 0   ;;  %v18526_v1 = vmov 0.0   ;;  %v95_v2 = vld [vmem:[#allocation5] sm:$0xff] }
  0x5a   :  { %17028 = vmatprep.subr.bf16.mxu1 %v18524_v0  ;;  %15218 = vmatprep.mubr.msk.f32.mxu1 %vm18525_vm0, %v18526_v1  ;;  %v96_v3 = vld [vmem:[#allocation5 + $0x8] sm:$0xff]  ;;  %v97_v4 = vld [vmem:[#allocation5 + $0x10] sm:$0xff]  ;;  %v605_v5 = vand.u32 4294901760, %v95_v2  ;;  %v98_v7 = vld [vmem:[#allocation5 + $0x18] sm:$0xff]  ;;  %s18527_s5 = smov 64   ;;  %s18528_s13 = smov 32  }
  0x5b   :  { %16992 = vmatprep.subr.bf16.mxu0 %v18524_v0  ;;  %15152 = vmatprep.mubr.msk.f32.mxu0 %vm18525_vm0, %v18526_v1  ;;  %v608_v6 = vand.u32 4294901760, %v96_v3  ;;  %v611_v8 = vand.u32 4294901760, %v97_v4  ;;  %v614_v9 = vand.u32 4294901760, %v98_v7  ;;  %v603_v48 = vld [vmem:[#allocation2] sm:$0xff]  ;;  %v103_v63 = vld [vmem:[#allocation8] sm:$0xff]  ;;  %vm114_vm1 = vcmask 261120  }
  0x5c   :  { %v685_v11 = vsub.f32 %v95_v2, %v605_v5  ;;  %v104_v2 = vld [vmem:[#allocation8 + $0x8] sm:$0xff]  ;;  %s18529_s21 = smov [#allocation11]  }
  0x5d   :  { %v18665_v10 = vpack.c.bf16 %v608_v6, %v605_v5  ;;  %v692_v12 = vsub.f32 %v96_v3, %v608_v6  ;;  %v699_v13 = vsub.f32 %v97_v4, %v611_v8  ;;  %v706_v14 = vsub.f32 %v98_v7, %v614_v9  ;;  %v105_v3 = vld [vmem:[#allocation8 + $0x10] sm:$0xff]  ;;  %v106_v6 = vld [vmem:[#allocation8 + $0x18] sm:$0xff]  ;;  %s14273_s22 = sshll.u32 %s18529_s21, 4  ;;  %s14274_s22 = int_to_ptr.vmem [resolvable:$true] %s14273_s22 }
  0x5e   :  { %v18668_v15 = vpack.c.bf16 %v614_v9, %v611_v8  ;;  %v686_v16 = vand.u32 4294901760, %v685_v11  ;;  %v119_v4 = vand.u32 4294901760, %v103_v63  ;;  %v122_v5 = vand.u32 4294901760, %v104_v2  ;;  %s18487_s23 = scalar_lea.vmem %s14274_s22, 128  ;;  %p18492_p13 = scmp.lt.s32.totalorder %s14274_s22, %s14274_s22 }
  0x5f   :  { %17030 = vmatpush3.bf16.msra.mxu1 %v18665_v10  ;;  %v693_v17 = vand.u32 4294901760, %v692_v12  ;;  %v700_v18 = vand.u32 4294901760, %v699_v13  ;;  %v707_v19 = vand.u32 4294901760, %v706_v14  ;;  %v18683_v30 = vpack.c.bf16 %v692_v12, %v685_v11  ;;  %p18488_p12 = scmp.ne.s32.totalorder %s14274_s22, %s18487_s23  ;;  %p18493_p0 = scmp.lt.s32.totalorder %s18487_s23, %s18487_s23 }
  0x60   :  { %17031 = vmatprep.subr.bf16.mxu1 %v18524_v0  ;;  %v687_v20 = vsub.f32 %v685_v11, %v686_v16  ;;  %v18688_v31 = vpack.c.bf16 %v706_v14, %v699_v13  ;;  %v125_v7 = vand.u32 4294901760, %v105_v3  ;;  %v128_v8 = vand.u32 4294901760, %v106_v6 }
  0x61   :  { %v694_v21 = vsub.f32 %v692_v12, %v693_v17  ;;  %v701_v22 = vsub.f32 %v699_v13, %v700_v18  ;;  %v708_v23 = vsub.f32 %v706_v14, %v707_v19  ;;  %v18701_v32 = vpack.c.bf16 %v693_v17, %v686_v16  ;;  %p18494_p1 = por %p18493_p0, %p18492_p13 }
  0x62   :  { %v688_v24 = vand.u32 4294901760, %v687_v20  ;;  %v18706_v33 = vpack.c.bf16 %v707_v19, %v700_v18  ;;  %v18732_v9 = vpack.c.bf16 %v122_v5, %v119_v4  ;;  %v199_v11 = vsub.f32 %v103_v63, %v119_v4 }
  0x63   :  { %17033 = vmatpush3.bf16.msra.mxu1 %v18668_v15  ;;  %v695_v25 = vand.u32 4294901760, %v694_v21  ;;  %v702_v26 = vand.u32 4294901760, %v701_v22  ;;  %v709_v27 = vand.u32 4294901760, %v708_v23  ;;  %v206_v12 = vsub.f32 %v104_v2, %v122_v5  ;;  %p18495_p2 = pnand %p18494_p1, %p18488_p12 }
  0x64   :  { %17034 = vmatprep.subr.bf16.mxu1 %v18524_v0  ;;  %v213_v13 = vsub.f32 %v105_v3, %v125_v7  ;;  %v220_v14 = vsub.f32 %v106_v6, %v128_v8  ;;  %16994 = vmatpush3.bf16.msra.mxu0 %v18732_v9  ;;  %v18735_v16 = vpack.c.bf16 %v128_v8, %v125_v7  ;;  %v200_v17 = vand.u32 4294901760, %v199_v11 }
  0x65   :  { %v18673_v28 = vpack.c.bf16 %v695_v25, %v688_v24  ;;  %v18677_v29 = vpack.c.bf16 %v709_v27, %v702_v26  ;;  %v207_v18 = vand.u32 4294901760, %v206_v12  ;;  %16995 = vmatprep.subr.bf16.mxu0 %v18524_v0 }
  0x66   :  { %15219 = vmatmul.mubr.f32.vlgmr.msra.gmra.mrb[0].mxu1 %v18526_v1  ;;  %v214_v19 = vand.u32 4294901760, %v213_v13  ;;  %v221_v20 = vand.u32 4294901760, %v220_v14  ;;  %v201_v21 = vsub.f32 %v199_v11, %v200_v17 }
  0x67   :  { %17036 = vmatpush3.bf16.msra.mxu1 %v18673_v28  ;;  %15229 = vmatprep.mubr.msk.f32.mxu1 %vm18525_vm0, %v18526_v1  ;;  %v208_v22 = vsub.f32 %v206_v12, %v207_v18 }
  0x68   :  { %17037 = vmatprep.subr.bf16.mxu1 %v18524_v0  ;;  %v215_v23 = vsub.f32 %v213_v13, %v214_v19  ;;  %v222_v24 = vsub.f32 %v220_v14, %v221_v20  ;;  %16997 = vmatpush3.bf16.msra.mxu0 %v18735_v16  ;;  %v202_v25 = vand.u32 4294901760, %v201_v21 }
  0x69   :  { %v209_v26 = vand.u32 4294901760, %v208_v22  ;;  %16998 = vmatprep.subr.bf16.mxu0 %v18524_v0 }
  0x6a   :  { %v216_v27 = vand.u32 4294901760, %v215_v23 }
  0x6b   :  { %17039 = vmatpush3.bf16.msra.mxu1 %v18677_v29  ;;  %15153 = vmatmul.mubr.f32.vlgmr.msra.gmra.mrb[0].mxu0 %v18526_v1 }
  0x6c   :  { %17040 = vmatprep.subr.bf16.mxu1 %v18524_v0  ;;  %15163 = vmatprep.mubr.msk.f32.mxu0 %vm18525_vm0, %v18526_v1 }
  0x6e   :  { %15230 = vmatmul.mubr.f32.vlgmr.msra.gmra.mrb[2].mxu1 %v18526_v1 }
  0x6f   :  { %17042 = vmatpush3.bf16.msra.mxu1 %v18683_v30  ;;  %15240 = vmatprep.mubr.msk.f32.mxu1 %vm18525_vm0, %v18526_v1 }
  0x70   :  { %17043 = vmatprep.subr.bf16.mxu1 %v18524_v0 }
  0x73   :  { %17045 = vmatpush3.bf16.msra.mxu1 %v18688_v31 }
  0x74   :  { %17046 = vmatprep.subr.bf16.mxu1 %v18524_v0 }
  0x76   :  { %15241 = vmatmul.mubr.f32.vlgmr.msra.gmra.mrb[4].mxu1 %v18526_v1 }
  0x77   :  { %17048 = vmatpush3.bf16.msra.mxu1 %v18665_v10  ;;  %15251 = vmatprep.mubr.msk.f32.mxu1 %vm18525_vm0, %v18526_v1 }
  0x78   :  { %17049 = vmatprep.subr.bf16.mxu1 %v18524_v0 }
  0x7b   :  { %17051 = vmatpush3.bf16.msra.mxu1 %v18668_v15 }
  0x7c   :  { %17052 = vmatprep.subr.bf16.mxu1 %v18524_v0 }
  0x7e   :  { %15252 = vmatmul.mubr.f32.vlgmr.msra.gmra.mrb[6].mxu1 %v18526_v1 }
  0x7f   :  { %17054 = vmatpush3.bf16.msra.mxu1 %v18701_v32  ;;  %15262 = vmatprep.mubr.msk.f32.mxu1 %vm18525_vm0, %v18526_v1 }
  0x80   :  { %17055 = vmatprep.subr.bf16.mxu1 %v18524_v0 }
  0x83   :  { %17057 = vmatpush3.bf16.msra.mxu1 %v18706_v33 }
  0x84   :  { %17058 = vmatprep.subr.bf16.mxu1 %v18524_v0 }
  0x86   :  { %15263 = vmatmul.mubr.f32.vlgmr.msra.gmra.mrb[8].mxu1 %v18526_v1 }
  0x87   :  { %17060 = vmatpush3.bf16.msra.mxu1 %v18665_v10  ;;  %15273 = vmatprep.mubr.msk.f32.mxu1 %vm18525_vm0, %v18526_v1 }
  0x88   :  { %17061 = vmatprep.subr.bf16.mxu1 %v18524_v0 }
  0x8b   :  { %17063 = vmatpush3.bf16.msra.mxu1 %v18668_v15 }
  0x8c   :  { %17100 = vmatprep.subr.bf16.mxu1 %v18524_v0 }
  0x8e   :  { %15274 = vmatmul.mubr.f32.vlgmr.msra.gmra.mrb[10].mxu1 %v18526_v1 }
  0x8f   :  { %15350 = vmatprep.mubr.msk.f32.mxu1 %vm18525_vm0, %v18526_v1  ;;  %17102 = vmatpush3.bf16.msra.mxu1 %v18732_v9 }
  0x90   :  { %17103 = vmatprep.subr.bf16.mxu1 %v18524_v0 }
  0x93   :  { %17105 = vmatpush3.bf16.msra.mxu1 %v18735_v16 }
  0x94   :  { %17106 = vmatprep.subr.bf16.mxu1 %v18524_v0 }
 0x139   :  { %v679_v34 = vpop.f32.mrb[0].mxu1 }
 0x13a   :  { %v15220_v35 = vpop.f32.mrb[1].mxu1 }
 0x13b   :  { %v223_v35 = vand.u32 4294901760, %v222_v24 }
 0x141   :  { %v770_v36 = vpop.f32.mrb[2].mxu1 }
 0x142   :  { %v771_v37 = vadd.f32 %v770_v36, %v679_v34  ;;  %v15231_v38 = vpop.f32.mrb[3].mxu1  ;;  %v18745_v36 = vpack.c.bf16 %v209_v26, %v202_v25  ;;  %v18886_v26 = vld [vmem:[%s20126_s4] ss:$0 sm:$0xff] }
 0x143   :  { %v18755_v38 = vpack.c.bf16 %v206_v12, %v199_v11 }
 0x144   :  { %17000 = vmatpush3.bf16.msra.mxu0 %v18745_v36 }
 0x145   :  { %17001 = vmatprep.subr.bf16.mxu0 %v18524_v0 }
 0x149   :  { %v850_v39 = vpop.f32.mrb[4].mxu1 }
 0x14a   :  { %v851_v40 = vadd.f32 %v850_v39, %v771_v37  ;;  %v15242_v41 = vpop.f32.mrb[5].mxu1  ;;  %v18749_v37 = vpack.c.bf16 %v223_v35, %v216_v27  ;;  %v18760_v39 = vpack.c.bf16 %v220_v14, %v213_v13 }
 0x14b   :  { %v18778_v41 = vpack.c.bf16 %v221_v20, %v214_v19 }
 0x14c   :  { %17003 = vmatpush3.bf16.msra.mxu0 %v18749_v37 }
 0x14d   :  { %17004 = vmatprep.subr.bf16.mxu0 %v18524_v0 }
 0x14f   :  { %15164 = vmatmul.mubr.f32.vlgmr.msra.gmra.mrb[0].mxu0 %v18526_v1 }
 0x150   :  { %17006 = vmatpush3.bf16.msra.mxu0 %v18755_v38  ;;  %15174 = vmatprep.mubr.msk.f32.mxu0 %vm18525_vm0, %v18526_v1 }
 0x151   :  { %v927_v42 = vpop.f32.mrb[6].mxu1  ;;  %17007 = vmatprep.subr.bf16.mxu0 %v18524_v0 }
 0x152   :  { %v928_v43 = vadd.f32 %v927_v42, %v851_v40  ;;  %v15253_v44 = vpop.f32.mrb[7].mxu1  ;;  %v18773_v40 = vpack.c.bf16 %v207_v18, %v200_v17  ;;  %v99_v42 = vld [vmem:[#allocation7] sm:$0xff] }
 0x153   :  { %v1120_v44 = vand.u32 4294901760, %v99_v42 }
 0x154   :  { %17009 = vmatpush3.bf16.msra.mxu0 %v18760_v39 }
 0x155   :  { %17010 = vmatprep.subr.bf16.mxu0 %v18524_v0 }
 0x157   :  { %15175 = vmatmul.mubr.f32.vlgmr.msra.gmra.mrb[0].mxu0 %v18526_v1 }
 0x158   :  { %17012 = vmatpush3.bf16.msra.mxu0 %v18732_v9  ;;  %15185 = vmatprep.mubr.msk.f32.mxu0 %vm18525_vm0, %v18526_v1 }
 0x159   :  { %v1010_v45 = vpop.f32.mrb[8].mxu1  ;;  %17013 = vmatprep.subr.bf16.mxu0 %v18524_v0 }
 0x15a   :  { %v1011_v46 = vadd.f32 %v1010_v45, %v928_v43  ;;  %v15264_v47 = vpop.f32.mrb[9].mxu1  ;;  %v100_v43 = vld [vmem:[#allocation7 + $0x8] sm:$0xff] }
 0x15b   :  { %v1123_v45 = vand.u32 4294901760, %v100_v43  ;;  %v1200_v47 = vsub.f32 %v99_v42, %v1120_v44 }
 0x15c   :  { %17015 = vmatpush3.bf16.msra.mxu0 %v18735_v16 }
 0x15d   :  { %17016 = vmatprep.subr.bf16.mxu0 %v18524_v0 }
 0x15f   :  { %15186 = vmatmul.mubr.f32.vlgmr.msra.gmra.mrb[0].mxu0 %v18526_v1 }
 0x160   :  { %17018 = vmatpush3.bf16.msra.mxu0 %v18773_v40  ;;  %15196 = vmatprep.mubr.msk.f32.mxu0 %vm18525_vm0, %v18526_v1 }
 0x161   :  { %v1085_v49 = vpop.f32.mrb[10].mxu1  ;;  %17019 = vmatprep.subr.bf16.mxu0 %v18524_v0 }
 0x162   :  { %v1086_v50 = vadd.f32 %v1085_v49, %v1011_v46  ;;  %v15275_v51 = vpop.f32.mrb[11].mxu1  ;;  %v18795_v46 = vpack.c.bf16 %v1123_v45, %v1120_v44  ;;  %v101_v49 = vld [vmem:[#allocation7 + $0x10] sm:$0xff] }
 0x163   :  { %v1126_v51 = vand.u32 4294901760, %v101_v49 }
 0x164   :  { %v1089_v52 = vadd.f32 %v1086_v50, %v603_v48  ;;  %17021 = vmatpush3.bf16.msra.mxu0 %v18778_v41  ;;  %v1207_v48 = vsub.f32 %v100_v43, %v1123_v45  ;;  %v102_v50 = vld [vmem:[#allocation7 + $0x18] sm:$0xff] }
 0x165   :  { %17022 = vmatprep.subr.bf16.mxu0 %v18524_v0 }
 0x166   :  { %18231 = vtanh.f32 %v1089_v52  ;;  %v14285_v54 = vmul.f32 -1.442695, %v1089_v52  ;;  %v1129_v52 = vand.u32 4294901760, %v102_v50  ;;  %v18809_v14 = vpack.c.bf16 %v1207_v48, %v1200_v47 }
 0x167   :  { %15197 = vmatmul.mubr.f32.vlgmr.msra.gmra.mrb[0].mxu0 %v18526_v1 }
 0x168   :  { %18233 = vpow2.f32 %v14285_v54  ;;  %17024 = vmatpush3.bf16.msra.mxu0 %v18732_v9  ;;  %15207 = vmatprep.mubr.msk.f32.mxu0 %vm18525_vm0, %v18526_v1  ;;  %v1208_v54 = vand.u32 4294901760, %v1207_v48 }
 0x169   :  { %17025 = vmatprep.subr.bf16.mxu0 %v18524_v0 }
 0x16c   :  { %17027 = vmatpush3.bf16.msra.mxu0 %v18735_v16 }
 0x16d   :  { %17064 = vmatprep.subr.bf16.mxu0 %v18524_v0 }
 0x16f   :  { %15208 = vmatmul.mubr.f32.vlgmr.msra.gmra.mrb[0].mxu0 %v18526_v1 }
 0x170   :  { %v18232_v53 = vpop.eup %18231  ;;  %15284 = vmatprep.mubr.msk.f32.mxu0 %vm18525_vm0, %v18526_v1  ;;  %17066 = vmatpush3.bf16.msra.mxu0 %v18795_v46 }
 0x171   :  { %1099 = vrot.lane.b32.xlu0 %v18232_v53, %s18527_s5  ;;  %v1201_v53 = vand.u32 4294901760, %v1200_v47  ;;  %17067 = vmatprep.subr.bf16.mxu0 %v18524_v0 }
 0x172   :  { %v18234_v55 = vpop.eup %18233 }
 0x173   :  { %v1093_v56 = vadd.f32 1.0, %v18234_v55  ;;  %v18799_v55 = vpack.c.bf16 %v1129_v52, %v1126_v51  ;;  %v18813_v18 = vpack.c.bf16 %v1208_v54, %v1201_v53 }
 0x175   :  { %18235 = vrcp.f32 %v1093_v56  ;;  %v1202_v56 = vsub.f32 %v1200_v47, %v1201_v53  ;;  %17069 = vmatpush3.bf16.msra.mxu0 %v18799_v55 }
 0x176   :  { %17070 = vmatprep.subr.bf16.mxu0 %v18524_v0 }
 0x17f   :  { %v18724_v57 = vpop.eup %18235 }
 0x180   :  { %v1097_v60 = vmul.f32 0.0, %v18724_v57 }
 0x1e3   :  { %v1100_v58 = vpop.permute.xlu0 %1099 }
 0x1e4   :  { %v1102_v59 = vmul.f32 %v18724_v57, %v1100_v58  ;;  %v1209_v58 = vsub.f32 %v1207_v48, %v1208_v54 }
 0x1e6   :  { %1104 = vrot.lane.b32.xlu0 %v1102_v59, %s18528_s13  ;;  %v1214_v59 = vsub.f32 %v101_v49, %v1126_v51  ;;  %v1210_v63 = vand.u32 4294901760, %v1209_v58 }
 0x1e8   :  { %v1215_v2 = vand.u32 4294901760, %v1214_v59 }
 0x1ea   :  { %v1216_v6 = vsub.f32 %v1214_v59, %v1215_v2 }
 0x1ec   :  { %v1217_v11 = vand.u32 4294901760, %v1216_v6 }
 0x258   :  { %v1105_v61 = vpop.permute.xlu0 %1104 }
 0x259   :  { %v18729_v62 = vadd.f32 %v1105_v61, %v1097_v60  ;;  %v1221_v60 = vsub.f32 %v102_v50, %v1129_v52  ;;  %v1203_v61 = vand.u32 4294901760, %v1202_v56 }
 0x25b   :  { %18237 = vtanh.f32 %v18729_v62  ;;  %v1222_v3 = vand.u32 4294901760, %v1221_v60  ;;  %v18803_v4 = vpack.c.bf16 %v1210_v63, %v1203_v61  ;;  %v18811_v17 = vpack.c.bf16 %v1221_v60, %v1214_v59 }
 0x25d   :  { %v1223_v7 = vsub.f32 %v1221_v60, %v1222_v3  ;;  %v18815_v19 = vpack.c.bf16 %v1222_v3, %v1215_v2 }
 0x25f   :  { %v1224_v12 = vand.u32 4294901760, %v1223_v7 }
 0x261   :  { %v18807_v13 = vpack.c.bf16 %v1224_v12, %v1217_v11 }
 0x265   :  { %v18238_v34 = vpop.eup %18237 }
 0x266   :  { %1110 = vrot.lane.b32.xlu1 %v18238_v34, %s18527_s5 }
 0x2d8   :  { %v1111_v5 = vpop.permute.xlu1 %1110 }
 0x2d9   :  { %v1113_v8 = vmul.f32 %v18724_v57, %v1111_v5 }
 0x2db   :  { %1115 = vrot.lane.b32.xlu1 %v1113_v8, %s18528_s13 }
 0x34d   :  { %v1116_v20 = vpop.permute.xlu1 %1115 }
 0x34e   :  { %v1117_v21 = vsel %vm114_vm1, %v1116_v20, 0 }
 0x34f   :  { %v18818_v22 = vand.u32 4294901760, %v1117_v21 }
 0x351   :  { %v1189_v57 = vsub.f32 %v1117_v21, %v18818_v22 }
 0x353   :  { %v18821_v23 = vand.u32 4294901760, %v1189_v57 }
 0x355   :  { %v1191_v24 = vsub.f32 %v1189_v57, %v18821_v23 }
 0x357   :  { %v1192_v25 = vand.u32 4294901760, %v1191_v24 }
 0x359   :  { %15285 = vmatmul.mubr.f32.vlgmr.msra.gmra.mrb[0].mxu0 %v1192_v25 }
 0x35a   :  { %17072 = vmatpush3.bf16.msra.mxu0 %v18803_v4  ;;  %15295 = vmatprep.mubr.msk.f32.mxu0 %vm18525_vm0, %v18526_v1 }
 0x35b   :  { %17073 = vmatprep.subr.bf16.mxu0 %v18524_v0 }
 0x35e   :  { %17075 = vmatpush3.bf16.msra.mxu0 %v18807_v13 }
 0x35f   :  { %17076 = vmatprep.subr.bf16.mxu0 %v18524_v0 }
 0x361   :  { %15296 = vmatmul.mubr.f32.vlgmr.msra.gmra.mrb[0].mxu0 %v18818_v22 }
 0x362   :  { %17078 = vmatpush3.bf16.msra.mxu0 %v18809_v14  ;;  %15306 = vmatprep.mubr.msk.f32.mxu0 %vm18525_vm0, %v18526_v1 }
 0x363   :  { %17079 = vmatprep.subr.bf16.mxu0 %v18524_v0 }
 0x366   :  { %17081 = vmatpush3.bf16.msra.mxu0 %v18811_v17 }
 0x367   :  { %17082 = vmatprep.subr.bf16.mxu0 %v18524_v0 }
 0x369   :  { %15307 = vmatmul.mubr.f32.vlgmr.msra.gmra.mrb[0].mxu0 %v1189_v57 }
 0x36a   :  { %17084 = vmatpush3.bf16.msra.mxu0 %v18795_v46  ;;  %15317 = vmatprep.mubr.msk.f32.mxu0 %vm18525_vm0, %v18526_v1 }
 0x36b   :  { %17085 = vmatprep.subr.bf16.mxu0 %v18524_v0 }
 0x36e   :  { %17087 = vmatpush3.bf16.msra.mxu0 %v18799_v55 }
 0x36f   :  { %17088 = vmatprep.subr.bf16.mxu0 %v18524_v0 }
 0x371   :  { %15318 = vmatmul.mubr.f32.vlgmr.msra.gmra.mrb[0].mxu0 %v18821_v23 }
 0x372   :  { %17090 = vmatpush3.bf16.msra.mxu0 %v18813_v18  ;;  %15328 = vmatprep.mubr.msk.f32.mxu0 %vm18525_vm0, %v18526_v1 }
 0x373   :  { %17091 = vmatprep.subr.bf16.mxu0 %v18524_v0 }
 0x376   :  { %17093 = vmatpush3.bf16.msra.mxu0 %v18815_v19 }
 0x377   :  { %17094 = vmatprep.subr.bf16.mxu0 %v18524_v0 }
 0x379   :  { %15329 = vmatmul.mubr.f32.vlgmr.msra.gmra.mrb[0].mxu0 %v18818_v22 }
 0x37a   :  { %17096 = vmatpush3.bf16.msra.mxu0 %v18795_v46  ;;  %15339 = vmatprep.mubr.msk.f32.mxu0 %vm18525_vm0, %v18526_v1 }
 0x37b   :  { %17097 = vmatprep.subr.bf16.mxu0 %v18524_v0 }
 0x37e   :  { %17099 = vmatpush3.bf16.msra.mxu0 %v18799_v55 }
 0x37f   :  { %17136 = vmatprep.subr.bf16.mxu0 %v18524_v0 }
 0x381   :  { %15340 = vmatmul.mubr.f32.vlgmr.msra.gmra.mrb[0].mxu0 %v18818_v22 }
 0x382   :  { %17138 = vmatpush3.bf16.msra.mxu0 %v18665_v10  ;;  %15416 = vmatprep.mubr.msk.f32.mxu0 %vm18525_vm0, %v18526_v1 }
 0x383   :  { %17139 = vmatprep.subr.bf16.mxu0 %v18524_v0 }
 0x386   :  { %17141 = vmatpush3.bf16.msra.mxu0 %v18668_v15 }
 0x387   :  { %17148 = vmatprep.subr.bf16.mxu0 %v18524_v0 }
 0x389   :  { %15417 = vmatmul.mubr.f32.vlgmr.msra.gmra.mrb[2].mxu0 %v1192_v25 }
 0x38a   :  { %17150 = vmatpush3.bf16.msra.mxu0 %v18683_v30  ;;  %15438 = vmatprep.mubr.msk.f32.mxu0 %vm18525_vm0, %v18526_v1 }
 0x38b   :  { %17151 = vmatprep.subr.bf16.mxu0 %v18524_v0 }
 0x38e   :  { %17153 = vmatpush3.bf16.msra.mxu0 %v18688_v31 }
 0x38f   :  { %17160 = vmatprep.subr.bf16.mxu0 %v18524_v0 }
 0x391   :  { %15439 = vmatmul.mubr.f32.vlgmr.msra.gmra.mrb[4].mxu0 %v1189_v57 }
 0x392   :  { %17162 = vmatpush3.bf16.msra.mxu0 %v18701_v32  ;;  %15460 = vmatprep.mubr.msk.f32.mxu0 %vm18525_vm0, %v18526_v1 }
 0x393   :  { %17163 = vmatprep.subr.bf16.mxu0 %v18524_v0 }
 0x396   :  { %17165 = vmatpush3.bf16.msra.mxu0 %v18706_v33 }
 0x397   :  { %17208 = vmatprep.subr.bf16.mxu0 %v18524_v0 }
 0x399   :  { %15461 = vmatmul.mubr.f32.vlgmr.msra.gmra.mrb[6].mxu0 %v18818_v22 }
 0x39a   :  { %17210 = vmatpush3.bf16.msra.mxu0 %v18732_v9  ;;  %15548 = vmatprep.mubr.msk.f32.mxu0 %vm18525_vm0, %v18526_v1 }
 0x39b   :  { %17211 = vmatprep.subr.bf16.mxu0 %v18524_v0 }
 0x39e   :  { %17213 = vmatpush3.bf16.msra.mxu0 %v18735_v16 }
 0x39f   :  { %17214 = vmatprep.subr.bf16.mxu0 %v18524_v0 }
 0x454   :  { %v1600_v27 = vpop.f32.mrb[0].mxu0 }
 0x455   :  { %v18000_v34 = vadd.f32 %v18886_v26, %v1600_v27  ;;  %v15341_v35 = vpop.f32.mrb[1].mxu0 }
 0x457   :  { %18239 = vtanh.f32 %v18000_v34  ;;  %v14286_v50 = vmul.f32 -1.442695, %v18000_v34  ;;  %v2120_v34 = vld [vmem:[#allocation2 + $0x8] sm:$0xff] }
 0x459   :  { %18241 = vpow2.f32 %v14286_v50 }
 0x45c   :  { %v18889_v42 = vpop.f32.mrb[2].mxu0 }
 0x45d   :  { %v15418_v43 = vpop.f32.mrb[3].mxu0 }
 0x461   :  { %v18240_v44 = vpop.eup %18239 }
 0x462   :  { %1614 = vrot.lane.b32.xlu0 %v18240_v44, %s18527_s5 }
 0x463   :  { %v18242_v51 = vpop.eup %18241 }
 0x464   :  { %v18892_v45 = vpop.f32.mrb[4].mxu0  ;;  %v1608_v52 = vadd.f32 1.0, %v18242_v51 }
 0x465   :  { %v15440_v47 = vpop.f32.mrb[5].mxu0 }
 0x466   :  { %18243 = vrcp.f32 %v1608_v52 }
 0x46c   :  { %v18894_v48 = vpop.f32.mrb[6].mxu0 }
 0x46d   :  { %v15462_v49 = vpop.f32.mrb[7].mxu0 }
 0x470   :  { %v18244_v53 = vpop.eup %18243 }
 0x471   :  { %v1612_v58 = vmul.f32 0.0, %v18244_v53 }
 0x4d4   :  { %v1615_v54 = vpop.permute.xlu0 %1614 }
 0x4d5   :  { %v1617_v56 = vmul.f32 %v18244_v53, %v1615_v54 }
 0x4d7   :  { %1619 = vrot.lane.b32.xlu1 %v1617_v56, %s18528_s13 }
 0x549   :  { %v1620_v59 = vpop.permute.xlu1 %1619 }
 0x54a   :  { %v18897_v60 = vadd.f32 %v1620_v59, %v1612_v58 }
 0x54c   :  { %18245 = vtanh.f32 %v18897_v60 }
 0x556   :  { %v18246_v61 = vpop.eup %18245 }
 0x557   :  { %1625 = vrot.lane.b32.xlu0 %v18246_v61, %s18527_s5 }
 0x5c9   :  { %v1626_v63 = vpop.permute.xlu0 %1625 }
 0x5ca   :  { %v1628_v2 = vmul.f32 %v18244_v53, %v1626_v63 }
 0x5cc   :  { %1630 = vrot.lane.b32.xlu1 %v1628_v2, %s18528_s13 }
 0x63e   :  { %v1631_v3 = vpop.permute.xlu1 %1630 }
 0x63f   :  { %v1632_v5 = vsel %vm114_vm1, %v1631_v3, 0 }
 0x640   :  { %v1703_v6 = vand.u32 4294901760, %v1632_v5 }
 0x642   :  { %v1704_v7 = vsub.f32 %v1632_v5, %v1703_v6 }
 0x644   :  { %v1705_v8 = vand.u32 4294901760, %v1704_v7 }
 0x646   :  { %v1706_v11 = vsub.f32 %v1704_v7, %v1705_v8 }
 0x648   :  { %v1707_v12 = vand.u32 4294901760, %v1706_v11 }
 0x64a   :  { %15351 = vmatmul.mubr.f32.vlgmr.msra.gmra.mrb[12].mxu1 %v1707_v12 }
 0x64b   :  { %17108 = vmatpush3.bf16.msra.mxu1 %v18745_v36  ;;  %15361 = vmatprep.mubr.msk.f32.mxu1 %vm18525_vm0, %v18526_v1 }
 0x64c   :  { %17109 = vmatprep.subr.bf16.mxu1 %v18524_v0 }
 0x64f   :  { %17111 = vmatpush3.bf16.msra.mxu1 %v18749_v37 }
 0x650   :  { %17112 = vmatprep.subr.bf16.mxu1 %v18524_v0 }
 0x652   :  { %15362 = vmatmul.mubr.f32.vlgmr.msra.gmra.mrb[12].mxu1 %v1703_v6 }
 0x653   :  { %17114 = vmatpush3.bf16.msra.mxu1 %v18755_v38  ;;  %15372 = vmatprep.mubr.msk.f32.mxu1 %vm18525_vm0, %v18526_v1 }
 0x654   :  { %17115 = vmatprep.subr.bf16.mxu1 %v18524_v0 }
 0x657   :  { %17117 = vmatpush3.bf16.msra.mxu1 %v18760_v39 }
 0x658   :  { %17118 = vmatprep.subr.bf16.mxu1 %v18524_v0 }
 0x65a   :  { %15373 = vmatmul.mubr.f32.vlgmr.msra.gmra.mrb[12].mxu1 %v1704_v7 }
 0x65b   :  { %17120 = vmatpush3.bf16.msra.mxu1 %v18732_v9  ;;  %15383 = vmatprep.mubr.msk.f32.mxu1 %vm18525_vm0, %v18526_v1 }
 0x65c   :  { %17121 = vmatprep.subr.bf16.mxu1 %v18524_v0 }
 0x65f   :  { %17123 = vmatpush3.bf16.msra.mxu1 %v18735_v16 }
 0x660   :  { %17124 = vmatprep.subr.bf16.mxu1 %v18524_v0 }
 0x662   :  { %15384 = vmatmul.mubr.f32.vlgmr.msra.gmra.mrb[12].mxu1 %v1705_v8 }
 0x663   :  { %17126 = vmatpush3.bf16.msra.mxu1 %v18773_v40  ;;  %15394 = vmatprep.mubr.msk.f32.mxu1 %vm18525_vm0, %v18526_v1 }
 0x664   :  { %17127 = vmatprep.subr.bf16.mxu1 %v18524_v0 }
 0x667   :  { %17129 = vmatpush3.bf16.msra.mxu1 %v18778_v41 }
 0x668   :  { %17130 = vmatprep.subr.bf16.mxu1 %v18524_v0 }
 0x66a   :  { %15395 = vmatmul.mubr.f32.vlgmr.msra.gmra.mrb[12].mxu1 %v1703_v6 }
 0x66b   :  { %17132 = vmatpush3.bf16.msra.mxu1 %v18732_v9  ;;  %15405 = vmatprep.mubr.msk.f32.mxu1 %vm18525_vm0, %v18526_v1 }
 0x66c   :  { %17133 = vmatprep.subr.bf16.mxu1 %v18524_v0 }
 0x66f   :  { %17135 = vmatpush3.bf16.msra.mxu1 %v18735_v16 }
 0x670   :  { %17142 = vmatprep.subr.bf16.mxu1 %v18524_v0 }
 0x672   :  { %15406 = vmatmul.mubr.f32.vlgmr.msra.gmra.mrb[12].mxu1 %v1703_v6 }
 0x673   :  { %17144 = vmatpush3.bf16.msra.mxu1 %v18673_v28  ;;  %15427 = vmatprep.mubr.msk.f32.mxu1 %vm18525_vm0, %v18526_v1 }
 0x674   :  { %17145 = vmatprep.subr.bf16.mxu1 %v18524_v0 }
 0x677   :  { %17147 = vmatpush3.bf16.msra.mxu1 %v18677_v29 }
 0x678   :  { %17154 = vmatprep.subr.bf16.mxu1 %v18524_v0 }
 0x67a   :  { %15428 = vmatmul.mubr.f32.vlgmr.msra.gmra.mrb[14].mxu1 %v18818_v22 }
 0x67b   :  { %17156 = vmatpush3.bf16.msra.mxu1 %v18665_v10  ;;  %15449 = vmatprep.mubr.msk.f32.mxu1 %vm18525_vm0, %v18526_v1 }
 0x67c   :  { %17157 = vmatprep.subr.bf16.mxu1 %v18524_v0 }
 0x67f   :  { %17159 = vmatpush3.bf16.msra.mxu1 %v18668_v15 }
 0x680   :  { %17166 = vmatprep.subr.bf16.mxu1 %v18524_v0 }
 0x682   :  { %15450 = vmatmul.mubr.f32.vlgmr.msra.gmra.mrb[16].mxu1 %v18821_v23 }
 0x683   :  { %17168 = vmatpush3.bf16.msra.mxu1 %v18665_v10  ;;  %15471 = vmatprep.mubr.msk.f32.mxu1 %vm18525_vm0, %v18526_v1 }
 0x684   :  { %17169 = vmatprep.subr.bf16.mxu1 %v18524_v0 }
 0x687   :  { %17171 = vmatpush3.bf16.msra.mxu1 %v18668_v15 }
 0x688   :  { %17172 = vmatprep.subr.bf16.mxu1 %v18524_v0 }
 0x68a   :  { %15472 = vmatmul.mubr.f32.vlgmr.msra.gmra.mrb[18].mxu1 %v18818_v22 }
 0x68b   :  { %17174 = vmatpush3.bf16.msra.mxu1 %v18795_v46  ;;  %15482 = vmatprep.mubr.msk.f32.mxu1 %vm18525_vm0, %v18526_v1 }
 0x68c   :  { %17175 = vmatprep.subr.bf16.mxu1 %v18524_v0 }
 0x68f   :  { %17177 = vmatpush3.bf16.msra.mxu1 %v18799_v55 }
 0x690   :  { %17178 = vmatprep.subr.bf16.mxu1 %v18524_v0 }
 0x74d   :  { %v2287_v20 = vpop.f32.mrb[14].mxu1 }
 0x74e   :  { %v2288_v21 = vadd.f32 %v2287_v20, %v18889_v42  ;;  %v15429_v57 = vpop.f32.mrb[15].mxu1 }
 0x750   :  { %v2368_v23 = vadd.f32 %v18892_v45, %v2288_v21 }
 0x755   :  { %v2444_v24 = vpop.f32.mrb[16].mxu1 }
 0x756   :  { %v2445_v25 = vadd.f32 %v2444_v24, %v2368_v23  ;;  %v15451_v22 = vpop.f32.mrb[17].mxu1 }
 0x758   :  { %v2528_v27 = vadd.f32 %v18894_v48, %v2445_v25 }
 0x75d   :  { %v2602_v35 = vpop.f32.mrb[18].mxu1 }
 0x75e   :  { %v2603_v43 = vadd.f32 %v2602_v35, %v2528_v27  ;;  %v15473_v44 = vpop.f32.mrb[19].mxu1 }
 0x760   :  { %v2606_v47 = vadd.f32 %v2603_v43, %v2120_v34 }
 0x762   :  { %18247 = vtanh.f32 %v2606_v47  ;;  %v14287_v50 = vmul.f32 -1.442695, %v2606_v47 }
 0x764   :  { %18249 = vpow2.f32 %v14287_v50 }
 0x76c   :  { %v18248_v49 = vpop.eup %18247 }
 0x76d   :  { %2616 = vrot.lane.b32.xlu0 %v18248_v49, %s18527_s5 }
 0x76e   :  { %v18250_v42 = vpop.eup %18249 }
 0x76f   :  { %v2610_v51 = vadd.f32 1.0, %v18250_v42 }
 0x771   :  { %18251 = vrcp.f32 %v2610_v51 }
 0x77b   :  { %v18252_v45 = vpop.eup %18251 }
 0x77c   :  { %v2614_v48 = vmul.f32 %v18252_v45, %v18729_v62 }
 0x7df   :  { %v2617_v52 = vpop.permute.xlu0 %2616 }
 0x7e0   :  { %v2619_v53 = vmul.f32 %v18252_v45, %v2617_v52 }
 0x7e2   :  { %2621 = vrot.lane.b32.xlu1 %v2619_v53, %s18528_s13 }
 0x854   :  { %v2622_v54 = vpop.permute.xlu1 %2621 }
 0x855   :  { %v18966_v56 = vadd.f32 %v2622_v54, %v2614_v48 }
 0x857   :  { %18253 = vtanh.f32 %v18966_v56 }
 0x861   :  { %v18254_v58 = vpop.eup %18253 }
 0x862   :  { %2627 = vrot.lane.b32.xlu0 %v18254_v58, %s18527_s5 }
 0x8d4   :  { %v2628_v59 = vpop.permute.xlu0 %2627 }
 0x8d5   :  { %v2630_v61 = vmul.f32 %v18252_v45, %v2628_v59 }
 0x8d7   :  { %2632 = vrot.lane.b32.xlu1 %v2630_v61, %s18528_s13 }
 0x949   :  { %v2633_v63 = vpop.permute.xlu1 %2632 }
 0x94a   :  { %v2634_v2 = vsel %vm114_vm1, %v2633_v63, 0 }
 0x94b   :  { %v18972_v3 = vand.u32 4294901760, %v2634_v2 }
 0x94d   :  { %v18975_v5 = vsub.f32 %v2634_v2, %v18972_v3 }
 0x94f   :  { %v2707_v62 = vand.u32 4294901760, %v18975_v5 }
 0x951   :  { %v2708_v6 = vsub.f32 %v18975_v5, %v2707_v62 }
 0x953   :  { %v18979_v7 = vand.u32 4294901760, %v2708_v6 }
 0x955   :  { %15483 = vmatmul.mubr.f32.vlgmr.msra.gmra.mrb[12].mxu1 %v18979_v7 }
 0x956   :  { %17180 = vmatpush3.bf16.msra.mxu1 %v18803_v4  ;;  %15493 = vmatprep.mubr.msk.f32.mxu1 %vm18525_vm0, %v18526_v1 }
 0x957   :  { %17181 = vmatprep.subr.bf16.mxu1 %v18524_v0 }
 0x95a   :  { %17183 = vmatpush3.bf16.msra.mxu1 %v18807_v13 }
 0x95b   :  { %17184 = vmatprep.subr.bf16.mxu1 %v18524_v0 }
 0x95d   :  { %15494 = vmatmul.mubr.f32.vlgmr.msra.gmra.mrb[12].mxu1 %v18972_v3 }
 0x95e   :  { %17186 = vmatpush3.bf16.msra.mxu1 %v18809_v14  ;;  %15504 = vmatprep.mubr.msk.f32.mxu1 %vm18525_vm0, %v18526_v1 }
 0x95f   :  { %17187 = vmatprep.subr.bf16.mxu1 %v18524_v0 }
 0x962   :  { %17189 = vmatpush3.bf16.msra.mxu1 %v18811_v17 }
 0x963   :  { %17190 = vmatprep.subr.bf16.mxu1 %v18524_v0 }
 0x965   :  { %15505 = vmatmul.mubr.f32.vlgmr.msra.gmra.mrb[12].mxu1 %v18975_v5 }
 0x966   :  { %17192 = vmatpush3.bf16.msra.mxu1 %v18795_v46  ;;  %15515 = vmatprep.mubr.msk.f32.mxu1 %vm18525_vm0, %v18526_v1 }
 0x967   :  { %17193 = vmatprep.subr.bf16.mxu1 %v18524_v0 }
 0x96a   :  { %17195 = vmatpush3.bf16.msra.mxu1 %v18799_v55 }
 0x96b   :  { %17196 = vmatprep.subr.bf16.mxu1 %v18524_v0 }
 0x96d   :  { %15516 = vmatmul.mubr.f32.vlgmr.msra.gmra.mrb[12].mxu1 %v2707_v62 }
 0x96e   :  { %17198 = vmatpush3.bf16.msra.mxu1 %v18813_v18  ;;  %15526 = vmatprep.mubr.msk.f32.mxu1 %vm18525_vm0, %v18526_v1 }
 0x96f   :  { %17199 = vmatprep.subr.bf16.mxu1 %v18524_v0 }
 0x972   :  { %17201 = vmatpush3.bf16.msra.mxu1 %v18815_v19 }
 0x973   :  { %17202 = vmatprep.subr.bf16.mxu1 %v18524_v0 }
 0x975   :  { %15527 = vmatmul.mubr.f32.vlgmr.msra.gmra.mrb[12].mxu1 %v18972_v3 }
 0x976   :  { %17204 = vmatpush3.bf16.msra.mxu1 %v18795_v46  ;;  %15537 = vmatprep.mubr.msk.f32.mxu1 %vm18525_vm0, %v18526_v1 }
 0x977   :  { %17205 = vmatprep.subr.bf16.mxu1 %v18524_v0 }
 0x97a   :  { %17207 = vmatpush3.bf16.msra.mxu1 %v18799_v55 }
 0x97b   :  { %17250 = vmatprep.subr.bf16.mxu1 %v18524_v0 }
 0x97d   :  { %15538 = vmatmul.mubr.f32.vlgmr.msra.gmra.mrb[12].mxu1 %v18972_v3 }
 0x97e   :  { %17252 = vmatpush3.bf16.msra.mxu1 %v18673_v28  ;;  %15625 = vmatprep.mubr.msk.f32.mxu1 %vm18525_vm0, %v18526_v1 }
 0x97f   :  { %17253 = vmatprep.subr.bf16.mxu1 %v18524_v0 }
 0x982   :  { %17255 = vmatpush3.bf16.msra.mxu1 %v18677_v29 }
 0x983   :  { %17262 = vmatprep.subr.bf16.mxu1 %v18524_v0 }
 0x985   :  { %15626 = vmatmul.mubr.f32.vlgmr.msra.gmra.mrb[20].mxu1 %v18972_v3 }
 0x986   :  { %17264 = vmatpush3.bf16.msra.mxu1 %v18665_v10  ;;  %15647 = vmatprep.mubr.msk.f32.mxu1 %vm18525_vm0, %v18526_v1 }
 0x987   :  { %17265 = vmatprep.subr.bf16.mxu1 %v18524_v0 }
 0x98a   :  { %17267 = vmatpush3.bf16.msra.mxu1 %v18668_v15 }
 0x98b   :  { %17274 = vmatprep.subr.bf16.mxu1 %v18524_v0 }
 0x98d   :  { %15648 = vmatmul.mubr.f32.vlgmr.msra.gmra.mrb[22].mxu1 %v2707_v62 }
 0x98e   :  { %17276 = vmatpush3.bf16.msra.mxu1 %v18665_v10  ;;  %15669 = vmatprep.mubr.msk.f32.mxu1 %vm18525_vm0, %v18526_v1 }
 0x98f   :  { %17277 = vmatprep.subr.bf16.mxu1 %v18524_v0 }
 0x992   :  { %17279 = vmatpush3.bf16.msra.mxu1 %v18668_v15 }
 0x993   :  { %17316 = vmatprep.subr.bf16.mxu1 %v18524_v0 }
 0x995   :  { %15670 = vmatmul.mubr.f32.vlgmr.msra.gmra.mrb[24].mxu1 %v18972_v3 }
 0x996   :  { %17318 = vmatpush3.bf16.msra.mxu1 %v18732_v9  ;;  %15746 = vmatprep.mubr.msk.f32.mxu1 %vm18525_vm0, %v18526_v1 }
 0x997   :  { %17319 = vmatprep.subr.bf16.mxu1 %v18524_v0 }
 0x99a   :  { %17321 = vmatpush3.bf16.msra.mxu1 %v18735_v16 }
 0x99b   :  { %17322 = vmatprep.subr.bf16.mxu1 %v18524_v0 }
 0xa50   :  { %v3117_v8 = vpop.f32.mrb[12].mxu1 }
 0xa51   :  { %v18001_v11 = vadd.f32 %v18886_v26, %v3117_v8  ;;  %v15539_v12 = vpop.f32.mrb[13].mxu1 }
 0xa53   :  { %18255 = vtanh.f32 %v18001_v11  ;;  %v14288_v27 = vmul.f32 -1.442695, %v18001_v11 }
 0xa55   :  { %18257 = vpow2.f32 %v14288_v27 }
 0xa58   :  { %v19043_v20 = vpop.f32.mrb[20].mxu1 }
 0xa59   :  { %v15627_v21 = vpop.f32.mrb[21].mxu1 }
 0xa5a   :  { %v3637_v21 = vld [vmem:[#allocation2 + $0x10] sm:$0xff] }
 0xa5d   :  { %v18256_v57 = vpop.eup %18255 }
 0xa5e   :  { %3131 = vrot.lane.b32.xlu0 %v18256_v57, %s18527_s5 }
 0xa5f   :  { %v18258_v34 = vpop.eup %18257 }
 0xa60   :  { %v19046_v23 = vpop.f32.mrb[22].mxu1  ;;  %v3125_v35 = vadd.f32 1.0, %v18258_v34 }
 0xa61   :  { %v15649_v24 = vpop.f32.mrb[23].mxu1 }
 0xa62   :  { %18259 = vrcp.f32 %v3125_v35 }
 0xa68   :  { %v19048_v25 = vpop.f32.mrb[24].mxu1 }
 0xa69   :  { %v15671_v22 = vpop.f32.mrb[25].mxu1 }
 0xa6c   :  { %v18260_v43 = vpop.eup %18259 }
 0xa6d   :  { %v3129_v49 = vmul.f32 %v18260_v43, %v18897_v60 }
 0xad0   :  { %v3132_v44 = vpop.permute.xlu0 %3131 }
 0xad1   :  { %v3134_v47 = vmul.f32 %v18260_v43, %v3132_v44 }
 0xad3   :  { %3136 = vrot.lane.b32.xlu1 %v3134_v47, %s18528_s13 }
 0xb45   :  { %v3137_v50 = vpop.permute.xlu1 %3136 }
 0xb46   :  { %v19052_v42 = vadd.f32 %v3137_v50, %v3129_v49 }
 0xb48   :  { %18261 = vtanh.f32 %v19052_v42 }
 0xb52   :  { %v18262_v51 = vpop.eup %18261 }
 0xb53   :  { %3142 = vrot.lane.b32.xlu0 %v18262_v51, %s18527_s5 }
 0xbc5   :  { %v3143_v45 = vpop.permute.xlu0 %3142 }
 0xbc6   :  { %v3145_v52 = vmul.f32 %v18260_v43, %v3143_v45 }
 0xbc8   :  { %3147 = vrot.lane.b32.xlu1 %v3145_v52, %s18528_s13 }
 0xc3a   :  { %v3148_v53 = vpop.permute.xlu1 %3147 }
 0xc3b   :  { %v3149_v48 = vsel %vm114_vm1, %v3148_v53, 0 }
 0xc3c   :  { %v3220_v54 = vand.u32 4294901760, %v3149_v48 }
 0xc3e   :  { %v3221_v58 = vsub.f32 %v3149_v48, %v3220_v54 }
 0xc40   :  { %v3222_v59 = vand.u32 4294901760, %v3221_v58 }
 0xc42   :  { %v3223_v61 = vsub.f32 %v3221_v58, %v3222_v59 }
 0xc44   :  { %v3224_v60 = vand.u32 4294901760, %v3223_v61 }
 0xc46   :  { %15549 = vmatmul.mubr.f32.vlgmr.msra.gmra.mrb[8].mxu0 %v3224_v60 }
 0xc47   :  { %17216 = vmatpush3.bf16.msra.mxu0 %v18745_v36  ;;  %15559 = vmatprep.mubr.msk.f32.mxu0 %vm18525_vm0, %v18526_v1 }
 0xc48   :  { %17217 = vmatprep.subr.bf16.mxu0 %v18524_v0 }
 0xc4b   :  { %17219 = vmatpush3.bf16.msra.mxu0 %v18749_v37 }
 0xc4c   :  { %17220 = vmatprep.subr.bf16.mxu0 %v18524_v0 }
 0xc4e   :  { %15560 = vmatmul.mubr.f32.vlgmr.msra.gmra.mrb[8].mxu0 %v3220_v54 }
 0xc4f   :  { %17222 = vmatpush3.bf16.msra.mxu0 %v18755_v38  ;;  %15570 = vmatprep.mubr.msk.f32.mxu0 %vm18525_vm0, %v18526_v1 }
 0xc50   :  { %17223 = vmatprep.subr.bf16.mxu0 %v18524_v0 }
 0xc53   :  { %17225 = vmatpush3.bf16.msra.mxu0 %v18760_v39 }
 0xc54   :  { %17226 = vmatprep.subr.bf16.mxu0 %v18524_v0 }
 0xc56   :  { %15571 = vmatmul.mubr.f32.vlgmr.msra.gmra.mrb[8].mxu0 %v3221_v58 }
 0xc57   :  { %17228 = vmatpush3.bf16.msra.mxu0 %v18732_v9  ;;  %15581 = vmatprep.mubr.msk.f32.mxu0 %vm18525_vm0, %v18526_v1 }
 0xc58   :  { %17229 = vmatprep.subr.bf16.mxu0 %v18524_v0 }
 0xc5b   :  { %17231 = vmatpush3.bf16.msra.mxu0 %v18735_v16 }
 0xc5c   :  { %17232 = vmatprep.subr.bf16.mxu0 %v18524_v0 }
 0xc5e   :  { %15582 = vmatmul.mubr.f32.vlgmr.msra.gmra.mrb[8].mxu0 %v3222_v59 }
 0xc5f   :  { %17234 = vmatpush3.bf16.msra.mxu0 %v18773_v40  ;;  %15592 = vmatprep.mubr.msk.f32.mxu0 %vm18525_vm0, %v18526_v1 }
 0xc60   :  { %17235 = vmatprep.subr.bf16.mxu0 %v18524_v0 }
 0xc63   :  { %17237 = vmatpush3.bf16.msra.mxu0 %v18778_v41 }
 0xc64   :  { %17238 = vmatprep.subr.bf16.mxu0 %v18524_v0 }
 0xc66   :  { %15593 = vmatmul.mubr.f32.vlgmr.msra.gmra.mrb[8].mxu0 %v3220_v54 }
 0xc67   :  { %17240 = vmatpush3.bf16.msra.mxu0 %v18732_v9  ;;  %15603 = vmatprep.mubr.msk.f32.mxu0 %vm18525_vm0, %v18526_v1 }
 0xc68   :  { %17241 = vmatprep.subr.bf16.mxu0 %v18524_v0 }
 0xc6b   :  { %17243 = vmatpush3.bf16.msra.mxu0 %v18735_v16 }
 0xc6c   :  { %17244 = vmatprep.subr.bf16.mxu0 %v18524_v0 }
 0xc6e   :  { %15604 = vmatmul.mubr.f32.vlgmr.msra.gmra.mrb[8].mxu0 %v3220_v54 }
 0xc6f   :  { %17246 = vmatpush3.bf16.msra.mxu0 %v18665_v10  ;;  %15614 = vmatprep.mubr.msk.f32.mxu0 %vm18525_vm0, %v18526_v1 }
 0xc70   :  { %17247 = vmatprep.subr.bf16.mxu0 %v18524_v0 }
 0xc73   :  { %17249 = vmatpush3.bf16.msra.mxu0 %v18668_v15 }
 0xc74   :  { %17256 = vmatprep.subr.bf16.mxu0 %v18524_v0 }
 0xc76   :  { %15615 = vmatmul.mubr.f32.vlgmr.msra.gmra.mrb[10].mxu0 %v18979_v7 }
 0xc77   :  { %17258 = vmatpush3.bf16.msra.mxu0 %v18683_v30  ;;  %15636 = vmatprep.mubr.msk.f32.mxu0 %vm18525_vm0, %v18526_v1 }
 0xc78   :  { %17259 = vmatprep.subr.bf16.mxu0 %v18524_v0 }
 0xc7b   :  { %17261 = vmatpush3.bf16.msra.mxu0 %v18688_v31 }
 0xc7c   :  { %17268 = vmatprep.subr.bf16.mxu0 %v18524_v0 }
 0xc7e   :  { %15637 = vmatmul.mubr.f32.vlgmr.msra.gmra.mrb[12].mxu0 %v18975_v5 }
 0xc7f   :  { %17270 = vmatpush3.bf16.msra.mxu0 %v18701_v32  ;;  %15658 = vmatprep.mubr.msk.f32.mxu0 %vm18525_vm0, %v18526_v1 }
 0xc80   :  { %17271 = vmatprep.subr.bf16.mxu0 %v18524_v0 }
 0xc83   :  { %17273 = vmatpush3.bf16.msra.mxu0 %v18706_v33 }
 0xc84   :  { %17280 = vmatprep.subr.bf16.mxu0 %v18524_v0 }
 0xc86   :  { %15659 = vmatmul.mubr.f32.vlgmr.msra.gmra.mrb[14].mxu0 %v18972_v3 }
 0xc87   :  { %17282 = vmatpush3.bf16.msra.mxu0 %v18795_v46  ;;  %15680 = vmatprep.mubr.msk.f32.mxu0 %vm18525_vm0, %v18526_v1 }
 0xc88   :  { %17283 = vmatprep.subr.bf16.mxu0 %v18524_v0 }
 0xc8b   :  { %17285 = vmatpush3.bf16.msra.mxu0 %v18799_v55 }
 0xc8c   :  { %17286 = vmatprep.subr.bf16.mxu0 %v18524_v0 }
 0xd49   :  { %v3713_v63 = vpop.f32.mrb[10].mxu0 }
 0xd4a   :  { %v3805_v2 = vadd.f32 %v19043_v20, %v3713_v63  ;;  %v15616_v5 = vpop.f32.mrb[11].mxu0 }
 0xd51   :  { %v3884_v62 = vpop.f32.mrb[12].mxu0 }
 0xd52   :  { %v3885_v6 = vadd.f32 %v3884_v62, %v3805_v2  ;;  %v15638_v7 = vpop.f32.mrb[13].mxu0 }
 0xd54   :  { %v3962_v3 = vadd.f32 %v19046_v23, %v3885_v6 }
 0xd59   :  { %v4044_v8 = vpop.f32.mrb[14].mxu0 }
 0xd5a   :  { %v4045_v11 = vadd.f32 %v4044_v8, %v3962_v3  ;;  %v15660_v12 = vpop.f32.mrb[15].mxu0 }
 0xd5c   :  { %v4120_v57 = vadd.f32 %v19048_v25, %v4045_v11 }
 0xd5e   :  { %v4123_v24 = vadd.f32 %v4120_v57, %v3637_v21 }
 0xd60   :  { %18263 = vtanh.f32 %v4123_v24  ;;  %v14289_v27 = vmul.f32 -1.442695, %v4123_v24 }
 0xd62   :  { %18265 = vpow2.f32 %v14289_v27 }
 0xd6a   :  { %v18264_v22 = vpop.eup %18263 }
 0xd6b   :  { %4133 = vrot.lane.b32.xlu0 %v18264_v22, %s18527_s5 }
 0xd6c   :  { %v18266_v20 = vpop.eup %18265 }
 0xd6d   :  { %v4127_v34 = vadd.f32 1.0, %v18266_v20 }
 0xd6f   :  { %18267 = vrcp.f32 %v4127_v34 }
 0xd79   :  { %v18268_v35 = vpop.eup %18267 }
 0xd7a   :  { %v4131_v23 = vmul.f32 %v18268_v35, %v18966_v56 }
 0xddd   :  { %v4134_v43 = vpop.permute.xlu0 %4133 }
 0xdde   :  { %v4136_v44 = vmul.f32 %v18268_v35, %v4134_v43 }
 0xde0   :  { %4138 = vrot.lane.b32.xlu1 %v4136_v44, %s18528_s13 }
 0xe52   :  { %v4139_v47 = vpop.permute.xlu1 %4138 }
 0xe53   :  { %v19121_v49 = vadd.f32 %v4139_v47, %v4131_v23 }
 0xe55   :  { %18269 = vtanh.f32 %v19121_v49 }
 0xe5f   :  { %v18270_v25 = vpop.eup %18269 }
 0xe60   :  { %4144 = vrot.lane.b32.xlu0 %v18270_v25, %s18527_s5 }
 0xed2   :  { %v4145_v50 = vpop.permute.xlu0 %4144 }
 0xed3   :  { %v4147_v51 = vmul.f32 %v18268_v35, %v4145_v50 }
 0xed5   :  { %4149 = vrot.lane.b32.xlu1 %v4147_v51, %s18528_s13 }
 0xf47   :  { %v4150_v45 = vpop.permute.xlu1 %4149 }
 0xf48   :  { %v4151_v52 = vsel %vm114_vm1, %v4150_v45, 0 }
 0xf49   :  { %v19127_v53 = vand.u32 4294901760, %v4151_v52 }
 0xf4b   :  { %v4223_v48 = vsub.f32 %v4151_v52, %v19127_v53 }
 0xf4d   :  { %v19130_v56 = vand.u32 4294901760, %v4223_v48 }
 0xf4f   :  { %v4225_v54 = vsub.f32 %v4223_v48, %v19130_v56 }
 0xf51   :  { %v4226_v58 = vand.u32 4294901760, %v4225_v54 }
 0xf53   :  { %15681 = vmatmul.mubr.f32.vlgmr.msra.gmra.mrb[8].mxu0 %v4226_v58 }
 0xf54   :  { %17288 = vmatpush3.bf16.msra.mxu0 %v18803_v4  ;;  %15691 = vmatprep.mubr.msk.f32.mxu0 %vm18525_vm0, %v18526_v1 }
 0xf55   :  { %17289 = vmatprep.subr.bf16.mxu0 %v18524_v0 }
 0xf58   :  { %17291 = vmatpush3.bf16.msra.mxu0 %v18807_v13 }
 0xf59   :  { %17292 = vmatprep.subr.bf16.mxu0 %v18524_v0 }
 0xf5b   :  { %15692 = vmatmul.mubr.f32.vlgmr.msra.gmra.mrb[8].mxu0 %v19127_v53 }
 0xf5c   :  { %17294 = vmatpush3.bf16.msra.mxu0 %v18809_v14  ;;  %15702 = vmatprep.mubr.msk.f32.mxu0 %vm18525_vm0, %v18526_v1 }
 0xf5d   :  { %17295 = vmatprep.subr.bf16.mxu0 %v18524_v0 }
 0xf60   :  { %17297 = vmatpush3.bf16.msra.mxu0 %v18811_v17 }
 0xf61   :  { %17298 = vmatprep.subr.bf16.mxu0 %v18524_v0 }
 0xf63   :  { %15703 = vmatmul.mubr.f32.vlgmr.msra.gmra.mrb[8].mxu0 %v4223_v48 }
 0xf64   :  { %17300 = vmatpush3.bf16.msra.mxu0 %v18795_v46  ;;  %15713 = vmatprep.mubr.msk.f32.mxu0 %vm18525_vm0, %v18526_v1 }
 0xf65   :  { %17301 = vmatprep.subr.bf16.mxu0 %v18524_v0 }
 0xf68   :  { %17303 = vmatpush3.bf16.msra.mxu0 %v18799_v55 }
 0xf69   :  { %17304 = vmatprep.subr.bf16.mxu0 %v18524_v0 }
 0xf6b   :  { %15714 = vmatmul.mubr.f32.vlgmr.msra.gmra.mrb[8].mxu0 %v19130_v56 }
 0xf6c   :  { %17306 = vmatpush3.bf16.msra.mxu0 %v18813_v18  ;;  %15724 = vmatprep.mubr.msk.f32.mxu0 %vm18525_vm0, %v18526_v1 }
 0xf6d   :  { %17307 = vmatprep.subr.bf16.mxu0 %v18524_v0 }
 0xf70   :  { %17309 = vmatpush3.bf16.msra.mxu0 %v18815_v19 }
 0xf71   :  { %17310 = vmatprep.subr.bf16.mxu0 %v18524_v0 }
 0xf73   :  { %15725 = vmatmul.mubr.f32.vlgmr.msra.gmra.mrb[8].mxu0 %v19127_v53 }
 0xf74   :  { %17312 = vmatpush3.bf16.msra.mxu0 %v18795_v46  ;;  %15735 = vmatprep.mubr.msk.f32.mxu0 %vm18525_vm0, %v18526_v1 }
 0xf75   :  { %17313 = vmatprep.subr.bf16.mxu0 %v18524_v0 }
 0xf78   :  { %17315 = vmatpush3.bf16.msra.mxu0 %v18799_v55 }
 0xf79   :  { %17352 = vmatprep.subr.bf16.mxu0 %v18524_v0 }
 0xf7b   :  { %15736 = vmatmul.mubr.f32.vlgmr.msra.gmra.mrb[8].mxu0 %v19127_v53 }
 0xf7c   :  { %17354 = vmatpush3.bf16.msra.mxu0 %v18665_v10  ;;  %15812 = vmatprep.mubr.msk.f32.mxu0 %vm18525_vm0, %v18526_v1 }
 0xf7d   :  { %17355 = vmatprep.subr.bf16.mxu0 %v18524_v0 }
 0xf80   :  { %17357 = vmatpush3.bf16.msra.mxu0 %v18668_v15 }
 0xf81   :  { %17364 = vmatprep.subr.bf16.mxu0 %v18524_v0 }
 0xf83   :  { %15813 = vmatmul.mubr.f32.vlgmr.msra.gmra.mrb[16].mxu0 %v4226_v58 }
 0xf84   :  { %17366 = vmatpush3.bf16.msra.mxu0 %v18683_v30  ;;  %15834 = vmatprep.mubr.msk.f32.mxu0 %vm18525_vm0, %v18526_v1 }
 0xf85   :  { %17367 = vmatprep.subr.bf16.mxu0 %v18524_v0 }
 0xf88   :  { %17369 = vmatpush3.bf16.msra.mxu0 %v18688_v31 }
 0xf89   :  { %17376 = vmatprep.subr.bf16.mxu0 %v18524_v0 }
 0xf8b   :  { %15835 = vmatmul.mubr.f32.vlgmr.msra.gmra.mrb[18].mxu0 %v4223_v48 }
 0xf8c   :  { %17378 = vmatpush3.bf16.msra.mxu0 %v18701_v32  ;;  %15856 = vmatprep.mubr.msk.f32.mxu0 %vm18525_vm0, %v18526_v1 }
 0xf8d   :  { %17379 = vmatprep.subr.bf16.mxu0 %v18524_v0 }
 0xf90   :  { %17381 = vmatpush3.bf16.msra.mxu0 %v18706_v33 }
 0xf91   :  { %17424 = vmatprep.subr.bf16.mxu0 %v18524_v0 }
 0xf93   :  { %15857 = vmatmul.mubr.f32.vlgmr.msra.gmra.mrb[20].mxu0 %v19127_v53 }
 0xf94   :  { %17426 = vmatpush3.bf16.msra.mxu0 %v18732_v9  ;;  %15944 = vmatprep.mubr.msk.f32.mxu0 %vm18525_vm0, %v18526_v1 }
 0xf95   :  { %17427 = vmatprep.subr.bf16.mxu0 %v18524_v0 }
 0xf98   :  { %17429 = vmatpush3.bf16.msra.mxu0 %v18735_v16 }
 0xf99   :  { %17430 = vmatprep.subr.bf16.mxu0 %v18524_v0 }
0x104e   :  { %v4634_v59 = vpop.f32.mrb[8].mxu0 }
0x104f   :  { %v18002_v61 = vadd.f32 %v18886_v26, %v4634_v59  ;;  %v15737_v60 = vpop.f32.mrb[9].mxu0  ;;  %v5154_v59 = vld [vmem:[#allocation2 + $0x18] sm:$0xff] }
0x1051   :  { %18271 = vtanh.f32 %v18002_v61  ;;  %v14290_v8 = vmul.f32 -1.442695, %v18002_v61 }
0x1053   :  { %18273 = vpow2.f32 %v14290_v8 }
0x1056   :  { %v19193_v63 = vpop.f32.mrb[16].mxu0 }
0x1057   :  { %v15814_v2 = vpop.f32.mrb[17].mxu0 }
0x105b   :  { %v18272_v5 = vpop.eup %18271 }
0x105c   :  { %4648 = vrot.lane.b32.xlu0 %v18272_v5, %s18527_s5 }
0x105d   :  { %v18274_v11 = vpop.eup %18273 }
0x105e   :  { %v19196_v62 = vpop.f32.mrb[18].mxu0  ;;  %v4642_v12 = vadd.f32 1.0, %v18274_v11 }
0x105f   :  { %v15836_v6 = vpop.f32.mrb[19].mxu0 }
0x1060   :  { %18275 = vrcp.f32 %v4642_v12 }
0x1066   :  { %v19198_v7 = vpop.f32.mrb[20].mxu0 }
0x1067   :  { %v15858_v3 = vpop.f32.mrb[21].mxu0 }
0x106a   :  { %v18276_v26 = vpop.eup %18275 }
0x106b   :  { %v4646_v24 = vmul.f32 %v18276_v26, %v19052_v42 }
0x10ce   :  { %v4649_v21 = vpop.permute.xlu0 %4648 }
0x10cf   :  { %v4651_v57 = vmul.f32 %v18276_v26, %v4649_v21 }
0x10d1   :  { %4653 = vrot.lane.b32.xlu1 %v4651_v57, %s18528_s13 }
0x1143   :  { %v4654_v22 = vpop.permute.xlu1 %4653 }
0x1144   :  { %v19202_v27 = vadd.f32 %v4654_v22, %v4646_v24 }
0x1146   :  { %18277 = vtanh.f32 %v19202_v27 }
0x1150   :  { %v18278_v20 = vpop.eup %18277 }
0x1151   :  { %4659 = vrot.lane.b32.xlu0 %v18278_v20, %s18527_s5 }
0x11c3   :  { %v4660_v34 = vpop.permute.xlu0 %4659 }
0x11c4   :  { %v4662_v35 = vmul.f32 %v18276_v26, %v4660_v34 }
0x11c6   :  { %4664 = vrot.lane.b32.xlu1 %v4662_v35, %s18528_s13 }
0x1238   :  { %v4665_v43 = vpop.permute.xlu1 %4664 }
0x1239   :  { %v4666_v44 = vsel %vm114_vm1, %v4665_v43, 0 }
0x123a   :  { %v4737_v23 = vand.u32 4294901760, %v4666_v44 }
0x123c   :  { %v4738_v47 = vsub.f32 %v4666_v44, %v4737_v23 }
0x123e   :  { %v4739_v25 = vand.u32 4294901760, %v4738_v47 }
0x1240   :  { %v4740_v50 = vsub.f32 %v4738_v47, %v4739_v25 }
0x1242   :  { %v4741_v42 = vand.u32 4294901760, %v4740_v50 }
0x1244   :  { %15747 = vmatmul.mubr.f32.vlgmr.msra.gmra.mrb[26].mxu1 %v4741_v42 }
0x1245   :  { %17324 = vmatpush3.bf16.msra.mxu1 %v18745_v36  ;;  %15757 = vmatprep.mubr.msk.f32.mxu1 %vm18525_vm0, %v18526_v1 }
0x1246   :  { %17325 = vmatprep.subr.bf16.mxu1 %v18524_v0 }
0x1249   :  { %17327 = vmatpush3.bf16.msra.mxu1 %v18749_v37 }
0x124a   :  { %17328 = vmatprep.subr.bf16.mxu1 %v18524_v0 }
0x124c   :  { %15758 = vmatmul.mubr.f32.vlgmr.msra.gmra.mrb[26].mxu1 %v4737_v23 }
0x124d   :  { %17330 = vmatpush3.bf16.msra.mxu1 %v18755_v38  ;;  %15768 = vmatprep.mubr.msk.f32.mxu1 %vm18525_vm0, %v18526_v1 }
0x124e   :  { %17331 = vmatprep.subr.bf16.mxu1 %v18524_v0 }
0x1251   :  { %17333 = vmatpush3.bf16.msra.mxu1 %v18760_v39 }
0x1252   :  { %17334 = vmatprep.subr.bf16.mxu1 %v18524_v0 }
0x1254   :  { %15769 = vmatmul.mubr.f32.vlgmr.msra.gmra.mrb[26].mxu1 %v4738_v47 }
0x1255   :  { %17336 = vmatpush3.bf16.msra.mxu1 %v18732_v9  ;;  %15779 = vmatprep.mubr.msk.f32.mxu1 %vm18525_vm0, %v18526_v1 }
0x1256   :  { %17337 = vmatprep.subr.bf16.mxu1 %v18524_v0 }
0x1259   :  { %17339 = vmatpush3.bf16.msra.mxu1 %v18735_v16 }
0x125a   :  { %17340 = vmatprep.subr.bf16.mxu1 %v18524_v0 }
0x125c   :  { %15780 = vmatmul.mubr.f32.vlgmr.msra.gmra.mrb[26].mxu1 %v4739_v25  ;;  %v19350_v25 = vld [vmem:[%s20126_s4] ss:$0 sm:$0xff] }
0x125d   :  { %17342 = vmatpush3.bf16.msra.mxu1 %v18773_v40  ;;  %15790 = vmatprep.mubr.msk.f32.mxu1 %vm18525_vm0, %v18526_v1 }
0x125e   :  { %17343 = vmatprep.subr.bf16.mxu1 %v18524_v0 }
0x1261   :  { %17345 = vmatpush3.bf16.msra.mxu1 %v18778_v41 }
0x1262   :  { %17346 = vmatprep.subr.bf16.mxu1 %v18524_v0 }
0x1264   :  { %15791 = vmatmul.mubr.f32.vlgmr.msra.gmra.mrb[26].mxu1 %v4737_v23 }
0x1265   :  { %17348 = vmatpush3.bf16.msra.mxu1 %v18732_v9  ;;  %15801 = vmatprep.mubr.msk.f32.mxu1 %vm18525_vm0, %v18526_v1 }
0x1266   :  { %17349 = vmatprep.subr.bf16.mxu1 %v18524_v0 }
0x1269   :  { %17351 = vmatpush3.bf16.msra.mxu1 %v18735_v16 }
0x126a   :  { %17358 = vmatprep.subr.bf16.mxu1 %v18524_v0 }
0x126c   :  { %15802 = vmatmul.mubr.f32.vlgmr.msra.gmra.mrb[26].mxu1 %v4737_v23 }
0x126d   :  { %17360 = vmatpush3.bf16.msra.mxu1 %v18673_v28  ;;  %15823 = vmatprep.mubr.msk.f32.mxu1 %vm18525_vm0, %v18526_v1 }
0x126e   :  { %17361 = vmatprep.subr.bf16.mxu1 %v18524_v0 }
0x1271   :  { %17363 = vmatpush3.bf16.msra.mxu1 %v18677_v29 }
0x1272   :  { %17370 = vmatprep.subr.bf16.mxu1 %v18524_v0 }
0x1274   :  { %15824 = vmatmul.mubr.f32.vlgmr.msra.gmra.mrb[28].mxu1 %v19127_v53 }
0x1275   :  { %17372 = vmatpush3.bf16.msra.mxu1 %v18665_v10  ;;  %15845 = vmatprep.mubr.msk.f32.mxu1 %vm18525_vm0, %v18526_v1 }
0x1276   :  { %17373 = vmatprep.subr.bf16.mxu1 %v18524_v0 }
0x1279   :  { %17375 = vmatpush3.bf16.msra.mxu1 %v18668_v15 }
0x127a   :  { %17382 = vmatprep.subr.bf16.mxu1 %v18524_v0 }
0x127c   :  { %15846 = vmatmul.mubr.f32.vlgmr.msra.gmra.mrb[30].mxu1 %v19130_v56 }
0x127d   :  { %17384 = vmatpush3.bf16.msra.mxu1 %v18665_v10  ;;  %15867 = vmatprep.mubr.msk.f32.mxu1 %vm18525_vm0, %v18526_v1 }
0x127e   :  { %17385 = vmatprep.subr.bf16.mxu1 %v18524_v0 }
0x1281   :  { %17387 = vmatpush3.bf16.msra.mxu1 %v18668_v15 }
0x1282   :  { %17388 = vmatprep.subr.bf16.mxu1 %v18524_v0 }
0x1284   :  { %15868 = vmatmul.mubr.f32.vlgmr.msra.gmra.mrb[32].mxu1 %v19127_v53 }
0x1285   :  { %17390 = vmatpush3.bf16.msra.mxu1 %v18795_v46  ;;  %15878 = vmatprep.mubr.msk.f32.mxu1 %vm18525_vm0, %v18526_v1 }
0x1286   :  { %17391 = vmatprep.subr.bf16.mxu1 %v18524_v0 }
0x1289   :  { %17393 = vmatpush3.bf16.msra.mxu1 %v18799_v55 }
0x128a   :  { %17394 = vmatprep.subr.bf16.mxu1 %v18524_v0 }
0x1347   :  { %v5321_v51 = vpop.f32.mrb[28].mxu1 }
0x1348   :  { %v5322_v45 = vadd.f32 %v5321_v51, %v19193_v63  ;;  %v15825_v52 = vpop.f32.mrb[29].mxu1 }
0x134a   :  { %v5402_v48 = vadd.f32 %v19196_v62, %v5322_v45 }
0x134f   :  { %v5478_v56 = vpop.f32.mrb[30].mxu1 }
0x1350   :  { %v5479_v54 = vadd.f32 %v5478_v56, %v5402_v48  ;;  %v15847_v53 = vpop.f32.mrb[31].mxu1 }
0x1352   :  { %v5562_v58 = vadd.f32 %v19198_v7, %v5479_v54 }
0x1357   :  { %v5636_v61 = vpop.f32.mrb[32].mxu1 }
0x1358   :  { %v5637_v60 = vadd.f32 %v5636_v61, %v5562_v58  ;;  %v15869_v2 = vpop.f32.mrb[33].mxu1 }
0x135a   :  { %v5640_v5 = vadd.f32 %v5637_v60, %v5154_v59 }
0x135c   :  { %18279 = vtanh.f32 %v5640_v5  ;;  %v14291_v3 = vmul.f32 -1.442695, %v5640_v5 }
0x135e   :  { %18281 = vpow2.f32 %v14291_v3 }
0x1366   :  { %v18280_v6 = vpop.eup %18279 }
0x1367   :  { %5650 = vrot.lane.b32.xlu0 %v18280_v6, %s18527_s5 }
0x1368   :  { %v18282_v63 = vpop.eup %18281 }
0x1369   :  { %v5644_v8 = vadd.f32 1.0, %v18282_v63 }
0x136b   :  { %18283 = vrcp.f32 %v5644_v8 }
0x1375   :  { %v18284_v62 = vpop.eup %18283 }
0x1376   :  { %v5648_v7 = vmul.f32 %v18284_v62, %v19121_v49 }
0x13d9   :  { %v5651_v11 = vpop.permute.xlu0 %5650 }
0x13da   :  { %v5653_v12 = vmul.f32 %v18284_v62, %v5651_v11 }
0x13dc   :  { %5655 = vrot.lane.b32.xlu1 %v5653_v12, %s18528_s13 }
0x144e   :  { %v5656_v26 = vpop.permute.xlu1 %5655 }
0x144f   :  { %v19271_v21 = vadd.f32 %v5656_v26, %v5648_v7 }
0x1451   :  { %18285 = vtanh.f32 %v19271_v21 }
0x145b   :  { %v18286_v57 = vpop.eup %18285 }
0x145c   :  { %5661 = vrot.lane.b32.xlu0 %v18286_v57, %s18527_s5 }
0x14ce   :  { %v5662_v24 = vpop.permute.xlu0 %5661 }
0x14cf   :  { %v5664_v22 = vmul.f32 %v18284_v62, %v5662_v24 }
0x14d1   :  { %5666 = vrot.lane.b32.xlu1 %v5664_v22, %s18528_s13 }
0x1543   :  { %v5667_v20 = vpop.permute.xlu1 %5666 }
0x1544   :  { %v5668_v34 = vsel %vm114_vm1, %v5667_v20, 0 }
0x1545   :  { %v19277_v35 = vand.u32 4294901760, %v5668_v34 }
0x1547   :  { %v19280_v43 = vsub.f32 %v5668_v34, %v19277_v35 }
0x1549   :  { %v5741_v49 = vand.u32 4294901760, %v19280_v43 }
0x154b   :  { %v5742_v44 = vsub.f32 %v19280_v43, %v5741_v49 }
0x154d   :  { %v19284_v23 = vand.u32 4294901760, %v5742_v44 }
0x154f   :  { %15879 = vmatmul.mubr.f32.vlgmr.msra.gmra.mrb[26].mxu1 %v19284_v23 }
0x1550   :  { %17396 = vmatpush3.bf16.msra.mxu1 %v18803_v4  ;;  %15889 = vmatprep.mubr.msk.f32.mxu1 %vm18525_vm0, %v18526_v1 }
0x1551   :  { %17397 = vmatprep.subr.bf16.mxu1 %v18524_v0 }
0x1554   :  { %17399 = vmatpush3.bf16.msra.mxu1 %v18807_v13 }
0x1555   :  { %17400 = vmatprep.subr.bf16.mxu1 %v18524_v0 }
0x1557   :  { %15890 = vmatmul.mubr.f32.vlgmr.msra.gmra.mrb[26].mxu1 %v19277_v35 }
0x1558   :  { %17402 = vmatpush3.bf16.msra.mxu1 %v18809_v14  ;;  %15900 = vmatprep.mubr.msk.f32.mxu1 %vm18525_vm0, %v18526_v1 }
0x1559   :  { %17403 = vmatprep.subr.bf16.mxu1 %v18524_v0 }
0x155c   :  { %17405 = vmatpush3.bf16.msra.mxu1 %v18811_v17 }
0x155d   :  { %17406 = vmatprep.subr.bf16.mxu1 %v18524_v0 }
0x155f   :  { %15901 = vmatmul.mubr.f32.vlgmr.msra.gmra.mrb[26].mxu1 %v19280_v43 }
0x1560   :  { %17408 = vmatpush3.bf16.msra.mxu1 %v18795_v46  ;;  %15911 = vmatprep.mubr.msk.f32.mxu1 %vm18525_vm0, %v18526_v1 }
0x1561   :  { %17409 = vmatprep.subr.bf16.mxu1 %v18524_v0 }
0x1564   :  { %17411 = vmatpush3.bf16.msra.mxu1 %v18799_v55 }
0x1565   :  { %17412 = vmatprep.subr.bf16.mxu1 %v18524_v0 }
0x1567   :  { %15912 = vmatmul.mubr.f32.vlgmr.msra.gmra.mrb[26].mxu1 %v5741_v49 }
0x1568   :  { %17414 = vmatpush3.bf16.msra.mxu1 %v18813_v18  ;;  %15922 = vmatprep.mubr.msk.f32.mxu1 %vm18525_vm0, %v18526_v1 }
0x1569   :  { %17415 = vmatprep.subr.bf16.mxu1 %v18524_v0 }
0x156c   :  { %17417 = vmatpush3.bf16.msra.mxu1 %v18815_v19 }
0x156d   :  { %17418 = vmatprep.subr.bf16.mxu1 %v18524_v0 }
0x156f   :  { %15923 = vmatmul.mubr.f32.vlgmr.msra.gmra.mrb[26].mxu1 %v19277_v35 }
0x1570   :  { %17420 = vmatpush3.bf16.msra.mxu1 %v18795_v46  ;;  %15933 = vmatprep.mubr.msk.f32.mxu1 %vm18525_vm0, %v18526_v1 }
0x1571   :  { %17421 = vmatprep.subr.bf16.mxu1 %v18524_v0 }
0x1574   :  { %17423 = vmatpush3.bf16.msra.mxu1 %v18799_v55 }
0x1575   :  { %17466 = vmatprep.subr.bf16.mxu1 %v18524_v0 }
0x1577   :  { %15934 = vmatmul.mubr.f32.vlgmr.msra.gmra.mrb[26].mxu1 %v19277_v35 }
0x1578   :  { %17468 = vmatpush3.bf16.msra.mxu1 %v18673_v28  ;;  %16021 = vmatprep.mubr.msk.f32.mxu1 %vm18525_vm0, %v18526_v1 }
0x1579   :  { %17469 = vmatprep.subr.bf16.mxu1 %v18524_v0 }
0x157c   :  { %17471 = vmatpush3.bf16.msra.mxu1 %v18677_v29 }
0x157d   :  { %17478 = vmatprep.subr.bf16.mxu1 %v18524_v0 }
0x157f   :  { %16022 = vmatmul.mubr.f32.vlgmr.msra.gmra.mrb[34].mxu1 %v19277_v35 }
0x1580   :  { %17480 = vmatpush3.bf16.msra.mxu1 %v18665_v10  ;;  %16043 = vmatprep.mubr.msk.f32.mxu1 %vm18525_vm0, %v18526_v1 }
0x1581   :  { %17481 = vmatprep.subr.bf16.mxu1 %v18524_v0 }
0x1584   :  { %17483 = vmatpush3.bf16.msra.mxu1 %v18668_v15 }
0x1585   :  { %17490 = vmatprep.subr.bf16.mxu1 %v18524_v0 }
0x1587   :  { %16044 = vmatmul.mubr.f32.vlgmr.msra.gmra.mrb[36].mxu1 %v5741_v49 }
0x1588   :  { %17492 = vmatpush3.bf16.msra.mxu1 %v18665_v10  ;;  %16065 = vmatprep.mubr.msk.f32.mxu1 %vm18525_vm0, %v18526_v1 }
0x1589   :  { %17493 = vmatprep.subr.bf16.mxu1 %v18524_v0 }
0x158c   :  { %17495 = vmatpush3.bf16.msra.mxu1 %v18668_v15 }
0x158d   :  { %17532 = vmatprep.subr.bf16.mxu1 %v18524_v0 }
0x158f   :  { %16066 = vmatmul.mubr.f32.vlgmr.msra.gmra.mrb[38].mxu1 %v19277_v35 }
0x1590   :  { %17534 = vmatpush3.bf16.msra.mxu1 %v18732_v9  ;;  %16142 = vmatprep.mubr.msk.f32.mxu1 %vm18525_vm0, %v18526_v1 }
0x1591   :  { %17535 = vmatprep.subr.bf16.mxu1 %v18524_v0 }
0x1594   :  { %17537 = vmatpush3.bf16.msra.mxu1 %v18735_v16 }
0x1595   :  { %17538 = vmatprep.subr.bf16.mxu1 %v18524_v0 }
0x164a   :  { %v6151_v47 = vpop.f32.mrb[26].mxu1 }
0x164b   :  { %v18003_v50 = vadd.f32 %v19350_v25, %v6151_v47  ;;  %v15935_v42 = vpop.f32.mrb[27].mxu1 }
0x164d   :  { %18287 = vtanh.f32 %v18003_v50  ;;  %v14292_v58 = vmul.f32 -1.442695, %v18003_v50 }
0x164f   :  { %18289 = vpow2.f32 %v14292_v58 }
0x1652   :  { %v19353_v51 = vpop.f32.mrb[34].mxu1 }
0x1653   :  { %v16023_v45 = vpop.f32.mrb[35].mxu1 }
0x1654   :  { %v6671_v45 = vld [vmem:[#allocation2 + $0x20] sm:$0xff] }
0x1657   :  { %v18288_v52 = vpop.eup %18287 }
0x1658   :  { %6165 = vrot.lane.b32.xlu0 %v18288_v52, %s18527_s5 }
0x1659   :  { %v18290_v59 = vpop.eup %18289 }
0x165a   :  { %v19356_v48 = vpop.f32.mrb[36].mxu1  ;;  %v6159_v61 = vadd.f32 1.0, %v18290_v59 }
0x165b   :  { %v16045_v56 = vpop.f32.mrb[37].mxu1 }
0x165c   :  { %18291 = vrcp.f32 %v6159_v61 }
0x1662   :  { %v19358_v54 = vpop.f32.mrb[38].mxu1 }
0x1663   :  { %v16067_v53 = vpop.f32.mrb[39].mxu1 }
0x1666   :  { %v18292_v60 = vpop.eup %18291 }
0x1667   :  { %v6163_v6 = vmul.f32 %v18292_v60, %v19202_v27 }
0x16ca   :  { %v6166_v2 = vpop.permute.xlu0 %6165 }
0x16cb   :  { %v6168_v5 = vmul.f32 %v18292_v60, %v6166_v2 }
0x16cd   :  { %6170 = vrot.lane.b32.xlu1 %v6168_v5, %s18528_s13 }
0x173f   :  { %v6171_v3 = vpop.permute.xlu1 %6170 }
0x1740   :  { %v19362_v63 = vadd.f32 %v6171_v3, %v6163_v6 }
0x1742   :  { %18293 = vtanh.f32 %v19362_v63 }
0x174c   :  { %v18294_v8 = vpop.eup %18293 }
0x174d   :  { %6176 = vrot.lane.b32.xlu0 %v18294_v8, %s18527_s5 }
0x17bf   :  { %v6177_v62 = vpop.permute.xlu0 %6176 }
0x17c0   :  { %v6179_v11 = vmul.f32 %v18292_v60, %v6177_v62 }
0x17c2   :  { %6181 = vrot.lane.b32.xlu1 %v6179_v11, %s18528_s13 }
0x1834   :  { %v6182_v12 = vpop.permute.xlu1 %6181 }
0x1835   :  { %v6183_v7 = vsel %vm114_vm1, %v6182_v12, 0 }
0x1836   :  { %v6254_v26 = vand.u32 4294901760, %v6183_v7 }
0x1838   :  { %v6255_v57 = vsub.f32 %v6183_v7, %v6254_v26 }
0x183a   :  { %v6256_v24 = vand.u32 4294901760, %v6255_v57 }
0x183c   :  { %v6257_v22 = vsub.f32 %v6255_v57, %v6256_v24 }
0x183e   :  { %v6258_v27 = vand.u32 4294901760, %v6257_v22 }
0x1840   :  { %15945 = vmatmul.mubr.f32.vlgmr.msra.gmra.mrb[22].mxu0 %v6258_v27 }
0x1841   :  { %17432 = vmatpush3.bf16.msra.mxu0 %v18745_v36  ;;  %15955 = vmatprep.mubr.msk.f32.mxu0 %vm18525_vm0, %v18526_v1 }
0x1842   :  { %17433 = vmatprep.subr.bf16.mxu0 %v18524_v0 }
0x1845   :  { %17435 = vmatpush3.bf16.msra.mxu0 %v18749_v37 }
0x1846   :  { %17436 = vmatprep.subr.bf16.mxu0 %v18524_v0 }
0x1848   :  { %15956 = vmatmul.mubr.f32.vlgmr.msra.gmra.mrb[22].mxu0 %v6254_v26 }
0x1849   :  { %17438 = vmatpush3.bf16.msra.mxu0 %v18755_v38  ;;  %15966 = vmatprep.mubr.msk.f32.mxu0 %vm18525_vm0, %v18526_v1 }
0x184a   :  { %17439 = vmatprep.subr.bf16.mxu0 %v18524_v0 }
0x184d   :  { %17441 = vmatpush3.bf16.msra.mxu0 %v18760_v39 }
0x184e   :  { %17442 = vmatprep.subr.bf16.mxu0 %v18524_v0 }
0x1850   :  { %15967 = vmatmul.mubr.f32.vlgmr.msra.gmra.mrb[22].mxu0 %v6255_v57 }
0x1851   :  { %17444 = vmatpush3.bf16.msra.mxu0 %v18732_v9  ;;  %15977 = vmatprep.mubr.msk.f32.mxu0 %vm18525_vm0, %v18526_v1 }
0x1852   :  { %17445 = vmatprep.subr.bf16.mxu0 %v18524_v0 }
0x1855   :  { %17447 = vmatpush3.bf16.msra.mxu0 %v18735_v16 }
0x1856   :  { %17448 = vmatprep.subr.bf16.mxu0 %v18524_v0 }
0x1858   :  { %15978 = vmatmul.mubr.f32.vlgmr.msra.gmra.mrb[22].mxu0 %v6256_v24 }
0x1859   :  { %17450 = vmatpush3.bf16.msra.mxu0 %v18773_v40  ;;  %15988 = vmatprep.mubr.msk.f32.mxu0 %vm18525_vm0, %v18526_v1 }
0x185a   :  { %17451 = vmatprep.subr.bf16.mxu0 %v18524_v0 }
0x185d   :  { %17453 = vmatpush3.bf16.msra.mxu0 %v18778_v41 }
0x185e   :  { %17454 = vmatprep.subr.bf16.mxu0 %v18524_v0 }
0x1860   :  { %15989 = vmatmul.mubr.f32.vlgmr.msra.gmra.mrb[22].mxu0 %v6254_v26 }
0x1861   :  { %17456 = vmatpush3.bf16.msra.mxu0 %v18732_v9  ;;  %15999 = vmatprep.mubr.msk.f32.mxu0 %vm18525_vm0, %v18526_v1 }
0x1862   :  { %17457 = vmatprep.subr.bf16.mxu0 %v18524_v0 }
0x1865   :  { %17459 = vmatpush3.bf16.msra.mxu0 %v18735_v16 }
0x1866   :  { %17460 = vmatprep.subr.bf16.mxu0 %v18524_v0 }
0x1868   :  { %16000 = vmatmul.mubr.f32.vlgmr.msra.gmra.mrb[22].mxu0 %v6254_v26 }
0x1869   :  { %17462 = vmatpush3.bf16.msra.mxu0 %v18665_v10  ;;  %16010 = vmatprep.mubr.msk.f32.mxu0 %vm18525_vm0, %v18526_v1 }
0x186a   :  { %17463 = vmatprep.subr.bf16.mxu0 %v18524_v0 }
0x186d   :  { %17465 = vmatpush3.bf16.msra.mxu0 %v18668_v15 }
0x186e   :  { %17472 = vmatprep.subr.bf16.mxu0 %v18524_v0 }
0x1870   :  { %16011 = vmatmul.mubr.f32.vlgmr.msra.gmra.mrb[24].mxu0 %v19284_v23 }
0x1871   :  { %17474 = vmatpush3.bf16.msra.mxu0 %v18683_v30  ;;  %16032 = vmatprep.mubr.msk.f32.mxu0 %vm18525_vm0, %v18526_v1 }
0x1872   :  { %17475 = vmatprep.subr.bf16.mxu0 %v18524_v0 }
0x1875   :  { %17477 = vmatpush3.bf16.msra.mxu0 %v18688_v31 }
0x1876   :  { %17484 = vmatprep.subr.bf16.mxu0 %v18524_v0 }
0x1878   :  { %16033 = vmatmul.mubr.f32.vlgmr.msra.gmra.mrb[26].mxu0 %v19280_v43 }
0x1879   :  { %17486 = vmatpush3.bf16.msra.mxu0 %v18701_v32  ;;  %16054 = vmatprep.mubr.msk.f32.mxu0 %vm18525_vm0, %v18526_v1 }
0x187a   :  { %17487 = vmatprep.subr.bf16.mxu0 %v18524_v0 }
0x187d   :  { %17489 = vmatpush3.bf16.msra.mxu0 %v18706_v33 }
0x187e   :  { %17496 = vmatprep.subr.bf16.mxu0 %v18524_v0 }
0x1880   :  { %16055 = vmatmul.mubr.f32.vlgmr.msra.gmra.mrb[28].mxu0 %v19277_v35 }
0x1881   :  { %17498 = vmatpush3.bf16.msra.mxu0 %v18795_v46  ;;  %16076 = vmatprep.mubr.msk.f32.mxu0 %vm18525_vm0, %v18526_v1 }
0x1882   :  { %17499 = vmatprep.subr.bf16.mxu0 %v18524_v0 }
0x1885   :  { %17501 = vmatpush3.bf16.msra.mxu0 %v18799_v55 }
0x1886   :  { %17502 = vmatprep.subr.bf16.mxu0 %v18524_v0 }
0x1943   :  { %v6747_v20 = vpop.f32.mrb[24].mxu0 }
0x1944   :  { %v6839_v34 = vadd.f32 %v19353_v51, %v6747_v20  ;;  %v16012_v43 = vpop.f32.mrb[25].mxu0 }
0x194b   :  { %v6918_v49 = vpop.f32.mrb[26].mxu0 }
0x194c   :  { %v6919_v44 = vadd.f32 %v6918_v49, %v6839_v34  ;;  %v16034_v23 = vpop.f32.mrb[27].mxu0 }
0x194e   :  { %v6996_v35 = vadd.f32 %v19356_v48, %v6919_v44 }
0x1953   :  { %v7078_v47 = vpop.f32.mrb[28].mxu0 }
0x1954   :  { %v7079_v50 = vadd.f32 %v7078_v47, %v6996_v35  ;;  %v16056_v42 = vpop.f32.mrb[29].mxu0 }
0x1956   :  { %v7154_v52 = vadd.f32 %v19358_v54, %v7079_v50 }
0x1958   :  { %v7157_v56 = vadd.f32 %v7154_v52, %v6671_v45 }
0x195a   :  { %18295 = vtanh.f32 %v7157_v56  ;;  %v14293_v58 = vmul.f32 -1.442695, %v7157_v56 }
0x195c   :  { %18297 = vpow2.f32 %v14293_v58 }
0x1964   :  { %v18296_v53 = vpop.eup %18295 }
0x1965   :  { %7167 = vrot.lane.b32.xlu0 %v18296_v53, %s18527_s5 }
0x1966   :  { %v18298_v51 = vpop.eup %18297 }
0x1967   :  { %v7161_v59 = vadd.f32 1.0, %v18298_v51 }
0x1969   :  { %18299 = vrcp.f32 %v7161_v59 }
0x1973   :  { %v18300_v61 = vpop.eup %18299 }
0x1974   :  { %v7165_v48 = vmul.f32 %v18300_v61, %v19271_v21 }
0x19d7   :  { %v7168_v60 = vpop.permute.xlu0 %7167 }
0x19d8   :  { %v7170_v2 = vmul.f32 %v18300_v61, %v7168_v60 }
0x19da   :  { %7172 = vrot.lane.b32.xlu1 %v7170_v2, %s18528_s13 }
0x1a4c   :  { %v7173_v5 = vpop.permute.xlu1 %7172 }
0x1a4d   :  { %v19431_v6 = vadd.f32 %v7173_v5, %v7165_v48 }
0x1a4f   :  { %18301 = vtanh.f32 %v19431_v6 }
0x1a59   :  { %v18302_v54 = vpop.eup %18301 }
0x1a5a   :  { %7178 = vrot.lane.b32.xlu0 %v18302_v54, %s18527_s5 }
0x1acc   :  { %v7179_v3 = vpop.permute.xlu0 %7178 }
0x1acd   :  { %v7181_v8 = vmul.f32 %v18300_v61, %v7179_v3 }
0x1acf   :  { %7183 = vrot.lane.b32.xlu1 %v7181_v8, %s18528_s13 }
0x1b41   :  { %v7184_v62 = vpop.permute.xlu1 %7183 }
0x1b42   :  { %v7185_v11 = vsel %vm114_vm1, %v7184_v62, 0 }
0x1b43   :  { %v19437_v12 = vand.u32 4294901760, %v7185_v11 }
0x1b45   :  { %v7257_v7 = vsub.f32 %v7185_v11, %v19437_v12 }
0x1b47   :  { %v19440_v21 = vand.u32 4294901760, %v7257_v7 }
0x1b49   :  { %v7259_v26 = vsub.f32 %v7257_v7, %v19440_v21 }
0x1b4b   :  { %v7260_v57 = vand.u32 4294901760, %v7259_v26 }
0x1b4d   :  { %16077 = vmatmul.mubr.f32.vlgmr.msra.gmra.mrb[22].mxu0 %v7260_v57 }
0x1b4e   :  { %17504 = vmatpush3.bf16.msra.mxu0 %v18803_v4  ;;  %16087 = vmatprep.mubr.msk.f32.mxu0 %vm18525_vm0, %v18526_v1 }
0x1b4f   :  { %17505 = vmatprep.subr.bf16.mxu0 %v18524_v0 }
0x1b52   :  { %17507 = vmatpush3.bf16.msra.mxu0 %v18807_v13 }
0x1b53   :  { %17508 = vmatprep.subr.bf16.mxu0 %v18524_v0 }
0x1b55   :  { %16088 = vmatmul.mubr.f32.vlgmr.msra.gmra.mrb[22].mxu0 %v19437_v12 }
0x1b56   :  { %17510 = vmatpush3.bf16.msra.mxu0 %v18809_v14  ;;  %16098 = vmatprep.mubr.msk.f32.mxu0 %vm18525_vm0, %v18526_v1 }
0x1b57   :  { %17511 = vmatprep.subr.bf16.mxu0 %v18524_v0 }
0x1b5a   :  { %17513 = vmatpush3.bf16.msra.mxu0 %v18811_v17 }
0x1b5b   :  { %17514 = vmatprep.subr.bf16.mxu0 %v18524_v0 }
0x1b5d   :  { %16099 = vmatmul.mubr.f32.vlgmr.msra.gmra.mrb[22].mxu0 %v7257_v7 }
0x1b5e   :  { %17516 = vmatpush3.bf16.msra.mxu0 %v18795_v46  ;;  %16109 = vmatprep.mubr.msk.f32.mxu0 %vm18525_vm0, %v18526_v1 }
0x1b5f   :  { %17517 = vmatprep.subr.bf16.mxu0 %v18524_v0 }
0x1b62   :  { %17519 = vmatpush3.bf16.msra.mxu0 %v18799_v55 }
0x1b63   :  { %17520 = vmatprep.subr.bf16.mxu0 %v18524_v0 }
0x1b65   :  { %16110 = vmatmul.mubr.f32.vlgmr.msra.gmra.mrb[22].mxu0 %v19440_v21 }
0x1b66   :  { %17522 = vmatpush3.bf16.msra.mxu0 %v18813_v18  ;;  %16120 = vmatprep.mubr.msk.f32.mxu0 %vm18525_vm0, %v18526_v1 }
0x1b67   :  { %17523 = vmatprep.subr.bf16.mxu0 %v18524_v0 }
0x1b6a   :  { %17525 = vmatpush3.bf16.msra.mxu0 %v18815_v19 }
0x1b6b   :  { %17526 = vmatprep.subr.bf16.mxu0 %v18524_v0 }
0x1b6d   :  { %16121 = vmatmul.mubr.f32.vlgmr.msra.gmra.mrb[22].mxu0 %v19437_v12 }
0x1b6e   :  { %17528 = vmatpush3.bf16.msra.mxu0 %v18795_v46  ;;  %16131 = vmatprep.mubr.msk.f32.mxu0 %vm18525_vm0, %v18526_v1 }
0x1b6f   :  { %17529 = vmatprep.subr.bf16.mxu0 %v18524_v0 }
0x1b72   :  { %17531 = vmatpush3.bf16.msra.mxu0 %v18799_v55 }
0x1b73   :  { %17568 = vmatprep.subr.bf16.mxu0 %v18524_v0 }
0x1b75   :  { %16132 = vmatmul.mubr.f32.vlgmr.msra.gmra.mrb[22].mxu0 %v19437_v12 }
0x1b76   :  { %17570 = vmatpush3.bf16.msra.mxu0 %v18665_v10  ;;  %16208 = vmatprep.mubr.msk.f32.mxu0 %vm18525_vm0, %v18526_v1 }
0x1b77   :  { %17571 = vmatprep.subr.bf16.mxu0 %v18524_v0 }
0x1b7a   :  { %17573 = vmatpush3.bf16.msra.mxu0 %v18668_v15 }
0x1b7b   :  { %17580 = vmatprep.subr.bf16.mxu0 %v18524_v0 }
0x1b7d   :  { %16209 = vmatmul.mubr.f32.vlgmr.msra.gmra.mrb[30].mxu0 %v7260_v57 }
0x1b7e   :  { %17582 = vmatpush3.bf16.msra.mxu0 %v18683_v30  ;;  %16230 = vmatprep.mubr.msk.f32.mxu0 %vm18525_vm0, %v18526_v1 }
0x1b7f   :  { %17583 = vmatprep.subr.bf16.mxu0 %v18524_v0 }
0x1b82   :  { %17585 = vmatpush3.bf16.msra.mxu0 %v18688_v31 }
0x1b83   :  { %17592 = vmatprep.subr.bf16.mxu0 %v18524_v0 }
0x1b85   :  { %16231 = vmatmul.mubr.f32.vlgmr.msra.gmra.mrb[32].mxu0 %v7257_v7 }
0x1b86   :  { %17594 = vmatpush3.bf16.msra.mxu0 %v18701_v32  ;;  %16252 = vmatprep.mubr.msk.f32.mxu0 %vm18525_vm0, %v18526_v1 }
0x1b87   :  { %17595 = vmatprep.subr.bf16.mxu0 %v18524_v0 }
0x1b8a   :  { %17597 = vmatpush3.bf16.msra.mxu0 %v18706_v33 }
0x1b8b   :  { %17640 = vmatprep.subr.bf16.mxu0 %v18524_v0 }
0x1b8d   :  { %16253 = vmatmul.mubr.f32.vlgmr.msra.gmra.mrb[34].mxu0 %v19437_v12 }
0x1b8e   :  { %17642 = vmatpush3.bf16.msra.mxu0 %v18732_v9  ;;  %16340 = vmatprep.mubr.msk.f32.mxu0 %vm18525_vm0, %v18526_v1 }
0x1b8f   :  { %17643 = vmatprep.subr.bf16.mxu0 %v18524_v0 }
0x1b92   :  { %17645 = vmatpush3.bf16.msra.mxu0 %v18735_v16 }
0x1b93   :  { %17646 = vmatprep.subr.bf16.mxu0 %v18524_v0 }
0x1c48   :  { %v7668_v24 = vpop.f32.mrb[22].mxu0 }
0x1c49   :  { %v18004_v22 = vadd.f32 %v19350_v25, %v7668_v24  ;;  %v16133_v27 = vpop.f32.mrb[23].mxu0 }
0x1c4b   :  { %18303 = vtanh.f32 %v18004_v22  ;;  %v14294_v47 = vmul.f32 -1.442695, %v18004_v22  ;;  %v8188_v22 = vld [vmem:[#allocation2 + $0x28] sm:$0xff] }
0x1c4d   :  { %18305 = vpow2.f32 %v14294_v47 }
0x1c50   :  { %v19503_v20 = vpop.f32.mrb[30].mxu0 }
0x1c51   :  { %v16210_v34 = vpop.f32.mrb[31].mxu0 }
0x1c55   :  { %v18304_v43 = vpop.eup %18303 }
0x1c56   :  { %7682 = vrot.lane.b32.xlu0 %v18304_v43, %s18527_s5 }
0x1c57   :  { %v18306_v50 = vpop.eup %18305 }
0x1c58   :  { %v19506_v49 = vpop.f32.mrb[32].mxu0  ;;  %v7676_v42 = vadd.f32 1.0, %v18306_v50 }
0x1c59   :  { %v16232_v44 = vpop.f32.mrb[33].mxu0 }
0x1c5a   :  { %18307 = vrcp.f32 %v7676_v42 }
0x1c60   :  { %v19508_v23 = vpop.f32.mrb[34].mxu0 }
0x1c61   :  { %v16254_v35 = vpop.f32.mrb[35].mxu0 }
0x1c64   :  { %v18308_v45 = vpop.eup %18307 }
0x1c65   :  { %v7680_v53 = vmul.f32 %v18308_v45, %v19362_v63 }
0x1cc8   :  { %v7683_v52 = vpop.permute.xlu0 %7682 }
0x1cc9   :  { %v7685_v56 = vmul.f32 %v18308_v45, %v7683_v52 }
0x1ccb   :  { %7687 = vrot.lane.b32.xlu1 %v7685_v56, %s18528_s13 }
0x1d3d   :  { %v7688_v58 = vpop.permute.xlu1 %7687 }
0x1d3e   :  { %v19512_v51 = vadd.f32 %v7688_v58, %v7680_v53 }
0x1d40   :  { %18309 = vtanh.f32 %v19512_v51 }
0x1d4a   :  { %v18310_v59 = vpop.eup %18309 }
0x1d4b   :  { %7693 = vrot.lane.b32.xlu0 %v18310_v59, %s18527_s5 }
0x1dbd   :  { %v7694_v61 = vpop.permute.xlu0 %7693 }
0x1dbe   :  { %v7696_v60 = vmul.f32 %v18308_v45, %v7694_v61 }
0x1dc0   :  { %7698 = vrot.lane.b32.xlu1 %v7696_v60, %s18528_s13 }
0x1e32   :  { %v7699_v2 = vpop.permute.xlu1 %7698 }
0x1e33   :  { %v7700_v48 = vsel %vm114_vm1, %v7699_v2, 0 }
0x1e34   :  { %v7771_v5 = vand.u32 4294901760, %v7700_v48 }
0x1e36   :  { %v7772_v54 = vsub.f32 %v7700_v48, %v7771_v5 }
0x1e38   :  { %v7773_v3 = vand.u32 4294901760, %v7772_v54 }
0x1e3a   :  { %v7774_v8 = vsub.f32 %v7772_v54, %v7773_v3 }
0x1e3c   :  { %v7775_v63 = vand.u32 4294901760, %v7774_v8 }
0x1e3e   :  { %16143 = vmatmul.mubr.f32.vlgmr.msra.gmra.mrb[40].mxu1 %v7775_v63 }
0x1e3f   :  { %17540 = vmatpush3.bf16.msra.mxu1 %v18745_v36  ;;  %16153 = vmatprep.mubr.msk.f32.mxu1 %vm18525_vm0, %v18526_v1 }
0x1e40   :  { %17541 = vmatprep.subr.bf16.mxu1 %v18524_v0 }
0x1e43   :  { %17543 = vmatpush3.bf16.msra.mxu1 %v18749_v37 }
0x1e44   :  { %17544 = vmatprep.subr.bf16.mxu1 %v18524_v0 }
0x1e46   :  { %16154 = vmatmul.mubr.f32.vlgmr.msra.gmra.mrb[40].mxu1 %v7771_v5 }
0x1e47   :  { %17546 = vmatpush3.bf16.msra.mxu1 %v18755_v38  ;;  %16164 = vmatprep.mubr.msk.f32.mxu1 %vm18525_vm0, %v18526_v1 }
0x1e48   :  { %17547 = vmatprep.subr.bf16.mxu1 %v18524_v0 }
0x1e4b   :  { %17549 = vmatpush3.bf16.msra.mxu1 %v18760_v39 }
0x1e4c   :  { %17550 = vmatprep.subr.bf16.mxu1 %v18524_v0 }
0x1e4e   :  { %16165 = vmatmul.mubr.f32.vlgmr.msra.gmra.mrb[40].mxu1 %v7772_v54 }
0x1e4f   :  { %17552 = vmatpush3.bf16.msra.mxu1 %v18732_v9  ;;  %16175 = vmatprep.mubr.msk.f32.mxu1 %vm18525_vm0, %v18526_v1 }
0x1e50   :  { %17553 = vmatprep.subr.bf16.mxu1 %v18524_v0 }
0x1e53   :  { %17555 = vmatpush3.bf16.msra.mxu1 %v18735_v16 }
0x1e54   :  { %17556 = vmatprep.subr.bf16.mxu1 %v18524_v0 }
0x1e56   :  { %16176 = vmatmul.mubr.f32.vlgmr.msra.gmra.mrb[40].mxu1 %v7773_v3 }
0x1e57   :  { %17558 = vmatpush3.bf16.msra.mxu1 %v18773_v40  ;;  %16186 = vmatprep.mubr.msk.f32.mxu1 %vm18525_vm0, %v18526_v1 }
0x1e58   :  { %17559 = vmatprep.subr.bf16.mxu1 %v18524_v0 }
0x1e5b   :  { %17561 = vmatpush3.bf16.msra.mxu1 %v18778_v41 }
0x1e5c   :  { %17562 = vmatprep.subr.bf16.mxu1 %v18524_v0 }
0x1e5e   :  { %16187 = vmatmul.mubr.f32.vlgmr.msra.gmra.mrb[40].mxu1 %v7771_v5 }
0x1e5f   :  { %17564 = vmatpush3.bf16.msra.mxu1 %v18732_v9  ;;  %16197 = vmatprep.mubr.msk.f32.mxu1 %vm18525_vm0, %v18526_v1 }
0x1e60   :  { %17565 = vmatprep.subr.bf16.mxu1 %v18524_v0 }
0x1e63   :  { %17567 = vmatpush3.bf16.msra.mxu1 %v18735_v16 }
0x1e64   :  { %17574 = vmatprep.subr.bf16.mxu1 %v18524_v0 }
0x1e66   :  { %16198 = vmatmul.mubr.f32.vlgmr.msra.gmra.mrb[40].mxu1 %v7771_v5 }
0x1e67   :  { %17576 = vmatpush3.bf16.msra.mxu1 %v18673_v28  ;;  %16219 = vmatprep.mubr.msk.f32.mxu1 %vm18525_vm0, %v18526_v1 }
0x1e68   :  { %17577 = vmatprep.subr.bf16.mxu1 %v18524_v0 }
0x1e6b   :  { %17579 = vmatpush3.bf16.msra.mxu1 %v18677_v29 }
0x1e6c   :  { %17586 = vmatprep.subr.bf16.mxu1 %v18524_v0 }
0x1e6e   :  { %16220 = vmatmul.mubr.f32.vlgmr.msra.gmra.mrb[42].mxu1 %v19437_v12 }
0x1e6f   :  { %17588 = vmatpush3.bf16.msra.mxu1 %v18665_v10  ;;  %16241 = vmatprep.mubr.msk.f32.mxu1 %vm18525_vm0, %v18526_v1 }
0x1e70   :  { %17589 = vmatprep.subr.bf16.mxu1 %v18524_v0 }
0x1e73   :  { %17591 = vmatpush3.bf16.msra.mxu1 %v18668_v15 }
0x1e74   :  { %17598 = vmatprep.subr.bf16.mxu1 %v18524_v0 }
0x1e76   :  { %16242 = vmatmul.mubr.f32.vlgmr.msra.gmra.mrb[44].mxu1 %v19440_v21 }
0x1e77   :  { %17600 = vmatpush3.bf16.msra.mxu1 %v18665_v10  ;;  %16263 = vmatprep.mubr.msk.f32.mxu1 %vm18525_vm0, %v18526_v1 }
0x1e78   :  { %17601 = vmatprep.subr.bf16.mxu1 %v18524_v0 }
0x1e7b   :  { %17603 = vmatpush3.bf16.msra.mxu1 %v18668_v15 }
0x1e7c   :  { %17604 = vmatprep.subr.bf16.mxu1 %v18524_v0 }
0x1e7e   :  { %16264 = vmatmul.mubr.f32.vlgmr.msra.gmra.mrb[46].mxu1 %v19437_v12 }
0x1e7f   :  { %17606 = vmatpush3.bf16.msra.mxu1 %v18795_v46  ;;  %16274 = vmatprep.mubr.msk.f32.mxu1 %vm18525_vm0, %v18526_v1 }
0x1e80   :  { %17607 = vmatprep.subr.bf16.mxu1 %v18524_v0 }
0x1e83   :  { %17609 = vmatpush3.bf16.msra.mxu1 %v18799_v55 }
0x1e84   :  { %17610 = vmatprep.subr.bf16.mxu1 %v18524_v0 }
0x1f41   :  { %v8355_v62 = vpop.f32.mrb[42].mxu1 }
0x1f42   :  { %v8356_v11 = vadd.f32 %v8355_v62, %v19503_v20  ;;  %v16221_v7 = vpop.f32.mrb[43].mxu1 }
0x1f44   :  { %v8436_v21 = vadd.f32 %v19506_v49, %v8356_v11 }
0x1f49   :  { %v8512_v26 = vpop.f32.mrb[44].mxu1 }
0x1f4a   :  { %v8513_v57 = vadd.f32 %v8512_v26, %v8436_v21  ;;  %v16243_v12 = vpop.f32.mrb[45].mxu1 }
0x1f4c   :  { %v8596_v24 = vadd.f32 %v19508_v23, %v8513_v57 }
0x1f51   :  { %v8670_v27 = vpop.f32.mrb[46].mxu1 }
0x1f52   :  { %v8671_v34 = vadd.f32 %v8670_v27, %v8596_v24  ;;  %v16265_v43 = vpop.f32.mrb[47].mxu1 }
0x1f54   :  { %v8674_v44 = vadd.f32 %v8671_v34, %v8188_v22 }
0x1f56   :  { %18311 = vtanh.f32 %v8674_v44  ;;  %v14295_v47 = vmul.f32 -1.442695, %v8674_v44 }
0x1f58   :  { %18313 = vpow2.f32 %v14295_v47 }
0x1f60   :  { %v18312_v35 = vpop.eup %18311 }
0x1f61   :  { %8684 = vrot.lane.b32.xlu0 %v18312_v35, %s18527_s5 }
0x1f62   :  { %v18314_v20 = vpop.eup %18313 }
0x1f63   :  { %v8678_v50 = vadd.f32 1.0, %v18314_v20 }
0x1f65   :  { %18315 = vrcp.f32 %v8678_v50 }
0x1f6f   :  { %v18316_v49 = vpop.eup %18315 }
0x1f70   :  { %v8682_v23 = vmul.f32 %v18316_v49, %v19431_v6 }
0x1fd3   :  { %v8685_v42 = vpop.permute.xlu0 %8684 }
0x1fd4   :  { %v8687_v45 = vmul.f32 %v18316_v49, %v8685_v42 }
0x1fd6   :  { %8689 = vrot.lane.b32.xlu1 %v8687_v45, %s18528_s13 }
0x2048   :  { %v8690_v52 = vpop.permute.xlu1 %8689 }
0x2049   :  { %v19581_v56 = vadd.f32 %v8690_v52, %v8682_v23 }
0x204b   :  { %18317 = vtanh.f32 %v19581_v56 }
0x2055   :  { %v18318_v53 = vpop.eup %18317 }
0x2056   :  { %8695 = vrot.lane.b32.xlu0 %v18318_v53, %s18527_s5 }
0x20c8   :  { %v8696_v58 = vpop.permute.xlu0 %8695 }
0x20c9   :  { %v8698_v59 = vmul.f32 %v18316_v49, %v8696_v58 }
0x20cb   :  { %8700 = vrot.lane.b32.xlu1 %v8698_v59, %s18528_s13 }
0x213d   :  { %v8701_v61 = vpop.permute.xlu1 %8700 }
0x213e   :  { %v8702_v60 = vsel %vm114_vm1, %v8701_v61, 0 }
0x213f   :  { %v19587_v2 = vand.u32 4294901760, %v8702_v60 }
0x2141   :  { %v19590_v48 = vsub.f32 %v8702_v60, %v19587_v2 }
0x2143   :  { %v8775_v6 = vand.u32 4294901760, %v19590_v48 }
0x2145   :  { %v8776_v5 = vsub.f32 %v19590_v48, %v8775_v6 }
0x2147   :  { %v19594_v54 = vand.u32 4294901760, %v8776_v5 }
0x2149   :  { %16275 = vmatmul.mubr.f32.vlgmr.msra.gmra.mrb[40].mxu1 %v19594_v54 }
0x214a   :  { %17612 = vmatpush3.bf16.msra.mxu1 %v18803_v4  ;;  %16285 = vmatprep.mubr.msk.f32.mxu1 %vm18525_vm0, %v18526_v1 }
0x214b   :  { %17613 = vmatprep.subr.bf16.mxu1 %v18524_v0 }
0x214e   :  { %17615 = vmatpush3.bf16.msra.mxu1 %v18807_v13 }
0x214f   :  { %17616 = vmatprep.subr.bf16.mxu1 %v18524_v0 }
0x2151   :  { %16286 = vmatmul.mubr.f32.vlgmr.msra.gmra.mrb[40].mxu1 %v19587_v2 }
0x2152   :  { %17618 = vmatpush3.bf16.msra.mxu1 %v18809_v14  ;;  %16296 = vmatprep.mubr.msk.f32.mxu1 %vm18525_vm0, %v18526_v1 }
0x2153   :  { %17619 = vmatprep.subr.bf16.mxu1 %v18524_v0 }
0x2156   :  { %17621 = vmatpush3.bf16.msra.mxu1 %v18811_v17 }
0x2157   :  { %17622 = vmatprep.subr.bf16.mxu1 %v18524_v0 }
0x2159   :  { %16297 = vmatmul.mubr.f32.vlgmr.msra.gmra.mrb[40].mxu1 %v19590_v48 }
0x215a   :  { %17624 = vmatpush3.bf16.msra.mxu1 %v18795_v46  ;;  %16307 = vmatprep.mubr.msk.f32.mxu1 %vm18525_vm0, %v18526_v1 }
0x215b   :  { %17625 = vmatprep.subr.bf16.mxu1 %v18524_v0 }
0x215e   :  { %17627 = vmatpush3.bf16.msra.mxu1 %v18799_v55 }
0x215f   :  { %17628 = vmatprep.subr.bf16.mxu1 %v18524_v0 }
0x2161   :  { %16308 = vmatmul.mubr.f32.vlgmr.msra.gmra.mrb[40].mxu1 %v8775_v6 }
0x2162   :  { %17630 = vmatpush3.bf16.msra.mxu1 %v18813_v18  ;;  %16318 = vmatprep.mubr.msk.f32.mxu1 %vm18525_vm0, %v18526_v1 }
0x2163   :  { %17631 = vmatprep.subr.bf16.mxu1 %v18524_v0 }
0x2166   :  { %17633 = vmatpush3.bf16.msra.mxu1 %v18815_v19 }
0x2167   :  { %17634 = vmatprep.subr.bf16.mxu1 %v18524_v0 }
0x2169   :  { %16319 = vmatmul.mubr.f32.vlgmr.msra.gmra.mrb[40].mxu1 %v19587_v2 }
0x216a   :  { %17636 = vmatpush3.bf16.msra.mxu1 %v18795_v46  ;;  %16329 = vmatprep.mubr.msk.f32.mxu1 %vm18525_vm0, %v18526_v1 }
0x216b   :  { %17637 = vmatprep.subr.bf16.mxu1 %v18524_v0 }
0x216e   :  { %17639 = vmatpush3.bf16.msra.mxu1 %v18799_v55 }
0x216f   :  { %17682 = vmatprep.subr.bf16.mxu1 %v18524_v0 }
0x2171   :  { %16330 = vmatmul.mubr.f32.vlgmr.msra.gmra.mrb[40].mxu1 %v19587_v2 }
0x2172   :  { %17684 = vmatpush3.bf16.msra.mxu1 %v18673_v28  ;;  %16417 = vmatprep.mubr.msk.f32.mxu1 %vm18525_vm0, %v18526_v1 }
0x2173   :  { %17685 = vmatprep.subr.bf16.mxu1 %v18524_v0 }
0x2176   :  { %17687 = vmatpush3.bf16.msra.mxu1 %v18677_v29 }
0x2177   :  { %17694 = vmatprep.subr.bf16.mxu1 %v18524_v0 }
0x2179   :  { %16418 = vmatmul.mubr.f32.vlgmr.msra.gmra.mrb[48].mxu1 %v19587_v2 }
0x217a   :  { %17696 = vmatpush3.bf16.msra.mxu1 %v18665_v10  ;;  %16439 = vmatprep.mubr.msk.f32.mxu1 %vm18525_vm0, %v18526_v1 }
0x217b   :  { %17697 = vmatprep.subr.bf16.mxu1 %v18524_v0 }
0x217e   :  { %17699 = vmatpush3.bf16.msra.mxu1 %v18668_v15 }
0x217f   :  { %17706 = vmatprep.subr.bf16.mxu1 %v18524_v0 }
0x2181   :  { %16440 = vmatmul.mubr.f32.vlgmr.msra.gmra.mrb[50].mxu1 %v8775_v6 }
0x2182   :  { %17708 = vmatpush3.bf16.msra.mxu1 %v18665_v10  ;;  %16461 = vmatprep.mubr.msk.f32.mxu1 %vm18525_vm0, %v18526_v1 }
0x2183   :  { %17709 = vmatprep.subr.bf16.mxu1 %v18524_v0 }
0x2186   :  { %17711 = vmatpush3.bf16.msra.mxu1 %v18668_v15 }
0x2187   :  { %17748 = vmatprep.subr.bf16.mxu1 %v18524_v0 }
0x2189   :  { %16462 = vmatmul.mubr.f32.vlgmr.msra.gmra.mrb[52].mxu1 %v19587_v2 }
0x218a   :  { %17750 = vmatpush3.bf16.msra.mxu1 %v18732_v9  ;;  %16538 = vmatprep.mubr.msk.f32.mxu1 %vm18525_vm0, %v18526_v1 }
0x218b   :  { %17751 = vmatprep.subr.bf16.mxu1 %v18524_v0 }
0x218e   :  { %17753 = vmatpush3.bf16.msra.mxu1 %v18735_v16 }
0x218f   :  { %17754 = vmatprep.subr.bf16.mxu1 %v18524_v0 }
0x2244   :  { %v9185_v3 = vpop.f32.mrb[40].mxu1 }
0x2245   :  { %v18005_v8 = vadd.f32 %v19350_v25, %v9185_v3  ;;  %v16331_v63 = vpop.f32.mrb[41].mxu1 }
0x2246   :  { %v9705_v63 = vld [vmem:[#allocation2 + $0x30] sm:$0xff] }
0x2247   :  { %18319 = vtanh.f32 %v18005_v8  ;;  %v14296_v24 = vmul.f32 -1.442695, %v18005_v8 }
0x2249   :  { %18321 = vpow2.f32 %v14296_v24 }
0x224c   :  { %v19658_v62 = vpop.f32.mrb[48].mxu1 }
0x224d   :  { %v16419_v11 = vpop.f32.mrb[49].mxu1 }
0x2251   :  { %v18320_v7 = vpop.eup %18319 }
0x2252   :  { %9199 = vrot.lane.b32.xlu0 %v18320_v7, %s18527_s5 }
0x2253   :  { %v18322_v22 = vpop.eup %18321 }
0x2254   :  { %v19661_v21 = vpop.f32.mrb[50].mxu1  ;;  %v9193_v27 = vadd.f32 1.0, %v18322_v22 }
0x2255   :  { %v16441_v26 = vpop.f32.mrb[51].mxu1 }
0x2256   :  { %18323 = vrcp.f32 %v9193_v27 }
0x225c   :  { %v19663_v57 = vpop.f32.mrb[52].mxu1 }
0x225d   :  { %v16463_v12 = vpop.f32.mrb[53].mxu1 }
0x2260   :  { %v18324_v25 = vpop.eup %18323 }
0x2261   :  { %v9197_v44 = vmul.f32 %v18324_v25, %v19512_v51 }
0x22c4   :  { %v9200_v34 = vpop.permute.xlu0 %9199 }
0x22c5   :  { %v9202_v43 = vmul.f32 %v18324_v25, %v9200_v34 }
0x22c7   :  { %9204 = vrot.lane.b32.xlu1 %v9202_v43, %s18528_s13 }
0x2339   :  { %v9205_v35 = vpop.permute.xlu1 %9204 }
0x233a   :  { %v19667_v47 = vadd.f32 %v9205_v35, %v9197_v44 }
0x233c   :  { %18325 = vtanh.f32 %v19667_v47 }
0x2346   :  { %v18326_v20 = vpop.eup %18325 }
0x2347   :  { %9210 = vrot.lane.b32.xlu0 %v18326_v20, %s18527_s5 }
0x23b9   :  { %v9211_v50 = vpop.permute.xlu0 %9210 }
0x23ba   :  { %v9213_v49 = vmul.f32 %v18324_v25, %v9211_v50 }
0x23bc   :  { %9215 = vrot.lane.b32.xlu1 %v9213_v49, %s18528_s13 }
0x242e   :  { %v9216_v42 = vpop.permute.xlu1 %9215 }
0x242f   :  { %v9217_v45 = vsel %vm114_vm1, %v9216_v42, 0 }
0x2430   :  { %v9288_v23 = vand.u32 4294901760, %v9217_v45 }
0x2432   :  { %v9289_v52 = vsub.f32 %v9217_v45, %v9288_v23 }
0x2434   :  { %v9290_v53 = vand.u32 4294901760, %v9289_v52 }
0x2436   :  { %v9291_v58 = vsub.f32 %v9289_v52, %v9290_v53 }
0x2438   :  { %v9292_v51 = vand.u32 4294901760, %v9291_v58 }
0x243a   :  { %16341 = vmatmul.mubr.f32.vlgmr.msra.gmra.mrb[36].mxu0 %v9292_v51 }
0x243b   :  { %17648 = vmatpush3.bf16.msra.mxu0 %v18745_v36  ;;  %16351 = vmatprep.mubr.msk.f32.mxu0 %vm18525_vm0, %v18526_v1 }
0x243c   :  { %17649 = vmatprep.subr.bf16.mxu0 %v18524_v0 }
0x243f   :  { %17651 = vmatpush3.bf16.msra.mxu0 %v18749_v37 }
0x2440   :  { %17652 = vmatprep.subr.bf16.mxu0 %v18524_v0 }
0x2442   :  { %16352 = vmatmul.mubr.f32.vlgmr.msra.gmra.mrb[36].mxu0 %v9288_v23 }
0x2443   :  { %17654 = vmatpush3.bf16.msra.mxu0 %v18755_v38  ;;  %16362 = vmatprep.mubr.msk.f32.mxu0 %vm18525_vm0, %v18526_v1 }
0x2444   :  { %17655 = vmatprep.subr.bf16.mxu0 %v18524_v0 }
0x2447   :  { %17657 = vmatpush3.bf16.msra.mxu0 %v18760_v39 }
0x2448   :  { %17658 = vmatprep.subr.bf16.mxu0 %v18524_v0 }
0x244a   :  { %16363 = vmatmul.mubr.f32.vlgmr.msra.gmra.mrb[36].mxu0 %v9289_v52 }
0x244b   :  { %17660 = vmatpush3.bf16.msra.mxu0 %v18732_v9  ;;  %16373 = vmatprep.mubr.msk.f32.mxu0 %vm18525_vm0, %v18526_v1 }
0x244c   :  { %17661 = vmatprep.subr.bf16.mxu0 %v18524_v0 }
0x244f   :  { %17663 = vmatpush3.bf16.msra.mxu0 %v18735_v16 }
0x2450   :  { %17664 = vmatprep.subr.bf16.mxu0 %v18524_v0 }
0x2452   :  { %16374 = vmatmul.mubr.f32.vlgmr.msra.gmra.mrb[36].mxu0 %v9290_v53  ;;  %v19810_v53 = vld [vmem:[%s20126_s4] ss:$0 sm:$0xff] }
0x2453   :  { %17666 = vmatpush3.bf16.msra.mxu0 %v18773_v40  ;;  %16384 = vmatprep.mubr.msk.f32.mxu0 %vm18525_vm0, %v18526_v1 }
0x2454   :  { %17667 = vmatprep.subr.bf16.mxu0 %v18524_v0 }
0x2457   :  { %17669 = vmatpush3.bf16.msra.mxu0 %v18778_v41 }
0x2458   :  { %17670 = vmatprep.subr.bf16.mxu0 %v18524_v0 }
0x245a   :  { %16385 = vmatmul.mubr.f32.vlgmr.msra.gmra.mrb[36].mxu0 %v9288_v23 }
0x245b   :  { %17672 = vmatpush3.bf16.msra.mxu0 %v18732_v9  ;;  %16395 = vmatprep.mubr.msk.f32.mxu0 %vm18525_vm0, %v18526_v1 }
0x245c   :  { %17673 = vmatprep.subr.bf16.mxu0 %v18524_v0 }
0x245f   :  { %17675 = vmatpush3.bf16.msra.mxu0 %v18735_v16 }
0x2460   :  { %17676 = vmatprep.subr.bf16.mxu0 %v18524_v0 }
0x2462   :  { %16396 = vmatmul.mubr.f32.vlgmr.msra.gmra.mrb[36].mxu0 %v9288_v23 }
0x2463   :  { %17678 = vmatpush3.bf16.msra.mxu0 %v18665_v10  ;;  %16406 = vmatprep.mubr.msk.f32.mxu0 %vm18525_vm0, %v18526_v1 }
0x2464   :  { %17679 = vmatprep.subr.bf16.mxu0 %v18524_v0 }
0x2467   :  { %17681 = vmatpush3.bf16.msra.mxu0 %v18668_v15 }
0x2468   :  { %17688 = vmatprep.subr.bf16.mxu0 %v18524_v0 }
0x246a   :  { %16407 = vmatmul.mubr.f32.vlgmr.msra.gmra.mrb[38].mxu0 %v19594_v54 }
0x246b   :  { %17690 = vmatpush3.bf16.msra.mxu0 %v18683_v30  ;;  %16428 = vmatprep.mubr.msk.f32.mxu0 %vm18525_vm0, %v18526_v1 }
0x246c   :  { %17691 = vmatprep.subr.bf16.mxu0 %v18524_v0 }
0x246f   :  { %17693 = vmatpush3.bf16.msra.mxu0 %v18688_v31 }
0x2470   :  { %17700 = vmatprep.subr.bf16.mxu0 %v18524_v0 }
0x2472   :  { %16429 = vmatmul.mubr.f32.vlgmr.msra.gmra.mrb[40].mxu0 %v19590_v48 }
0x2473   :  { %17702 = vmatpush3.bf16.msra.mxu0 %v18701_v32  ;;  %16450 = vmatprep.mubr.msk.f32.mxu0 %vm18525_vm0, %v18526_v1 }
0x2474   :  { %17703 = vmatprep.subr.bf16.mxu0 %v18524_v0 }
0x2477   :  { %17705 = vmatpush3.bf16.msra.mxu0 %v18706_v33 }
0x2478   :  { %17712 = vmatprep.subr.bf16.mxu0 %v18524_v0 }
0x247a   :  { %16451 = vmatmul.mubr.f32.vlgmr.msra.gmra.mrb[42].mxu0 %v19587_v2 }
0x247b   :  { %17714 = vmatpush3.bf16.msra.mxu0 %v18795_v46  ;;  %16472 = vmatprep.mubr.msk.f32.mxu0 %vm18525_vm0, %v18526_v1 }
0x247c   :  { %17715 = vmatprep.subr.bf16.mxu0 %v18524_v0 }
0x247f   :  { %17717 = vmatpush3.bf16.msra.mxu0 %v18799_v55 }
0x2480   :  { %17718 = vmatprep.subr.bf16.mxu0 %v18524_v0 }
0x253d   :  { %v9781_v59 = vpop.f32.mrb[38].mxu0 }
0x253e   :  { %v9873_v61 = vadd.f32 %v19658_v62, %v9781_v59  ;;  %v16408_v60 = vpop.f32.mrb[39].mxu0 }
0x2545   :  { %v9952_v48 = vpop.f32.mrb[40].mxu0 }
0x2546   :  { %v9953_v6 = vadd.f32 %v9952_v48, %v9873_v61  ;;  %v16430_v5 = vpop.f32.mrb[41].mxu0 }
0x2548   :  { %v10030_v2 = vadd.f32 %v19661_v21, %v9953_v6 }
0x254d   :  { %v10112_v54 = vpop.f32.mrb[42].mxu0 }
0x254e   :  { %v10113_v3 = vadd.f32 %v10112_v54, %v10030_v2  ;;  %v16452_v8 = vpop.f32.mrb[43].mxu0 }
0x2550   :  { %v10188_v11 = vadd.f32 %v19663_v57, %v10113_v3 }
0x2552   :  { %v10191_v7 = vadd.f32 %v10188_v11, %v9705_v63 }
0x2554   :  { %18327 = vtanh.f32 %v10191_v7  ;;  %v14297_v12 = vmul.f32 -1.442695, %v10191_v7 }
0x2556   :  { %18329 = vpow2.f32 %v14297_v12 }
0x255e   :  { %v18328_v26 = vpop.eup %18327 }
0x255f   :  { %10201 = vrot.lane.b32.xlu0 %v18328_v26, %s18527_s5 }
0x2560   :  { %v18330_v62 = vpop.eup %18329 }
0x2561   :  { %v10195_v24 = vadd.f32 1.0, %v18330_v62 }
0x2563   :  { %18331 = vrcp.f32 %v10195_v24 }
0x256d   :  { %v18332_v22 = vpop.eup %18331 }
0x256e   :  { %v10199_v21 = vmul.f32 %v18332_v22, %v19581_v56 }
0x25d1   :  { %v10202_v27 = vpop.permute.xlu0 %10201 }
0x25d2   :  { %v10204_v25 = vmul.f32 %v18332_v22, %v10202_v27 }
0x25d4   :  { %10206 = vrot.lane.b32.xlu1 %v10204_v25, %s18528_s13 }
0x2646   :  { %v10207_v34 = vpop.permute.xlu1 %10206 }
0x2647   :  { %v19736_v43 = vadd.f32 %v10207_v34, %v10199_v21 }
0x2649   :  { %18333 = vtanh.f32 %v19736_v43 }
0x2653   :  { %v18334_v57 = vpop.eup %18333 }
0x2654   :  { %10212 = vrot.lane.b32.xlu0 %v18334_v57, %s18527_s5 }
0x26c6   :  { %v10213_v44 = vpop.permute.xlu0 %10212 }
0x26c7   :  { %v10215_v35 = vmul.f32 %v18332_v22, %v10213_v44 }
0x26c9   :  { %10217 = vrot.lane.b32.xlu1 %v10215_v35, %s18528_s13 }
0x273b   :  { %v10218_v20 = vpop.permute.xlu1 %10217 }
0x273c   :  { %v10219_v50 = vsel %vm114_vm1, %v10218_v20, 0 }
0x273d   :  { %v19742_v49 = vand.u32 4294901760, %v10219_v50 }
0x273f   :  { %v10291_v42 = vsub.f32 %v10219_v50, %v19742_v49 }
0x2741   :  { %v19745_v56 = vand.u32 4294901760, %v10291_v42 }
0x2743   :  { %v10293_v45 = vsub.f32 %v10291_v42, %v19745_v56 }
0x2745   :  { %v10294_v23 = vand.u32 4294901760, %v10293_v45 }
0x2747   :  { %16473 = vmatmul.mubr.f32.vlgmr.msra.gmra.mrb[36].mxu0 %v10294_v23 }
0x2748   :  { %17720 = vmatpush3.bf16.msra.mxu0 %v18803_v4  ;;  %16483 = vmatprep.mubr.msk.f32.mxu0 %vm18525_vm0, %v18526_v1 }
0x2749   :  { %17721 = vmatprep.subr.bf16.mxu0 %v18524_v0 }
0x274c   :  { %17723 = vmatpush3.bf16.msra.mxu0 %v18807_v13 }
0x274d   :  { %17724 = vmatprep.subr.bf16.mxu0 %v18524_v0 }
0x274f   :  { %16484 = vmatmul.mubr.f32.vlgmr.msra.gmra.mrb[36].mxu0 %v19742_v49 }
0x2750   :  { %17726 = vmatpush3.bf16.msra.mxu0 %v18809_v14  ;;  %16494 = vmatprep.mubr.msk.f32.mxu0 %vm18525_vm0, %v18526_v1 }
0x2751   :  { %17727 = vmatprep.subr.bf16.mxu0 %v18524_v0 }
0x2754   :  { %17729 = vmatpush3.bf16.msra.mxu0 %v18811_v17 }
0x2755   :  { %17730 = vmatprep.subr.bf16.mxu0 %v18524_v0 }
0x2757   :  { %16495 = vmatmul.mubr.f32.vlgmr.msra.gmra.mrb[36].mxu0 %v10291_v42 }
0x2758   :  { %17732 = vmatpush3.bf16.msra.mxu0 %v18795_v46  ;;  %16505 = vmatprep.mubr.msk.f32.mxu0 %vm18525_vm0, %v18526_v1 }
0x2759   :  { %17733 = vmatprep.subr.bf16.mxu0 %v18524_v0 }
0x275c   :  { %17735 = vmatpush3.bf16.msra.mxu0 %v18799_v55 }
0x275d   :  { %17736 = vmatprep.subr.bf16.mxu0 %v18524_v0 }
0x275f   :  { %16506 = vmatmul.mubr.f32.vlgmr.msra.gmra.mrb[36].mxu0 %v19745_v56 }
0x2760   :  { %17738 = vmatpush3.bf16.msra.mxu0 %v18813_v18  ;;  %16516 = vmatprep.mubr.msk.f32.mxu0 %vm18525_vm0, %v18526_v1 }
0x2761   :  { %17739 = vmatprep.subr.bf16.mxu0 %v18524_v0 }
0x2764   :  { %17741 = vmatpush3.bf16.msra.mxu0 %v18815_v19 }
0x2765   :  { %17742 = vmatprep.subr.bf16.mxu0 %v18524_v0 }
0x2767   :  { %16517 = vmatmul.mubr.f32.vlgmr.msra.gmra.mrb[36].mxu0 %v19742_v49 }
0x2768   :  { %17744 = vmatpush3.bf16.msra.mxu0 %v18795_v46  ;;  %16527 = vmatprep.mubr.msk.f32.mxu0 %vm18525_vm0, %v18526_v1 }
0x2769   :  { %17745 = vmatprep.subr.bf16.mxu0 %v18524_v0 }
0x276c   :  { %17747 = vmatpush3.bf16.msra.mxu0 %v18799_v55 }
0x276d   :  { %17784 = vmatprep.subr.bf16.mxu0 %v18524_v0 }
0x276f   :  { %16528 = vmatmul.mubr.f32.vlgmr.msra.gmra.mrb[36].mxu0 %v19742_v49 }
0x2770   :  { %17786 = vmatpush3.bf16.msra.mxu0 %v18665_v10  ;;  %16604 = vmatprep.mubr.msk.f32.mxu0 %vm18525_vm0, %v18526_v1 }
0x2771   :  { %17787 = vmatprep.subr.bf16.mxu0 %v18524_v0 }
0x2774   :  { %17789 = vmatpush3.bf16.msra.mxu0 %v18668_v15 }
0x2775   :  { %17796 = vmatprep.subr.bf16.mxu0 %v18524_v0 }
0x2777   :  { %16605 = vmatmul.mubr.f32.vlgmr.msra.gmra.mrb[44].mxu0 %v10294_v23 }
0x2778   :  { %17798 = vmatpush3.bf16.msra.mxu0 %v18683_v30  ;;  %16626 = vmatprep.mubr.msk.f32.mxu0 %vm18525_vm0, %v18526_v1 }
0x2779   :  { %17799 = vmatprep.subr.bf16.mxu0 %v18524_v0 }
0x277c   :  { %17801 = vmatpush3.bf16.msra.mxu0 %v18688_v31 }
0x277d   :  { %17808 = vmatprep.subr.bf16.mxu0 %v18524_v0 }
0x277f   :  { %16627 = vmatmul.mubr.f32.vlgmr.msra.gmra.mrb[46].mxu0 %v10291_v42 }
0x2780   :  { %17810 = vmatpush3.bf16.msra.mxu0 %v18701_v32  ;;  %16648 = vmatprep.mubr.msk.f32.mxu0 %vm18525_vm0, %v18526_v1 }
0x2781   :  { %17811 = vmatprep.subr.bf16.mxu0 %v18524_v0 }
0x2784   :  { %17813 = vmatpush3.bf16.msra.mxu0 %v18706_v33 }
0x2785   :  { %17856 = vmatprep.subr.bf16.mxu0 %v18524_v0 }
0x2787   :  { %16649 = vmatmul.mubr.f32.vlgmr.msra.gmra.mrb[48].mxu0 %v19742_v49 }
0x2788   :  { %17858 = vmatpush3.bf16.msra.mxu0 %v18732_v9  ;;  %16736 = vmatprep.mubr.msk.f32.mxu0 %vm18525_vm0, %v18526_v1 }
0x2789   :  { %17859 = vmatprep.subr.bf16.mxu0 %v18524_v0 }
0x278c   :  { %17861 = vmatpush3.bf16.msra.mxu0 %v18735_v16 }
0x278d   :  { %17862 = vmatprep.subr.bf16.mxu0 %v18524_v0 }
0x2842   :  { %v10702_v52 = vpop.f32.mrb[36].mxu0 }
0x2843   :  { %v18006_v58 = vadd.f32 %v19810_v53, %v10702_v52  ;;  %v16529_v51 = vpop.f32.mrb[37].mxu0 }
0x2845   :  { %18335 = vtanh.f32 %v18006_v58  ;;  %v14298_v54 = vmul.f32 -1.442695, %v18006_v58  ;;  %v11222_v58 = vld [vmem:[#allocation2 + $0x38] sm:$0xff] }
0x2847   :  { %18337 = vpow2.f32 %v14298_v54 }
0x284a   :  { %v19813_v59 = vpop.f32.mrb[44].mxu0 }
0x284b   :  { %v16606_v61 = vpop.f32.mrb[45].mxu0 }
0x284f   :  { %v18336_v60 = vpop.eup %18335 }
0x2850   :  { %10716 = vrot.lane.b32.xlu0 %v18336_v60, %s18527_s5 }
0x2851   :  { %v18338_v3 = vpop.eup %18337 }
0x2852   :  { %v19816_v48 = vpop.f32.mrb[46].mxu0  ;;  %v10710_v8 = vadd.f32 1.0, %v18338_v3 }
0x2853   :  { %v16628_v6 = vpop.f32.mrb[47].mxu0 }
0x2854   :  { %18339 = vrcp.f32 %v10710_v8 }
0x285a   :  { %v19818_v5 = vpop.f32.mrb[48].mxu0 }
0x285b   :  { %v16650_v2 = vpop.f32.mrb[49].mxu0 }
0x285e   :  { %v18340_v63 = vpop.eup %18339 }
0x285f   :  { %v10714_v26 = vmul.f32 %v18340_v63, %v19667_v47 }
0x28c2   :  { %v10717_v11 = vpop.permute.xlu0 %10716 }
0x28c3   :  { %v10719_v7 = vmul.f32 %v18340_v63, %v10717_v11 }
0x28c5   :  { %10721 = vrot.lane.b32.xlu1 %v10719_v7, %s18528_s13 }
0x2937   :  { %v10722_v12 = vpop.permute.xlu1 %10721 }
0x2938   :  { %v19822_v62 = vadd.f32 %v10722_v12, %v10714_v26 }
0x293a   :  { %18341 = vtanh.f32 %v19822_v62 }
0x2944   :  { %v18342_v24 = vpop.eup %18341 }
0x2945   :  { %10727 = vrot.lane.b32.xlu0 %v18342_v24, %s18527_s5 }
0x29b7   :  { %v10728_v22 = vpop.permute.xlu0 %10727 }
0x29b8   :  { %v10730_v27 = vmul.f32 %v18340_v63, %v10728_v22 }
0x29ba   :  { %10732 = vrot.lane.b32.xlu1 %v10730_v27, %s18528_s13 }
0x2a2c   :  { %v10733_v25 = vpop.permute.xlu1 %10732 }
0x2a2d   :  { %v10734_v21 = vsel %vm114_vm1, %v10733_v25, 0 }
0x2a2e   :  { %v10805_v34 = vand.u32 4294901760, %v10734_v21 }
0x2a30   :  { %v10806_v57 = vsub.f32 %v10734_v21, %v10805_v34 }
0x2a32   :  { %v10807_v44 = vand.u32 4294901760, %v10806_v57 }
0x2a34   :  { %v10808_v35 = vsub.f32 %v10806_v57, %v10807_v44 }
0x2a36   :  { %v10809_v47 = vand.u32 4294901760, %v10808_v35 }
0x2a38   :  { %16539 = vmatmul.mubr.f32.vlgmr.msra.gmra.mrb[54].mxu1 %v10809_v47 }
0x2a39   :  { %17756 = vmatpush3.bf16.msra.mxu1 %v18745_v36  ;;  %16549 = vmatprep.mubr.msk.f32.mxu1 %vm18525_vm0, %v18526_v1 }
0x2a3a   :  { %17757 = vmatprep.subr.bf16.mxu1 %v18524_v0 }
0x2a3d   :  { %17759 = vmatpush3.bf16.msra.mxu1 %v18749_v37 }
0x2a3e   :  { %17760 = vmatprep.subr.bf16.mxu1 %v18524_v0 }
0x2a40   :  { %16550 = vmatmul.mubr.f32.vlgmr.msra.gmra.mrb[54].mxu1 %v10805_v34 }
0x2a41   :  { %17762 = vmatpush3.bf16.msra.mxu1 %v18755_v38  ;;  %16560 = vmatprep.mubr.msk.f32.mxu1 %vm18525_vm0, %v18526_v1 }
0x2a42   :  { %17763 = vmatprep.subr.bf16.mxu1 %v18524_v0 }
0x2a45   :  { %17765 = vmatpush3.bf16.msra.mxu1 %v18760_v39 }
0x2a46   :  { %17766 = vmatprep.subr.bf16.mxu1 %v18524_v0 }
0x2a48   :  { %16561 = vmatmul.mubr.f32.vlgmr.msra.gmra.mrb[54].mxu1 %v10806_v57 }
0x2a49   :  { %17768 = vmatpush3.bf16.msra.mxu1 %v18732_v9  ;;  %16571 = vmatprep.mubr.msk.f32.mxu1 %vm18525_vm0, %v18526_v1 }
0x2a4a   :  { %17769 = vmatprep.subr.bf16.mxu1 %v18524_v0 }
0x2a4d   :  { %17771 = vmatpush3.bf16.msra.mxu1 %v18735_v16 }
0x2a4e   :  { %17772 = vmatprep.subr.bf16.mxu1 %v18524_v0 }
0x2a50   :  { %16572 = vmatmul.mubr.f32.vlgmr.msra.gmra.mrb[54].mxu1 %v10807_v44 }
0x2a51   :  { %17774 = vmatpush3.bf16.msra.mxu1 %v18773_v40  ;;  %16582 = vmatprep.mubr.msk.f32.mxu1 %vm18525_vm0, %v18526_v1 }
0x2a52   :  { %17775 = vmatprep.subr.bf16.mxu1 %v18524_v0 }
0x2a55   :  { %17777 = vmatpush3.bf16.msra.mxu1 %v18778_v41 }
0x2a56   :  { %17778 = vmatprep.subr.bf16.mxu1 %v18524_v0 }
0x2a58   :  { %16583 = vmatmul.mubr.f32.vlgmr.msra.gmra.mrb[54].mxu1 %v10805_v34 }
0x2a59   :  { %17780 = vmatpush3.bf16.msra.mxu1 %v18732_v9  ;;  %16593 = vmatprep.mubr.msk.f32.mxu1 %vm18525_vm0, %v18526_v1 }
0x2a5a   :  { %17781 = vmatprep.subr.bf16.mxu1 %v18524_v0 }
0x2a5d   :  { %17783 = vmatpush3.bf16.msra.mxu1 %v18735_v16 }
0x2a5e   :  { %17790 = vmatprep.subr.bf16.mxu1 %v18524_v0 }
0x2a60   :  { %16594 = vmatmul.mubr.f32.vlgmr.msra.gmra.mrb[54].mxu1 %v10805_v34 }
0x2a61   :  { %17792 = vmatpush3.bf16.msra.mxu1 %v18673_v28  ;;  %16615 = vmatprep.mubr.msk.f32.mxu1 %vm18525_vm0, %v18526_v1 }
0x2a62   :  { %17793 = vmatprep.subr.bf16.mxu1 %v18524_v0 }
0x2a65   :  { %17795 = vmatpush3.bf16.msra.mxu1 %v18677_v29 }
0x2a66   :  { %17802 = vmatprep.subr.bf16.mxu1 %v18524_v0 }
0x2a68   :  { %16616 = vmatmul.mubr.f32.vlgmr.msra.gmra.mrb[56].mxu1 %v19742_v49 }
0x2a69   :  { %17804 = vmatpush3.bf16.msra.mxu1 %v18665_v10  ;;  %16637 = vmatprep.mubr.msk.f32.mxu1 %vm18525_vm0, %v18526_v1 }
0x2a6a   :  { %17805 = vmatprep.subr.bf16.mxu1 %v18524_v0 }
0x2a6d   :  { %17807 = vmatpush3.bf16.msra.mxu1 %v18668_v15 }
0x2a6e   :  { %17814 = vmatprep.subr.bf16.mxu1 %v18524_v0 }
0x2a70   :  { %16638 = vmatmul.mubr.f32.vlgmr.msra.gmra.mrb[58].mxu1 %v19745_v56 }
0x2a71   :  { %17816 = vmatpush3.bf16.msra.mxu1 %v18665_v10  ;;  %16659 = vmatprep.mubr.msk.f32.mxu1 %vm18525_vm0, %v18526_v1 }
0x2a72   :  { %17817 = vmatprep.subr.bf16.mxu1 %v18524_v0 }
0x2a75   :  { %17819 = vmatpush3.bf16.msra.mxu1 %v18668_v15 }
0x2a76   :  { %17820 = vmatprep.subr.bf16.mxu1 %v18524_v0 }
0x2a78   :  { %16660 = vmatmul.mubr.f32.vlgmr.msra.gmra.mrb[60].mxu1 %v19742_v49 }
0x2a79   :  { %17822 = vmatpush3.bf16.msra.mxu1 %v18795_v46  ;;  %16670 = vmatprep.mubr.msk.f32.mxu1 %vm18525_vm0, %v18526_v1 }
0x2a7a   :  { %17823 = vmatprep.subr.bf16.mxu1 %v18524_v0 }
0x2a7d   :  { %17825 = vmatpush3.bf16.msra.mxu1 %v18799_v55 }
0x2a7e   :  { %17826 = vmatprep.subr.bf16.mxu1 %v18524_v0 }
0x2b3b   :  { %v11389_v20 = vpop.f32.mrb[56].mxu1 }
0x2b3c   :  { %v11390_v50 = vadd.f32 %v11389_v20, %v19813_v59  ;;  %v16617_v42 = vpop.f32.mrb[57].mxu1 }
0x2b3e   :  { %v11470_v56 = vadd.f32 %v19816_v48, %v11390_v50 }
0x2b43   :  { %v11546_v45 = vpop.f32.mrb[58].mxu1 }
0x2b44   :  { %v11547_v23 = vadd.f32 %v11546_v45, %v11470_v56  ;;  %v16639_v49 = vpop.f32.mrb[59].mxu1 }
0x2b46   :  { %v11630_v52 = vadd.f32 %v19818_v5, %v11547_v23 }
0x2b4b   :  { %v11704_v51 = vpop.f32.mrb[60].mxu1 }
0x2b4c   :  { %v11705_v61 = vadd.f32 %v11704_v51, %v11630_v52  ;;  %v16661_v60 = vpop.f32.mrb[61].mxu1 }
0x2b4e   :  { %v11708_v6 = vadd.f32 %v11705_v61, %v11222_v58 }
0x2b50   :  { %18343 = vtanh.f32 %v11708_v6  ;;  %v14299_v54 = vmul.f32 -1.442695, %v11708_v6 }
0x2b52   :  { %18345 = vpow2.f32 %v14299_v54 }
0x2b5a   :  { %v18344_v2 = vpop.eup %18343 }
0x2b5b   :  { %11718 = vrot.lane.b32.xlu0 %v18344_v2, %s18527_s5 }
0x2b5c   :  { %v18346_v59 = vpop.eup %18345 }
0x2b5d   :  { %v11712_v3 = vadd.f32 1.0, %v18346_v59 }
0x2b5f   :  { %18347 = vrcp.f32 %v11712_v3 }
0x2b69   :  { %v18348_v48 = vpop.eup %18347 }
0x2b6a   :  { %v11716_v5 = vmul.f32 %v18348_v48, %v19736_v43 }
0x2bcd   :  { %v11719_v8 = vpop.permute.xlu0 %11718 }
0x2bce   :  { %v11721_v63 = vmul.f32 %v18348_v48, %v11719_v8 }
0x2bd0   :  { %11723 = vrot.lane.b32.xlu1 %v11721_v63, %s18528_s13 }
0x2c42   :  { %v11724_v11 = vpop.permute.xlu1 %11723 }
0x2c43   :  { %v19891_v7 = vadd.f32 %v11724_v11, %v11716_v5 }
0x2c45   :  { %18349 = vtanh.f32 %v19891_v7 }
0x2c4f   :  { %v18350_v26 = vpop.eup %18349 }
0x2c50   :  { %11729 = vrot.lane.b32.xlu0 %v18350_v26, %s18527_s5 }
0x2cc2   :  { %v11730_v12 = vpop.permute.xlu0 %11729 }
0x2cc3   :  { %v11732_v24 = vmul.f32 %v18348_v48, %v11730_v12 }
0x2cc5   :  { %11734 = vrot.lane.b32.xlu1 %v11732_v24, %s18528_s13 }
0x2d37   :  { %v11735_v22 = vpop.permute.xlu1 %11734 }
0x2d38   :  { %v11736_v27 = vsel %vm114_vm1, %v11735_v22, 0 }
0x2d39   :  { %v19897_v25 = vand.u32 4294901760, %v11736_v27 }
0x2d3b   :  { %v19900_v21 = vsub.f32 %v11736_v27, %v19897_v25 }
0x2d3d   :  { %v11809_v43 = vand.u32 4294901760, %v19900_v21 }
0x2d3f   :  { %v11810_v34 = vsub.f32 %v19900_v21, %v11809_v43 }
0x2d41   :  { %v19904_v57 = vand.u32 4294901760, %v11810_v34 }
0x2d43   :  { %16671 = vmatmul.mubr.f32.vlgmr.msra.gmra.mrb[54].mxu1 %v19904_v57 }
0x2d44   :  { %17828 = vmatpush3.bf16.msra.mxu1 %v18803_v4  ;;  %16681 = vmatprep.mubr.msk.f32.mxu1 %vm18525_vm0, %v18526_v1 }
0x2d45   :  { %17829 = vmatprep.subr.bf16.mxu1 %v18524_v0 }
0x2d48   :  { %17831 = vmatpush3.bf16.msra.mxu1 %v18807_v13 }
0x2d49   :  { %17832 = vmatprep.subr.bf16.mxu1 %v18524_v0 }
0x2d4b   :  { %16682 = vmatmul.mubr.f32.vlgmr.msra.gmra.mrb[54].mxu1 %v19897_v25 }
0x2d4c   :  { %17834 = vmatpush3.bf16.msra.mxu1 %v18809_v14  ;;  %16692 = vmatprep.mubr.msk.f32.mxu1 %vm18525_vm0, %v18526_v1 }
0x2d4d   :  { %17835 = vmatprep.subr.bf16.mxu1 %v18524_v0 }
0x2d50   :  { %17837 = vmatpush3.bf16.msra.mxu1 %v18811_v17 }
0x2d51   :  { %17838 = vmatprep.subr.bf16.mxu1 %v18524_v0 }
0x2d53   :  { %16693 = vmatmul.mubr.f32.vlgmr.msra.gmra.mrb[54].mxu1 %v19900_v21 }
0x2d54   :  { %17840 = vmatpush3.bf16.msra.mxu1 %v18795_v46  ;;  %16703 = vmatprep.mubr.msk.f32.mxu1 %vm18525_vm0, %v18526_v1 }
0x2d55   :  { %17841 = vmatprep.subr.bf16.mxu1 %v18524_v0 }
0x2d58   :  { %17843 = vmatpush3.bf16.msra.mxu1 %v18799_v55 }
0x2d59   :  { %17844 = vmatprep.subr.bf16.mxu1 %v18524_v0 }
0x2d5b   :  { %16704 = vmatmul.mubr.f32.vlgmr.msra.gmra.mrb[54].mxu1 %v11809_v43 }
0x2d5c   :  { %17846 = vmatpush3.bf16.msra.mxu1 %v18813_v18  ;;  %16714 = vmatprep.mubr.msk.f32.mxu1 %vm18525_vm0, %v18526_v1 }
0x2d5d   :  { %17847 = vmatprep.subr.bf16.mxu1 %v18524_v0 }
0x2d60   :  { %17849 = vmatpush3.bf16.msra.mxu1 %v18815_v19 }
0x2d61   :  { %17850 = vmatprep.subr.bf16.mxu1 %v18524_v0 }
0x2d63   :  { %16715 = vmatmul.mubr.f32.vlgmr.msra.gmra.mrb[54].mxu1 %v19897_v25 }
0x2d64   :  { %17852 = vmatpush3.bf16.msra.mxu1 %v18795_v46  ;;  %16725 = vmatprep.mubr.msk.f32.mxu1 %vm18525_vm0, %v18526_v1 }
0x2d65   :  { %17853 = vmatprep.subr.bf16.mxu1 %v18524_v0 }
0x2d68   :  { %17855 = vmatpush3.bf16.msra.mxu1 %v18799_v55 }
0x2d69   :  { %17898 = vmatprep.subr.bf16.mxu1 %v18524_v0 }
0x2d6b   :  { %16726 = vmatmul.mubr.f32.vlgmr.msra.gmra.mrb[54].mxu1 %v19897_v25 }
0x2d6c   :  { %17900 = vmatpush3.bf16.msra.mxu1 %v18673_v28  ;;  %16813 = vmatprep.mubr.msk.f32.mxu1 %vm18525_vm0, %v18526_v1 }
0x2d6d   :  { %17901 = vmatprep.subr.bf16.mxu1 %v18524_v0 }
0x2d70   :  { %17903 = vmatpush3.bf16.msra.mxu1 %v18677_v29 }
0x2d71   :  { %17910 = vmatprep.subr.bf16.mxu1 %v18524_v0 }
0x2d73   :  { %16814 = vmatmul.mubr.f32.vlgmr.msra.gmra.mrb[62].mxu1 %v19897_v25 }
0x2d74   :  { %17912 = vmatpush3.bf16.msra.mxu1 %v18665_v10  ;;  %16835 = vmatprep.mubr.msk.f32.mxu1 %vm18525_vm0, %v18526_v1 }
0x2d75   :  { %17913 = vmatprep.subr.bf16.mxu1 %v18524_v0 }
0x2d78   :  { %17915 = vmatpush3.bf16.msra.mxu1 %v18668_v15 }
0x2d79   :  { %17922 = vmatprep.subr.bf16.mxu1 %v18524_v0 }
0x2d7b   :  { %16836 = vmatmul.mubr.f32.vlgmr.msra.gmra.mrb[64].mxu1 %v11809_v43 }
0x2d7c   :  { %17924 = vmatpush3.bf16.msra.mxu1 %v18665_v10  ;;  %16857 = vmatprep.mubr.msk.f32.mxu1 %vm18525_vm0, %v18526_v1 }
0x2d7d   :  { %17925 = vmatprep.subr.bf16.mxu1 %v18524_v0 }
0x2d80   :  { %17927 = vmatpush3.bf16.msra.mxu1 %v18668_v15 }
0x2d81   :  { %17964 = vmatprep.subr.bf16.mxu1 %v18524_v0 }
0x2d83   :  { %16858 = vmatmul.mubr.f32.vlgmr.msra.gmra.mrb[66].mxu1 %v19897_v25 }
0x2d84   :  { %16934 = vmatprep.mubr.msk.f32.mxu1 %vm18525_vm0, %v18526_v1 }
0x2e3e   :  { %v12219_v28 = vpop.f32.mrb[54].mxu1 }
0x2e3f   :  { %v18007_v29 = vadd.f32 %v19810_v53, %v12219_v28  ;;  %v16727_v44 = vpop.f32.mrb[55].mxu1 }
0x2e41   :  { %18351 = vtanh.f32 %v18007_v29  ;;  %v14300_v23 = vmul.f32 -1.442695, %v18007_v29 }
0x2e43   :  { %18353 = vpow2.f32 %v14300_v23 }
0x2e46   :  { %v19964_v35 = vpop.f32.mrb[62].mxu1 }
0x2e47   :  { %v16815_v47 = vpop.f32.mrb[63].mxu1 }
0x2e4b   :  { %v18352_v20 = vpop.eup %18351 }
0x2e4c   :  { %12233 = vrot.lane.b32.xlu0 %v18352_v20, %s18527_s5 }
0x2e4d   :  { %v18354_v49 = vpop.eup %18353 }
0x2e4e   :  { %v19967_v50 = vpop.f32.mrb[64].mxu1  ;;  %v12227_v52 = vadd.f32 1.0, %v18354_v49 }
0x2e4f   :  { %v16837_v42 = vpop.f32.mrb[65].mxu1 }
0x2e50   :  { %18355 = vrcp.f32 %v12227_v52 }
0x2e56   :  { %v19969_v56 = vpop.f32.mrb[66].mxu1 }
0x2e57   :  { %v16859_v45 = vpop.f32.mrb[67].mxu1 }
0x2e5a   :  { %v18356_v58 = vpop.eup %18355 }
0x2e5b   :  { %v12231_v60 = vmul.f32 %v18356_v58, %v19822_v62 }
0x2ebe   :  { %v12234_v51 = vpop.permute.xlu0 %12233 }
0x2ebf   :  { %v12236_v61 = vmul.f32 %v18356_v58, %v12234_v51  ;;  %v13765_v51 = vld [vmem:[#allocation10] sm:$0xff] }
0x2ec1   :  { %12238 = vrot.lane.b32.xlu1 %v12236_v61, %s18528_s13  ;;  %v13766_v61 = vld [vmem:[#allocation10 + $0x8] sm:$0xff] }
0x2f33   :  { %v12239_v6 = vpop.permute.xlu1 %12238 }
0x2f34   :  { %v19973_v2 = vadd.f32 %v12239_v6, %v12231_v60  ;;  %v13782_v60 = vand.u32 4294901760, %v13765_v51  ;;  %v13785_v6 = vand.u32 4294901760, %v13766_v61 }
0x2f36   :  { %18357 = vtanh.f32 %v19973_v2 }
0x2f40   :  { %v18358_v54 = vpop.eup %18357 }
0x2f41   :  { %12244 = vrot.lane.b32.xlu0 %v18358_v54, %s18527_s5  ;;  %v20079_v54 = vpack.c.bf16 %v13785_v6, %v13782_v60 }
0x2f43   :  { %17966 = vmatpush3.bf16.msra.mxu1 %v20079_v54 }
0x2f44   :  { %17967 = vmatprep.subr.bf16.mxu1 %v18524_v0 }
0x2fb3   :  { %v12245_v59 = vpop.permute.xlu0 %12244 }
0x2fb4   :  { %v12247_v3 = vmul.f32 %v18356_v58, %v12245_v59  ;;  %v13862_v59 = vsub.f32 %v13765_v51, %v13782_v60 }
0x2fb6   :  { %12249 = vrot.lane.b32.xlu1 %v12247_v3, %s18528_s13  ;;  %v13869_v3 = vsub.f32 %v13766_v61, %v13785_v6 }
0x3028   :  { %v12250_v48 = vpop.permute.xlu1 %12249 }
0x3029   :  { %v12251_v8 = vsel %vm114_vm1, %v12250_v48, 0  ;;  %v13767_v48 = vld [vmem:[#allocation10 + $0x10] sm:$0xff] }
0x302a   :  { %v12322_v63 = vand.u32 4294901760, %v12251_v8 }
0x302c   :  { %v12323_v5 = vsub.f32 %v12251_v8, %v12322_v63  ;;  %v13768_v8 = vld [vmem:[#allocation10 + $0x18] sm:$0xff] }
0x302e   :  { %v12324_v11 = vand.u32 4294901760, %v12323_v5 }
0x3030   :  { %v12325_v26 = vsub.f32 %v12323_v5, %v12324_v11 }
0x3032   :  { %v12326_v62 = vand.u32 4294901760, %v12325_v26 }
0x3034   :  { %16737 = vmatmul.mubr.f32.vlgmr.msra.gmra.mrb[50].mxu0 %v12326_v62 }
0x3035   :  { %17864 = vmatpush3.bf16.msra.mxu0 %v18745_v36  ;;  %16747 = vmatprep.mubr.msk.f32.mxu0 %vm18525_vm0, %v18526_v1 }
0x3036   :  { %17865 = vmatprep.subr.bf16.mxu0 %v18524_v0 }
0x3039   :  { %17867 = vmatpush3.bf16.msra.mxu0 %v18749_v37 }
0x303a   :  { %17868 = vmatprep.subr.bf16.mxu0 %v18524_v0 }
0x303c   :  { %16748 = vmatmul.mubr.f32.vlgmr.msra.gmra.mrb[50].mxu0 %v12322_v63 }
0x303d   :  { %17870 = vmatpush3.bf16.msra.mxu0 %v18755_v38  ;;  %16758 = vmatprep.mubr.msk.f32.mxu0 %vm18525_vm0, %v18526_v1  ;;  %v12739_v38 = vld [vmem:[#allocation2 + $0x40] sm:$0xff] }
0x303e   :  { %17871 = vmatprep.subr.bf16.mxu0 %v18524_v0 }
0x3041   :  { %17873 = vmatpush3.bf16.msra.mxu0 %v18760_v39 }
0x3042   :  { %17874 = vmatprep.subr.bf16.mxu0 %v18524_v0 }
0x3044   :  { %16759 = vmatmul.mubr.f32.vlgmr.msra.gmra.mrb[50].mxu0 %v12323_v5  ;;  %v13863_v5 = vand.u32 4294901760, %v13862_v59 }
0x3045   :  { %17876 = vmatpush3.bf16.msra.mxu0 %v18732_v9  ;;  %16769 = vmatprep.mubr.msk.f32.mxu0 %vm18525_vm0, %v18526_v1 }
0x3046   :  { %17877 = vmatprep.subr.bf16.mxu0 %v18524_v0 }
0x3049   :  { %17879 = vmatpush3.bf16.msra.mxu0 %v18735_v16 }
0x304a   :  { %17880 = vmatprep.subr.bf16.mxu0 %v18524_v0 }
0x304c   :  { %16770 = vmatmul.mubr.f32.vlgmr.msra.gmra.mrb[50].mxu0 %v12324_v11  ;;  %v13870_v11 = vand.u32 4294901760, %v13869_v3 }
0x304d   :  { %17882 = vmatpush3.bf16.msra.mxu0 %v18773_v40  ;;  %16780 = vmatprep.mubr.msk.f32.mxu0 %vm18525_vm0, %v18526_v1 }
0x304e   :  { %17883 = vmatprep.subr.bf16.mxu0 %v18524_v0 }
0x3051   :  { %17885 = vmatpush3.bf16.msra.mxu0 %v18778_v41 }
0x3052   :  { %17886 = vmatprep.subr.bf16.mxu0 %v18524_v0 }
0x3054   :  { %16781 = vmatmul.mubr.f32.vlgmr.msra.gmra.mrb[50].mxu0 %v12322_v63 }
0x3055   :  { %17888 = vmatpush3.bf16.msra.mxu0 %v18732_v9  ;;  %16791 = vmatprep.mubr.msk.f32.mxu0 %vm18525_vm0, %v18526_v1 }
0x3056   :  { %17889 = vmatprep.subr.bf16.mxu0 %v18524_v0 }
0x3059   :  { %17891 = vmatpush3.bf16.msra.mxu0 %v18735_v16 }
0x305a   :  { %17892 = vmatprep.subr.bf16.mxu0 %v18524_v0 }
0x305c   :  { %16792 = vmatmul.mubr.f32.vlgmr.msra.gmra.mrb[50].mxu0 %v12322_v63  ;;  %v13788_v63 = vand.u32 4294901760, %v13767_v48 }
0x305d   :  { %17894 = vmatpush3.bf16.msra.mxu0 %v18665_v10  ;;  %16802 = vmatprep.mubr.msk.f32.mxu0 %vm18525_vm0, %v18526_v1 }
0x305e   :  { %17895 = vmatprep.subr.bf16.mxu0 %v18524_v0  ;;  %v13876_v62 = vsub.f32 %v13767_v48, %v13788_v63 }
0x3061   :  { %17897 = vmatpush3.bf16.msra.mxu0 %v18668_v15 }
0x3062   :  { %17904 = vmatprep.subr.bf16.mxu0 %v18524_v0 }
0x3064   :  { %16803 = vmatmul.mubr.f32.vlgmr.msra.gmra.mrb[52].mxu0 %v19904_v57 }
0x3065   :  { %17906 = vmatpush3.bf16.msra.mxu0 %v18683_v30  ;;  %16824 = vmatprep.mubr.msk.f32.mxu0 %vm18525_vm0, %v18526_v1 }
0x3066   :  { %17907 = vmatprep.subr.bf16.mxu0 %v18524_v0 }
0x3069   :  { %17909 = vmatpush3.bf16.msra.mxu0 %v18688_v31 }
0x306a   :  { %17916 = vmatprep.subr.bf16.mxu0 %v18524_v0 }
0x306c   :  { %16825 = vmatmul.mubr.f32.vlgmr.msra.gmra.mrb[54].mxu0 %v19900_v21 }
0x306d   :  { %17918 = vmatpush3.bf16.msra.mxu0 %v18701_v32  ;;  %16846 = vmatprep.mubr.msk.f32.mxu0 %vm18525_vm0, %v18526_v1 }
0x306e   :  { %17919 = vmatprep.subr.bf16.mxu0 %v18524_v0 }
0x3071   :  { %17921 = vmatpush3.bf16.msra.mxu0 %v18706_v33 }
0x3072   :  { %17928 = vmatprep.subr.bf16.mxu0 %v18524_v0 }
0x3074   :  { %16847 = vmatmul.mubr.f32.vlgmr.msra.gmra.mrb[56].mxu0 %v19897_v25 }
0x3075   :  { %17930 = vmatpush3.bf16.msra.mxu0 %v18795_v46  ;;  %16868 = vmatprep.mubr.msk.f32.mxu0 %vm18525_vm0, %v18526_v1 }
0x3076   :  { %17931 = vmatprep.subr.bf16.mxu0 %v18524_v0 }
0x3079   :  { %17933 = vmatpush3.bf16.msra.mxu0 %v18799_v55 }
0x307a   :  { %17934 = vmatprep.subr.bf16.mxu0 %v18524_v0 }
0x3137   :  { %v12815_v10 = vpop.f32.mrb[52].mxu0 }
0x3138   :  { %v12907_v15 = vadd.f32 %v19964_v35, %v12815_v10  ;;  %v16804_v30 = vpop.f32.mrb[53].mxu0 }
0x3139   :  { %v13871_v30 = vsub.f32 %v13869_v3, %v13870_v11 }
0x313f   :  { %v12986_v31 = vpop.f32.mrb[54].mxu0 }
0x3140   :  { %v12987_v32 = vadd.f32 %v12986_v31, %v12907_v15  ;;  %v16826_v33 = vpop.f32.mrb[55].mxu0  ;;  %v13864_v15 = vsub.f32 %v13862_v59, %v13863_v5 }
0x3142   :  { %v13064_v9 = vadd.f32 %v19967_v50, %v12987_v32  ;;  %v13865_v31 = vand.u32 4294901760, %v13864_v15  ;;  %v13877_v32 = vand.u32 4294901760, %v13876_v62 }
0x3147   :  { %v13146_v16 = vpop.f32.mrb[56].mxu0 }
0x3148   :  { %v13147_v36 = vadd.f32 %v13146_v16, %v13064_v9  ;;  %v16848_v37 = vpop.f32.mrb[57].mxu0  ;;  %v13872_v9 = vand.u32 4294901760, %v13871_v30 }
0x314a   :  { %v13222_v39 = vadd.f32 %v19969_v56, %v13147_v36  ;;  %v13878_v36 = vsub.f32 %v13876_v62, %v13877_v32 }
0x314c   :  { %v13225_v40 = vadd.f32 %v13222_v39, %v12739_v38  ;;  %v17971_v39 = vpack.c.bf16 %v13872_v9, %v13865_v31 }
0x314e   :  { %18359 = vtanh.f32 %v13225_v40  ;;  %v14301_v12 = vmul.f32 -1.442695, %v13225_v40  ;;  %v13879_v40 = vand.u32 4294901760, %v13878_v36 }
0x3150   :  { %18361 = vpow2.f32 %v14301_v12 }
0x3158   :  { %v18360_v41 = vpop.eup %18359 }
0x3159   :  { %13235 = vrot.lane.b32.xlu0 %v18360_v41, %s18527_s5 }
0x315a   :  { %v18362_v24 = vpop.eup %18361 }
0x315b   :  { %v13229_v22 = vadd.f32 1.0, %v18362_v24  ;;  %v17977_v24 = vpack.c.bf16 %v13869_v3, %v13862_v59 }
0x315d   :  { %18363 = vrcp.f32 %v13229_v22 }
0x3167   :  { %v18364_v27 = vpop.eup %18363 }
0x3168   :  { %v13233_v43 = vmul.f32 %v18364_v27, %v19891_v7 }
0x31cb   :  { %v13236_v25 = vpop.permute.xlu0 %13235 }
0x31cc   :  { %v13238_v21 = vmul.f32 %v18364_v27, %v13236_v25 }
0x31ce   :  { %13240 = vrot.lane.b32.xlu1 %v13238_v21, %s18528_s13 }
0x3240   :  { %v13241_v34 = vpop.permute.xlu1 %13240 }
0x3241   :  { %v13243_v57 = vadd.f32 %v13241_v34, %v13233_v43 }
0x3243   :  { %18365 = vtanh.f32 %v13243_v57 }
0x324d   :  { %v18366_v28 = vpop.eup %18365 }
0x324e   :  { %13246 = vrot.lane.b32.xlu0 %v18366_v28, %s18527_s5 }
0x32c0   :  { %v13247_v29 = vpop.permute.xlu0 %13246 }
0x32c1   :  { %v13249_v44 = vmul.f32 %v18364_v27, %v13247_v29  ;;  %v17989_v27 = vpack.c.bf16 %v13870_v11, %v13863_v5 }
0x32c3   :  { %13251 = vrot.lane.b32.xlu1 %v13249_v44, %s18528_s13 }
0x3335   :  { %v13252_v35 = vpop.permute.xlu1 %13251 }
0x3336   :  { %v13253_v47 = vsel %vm114_vm1, %v13252_v35, 0  ;;  %v14303_v35 = vld [vmem:[%s20128_s6] ss:$0 sm:$0xff] }
0x3337   :  { %v13324_v20 = vand.u32 4294901760, %v13253_v47 }
0x3339   :  { %v13325_v50 = vsub.f32 %v13253_v47, %v13324_v20 }
0x333b   :  { %v13326_v42 = vand.u32 4294901760, %v13325_v50 }
0x333d   :  { %v13327_v56 = vsub.f32 %v13325_v50, %v13326_v42 }
0x333f   :  { %v13328_v45 = vand.u32 4294901760, %v13327_v56 }
0x3341   :  { %16869 = vmatmul.mubr.f32.vlgmr.msra.gmra.mrb[50].mxu0 %v13328_v45 }
0x3342   :  { %17936 = vmatpush3.bf16.msra.mxu0 %v18803_v4  ;;  %16879 = vmatprep.mubr.msk.f32.mxu0 %vm18525_vm0, %v18526_v1 }
0x3343   :  { %17937 = vmatprep.subr.bf16.mxu0 %v18524_v0 }
0x3346   :  { %17939 = vmatpush3.bf16.msra.mxu0 %v18807_v13 }
0x3347   :  { %17940 = vmatprep.subr.bf16.mxu0 %v18524_v0 }
0x3349   :  { %16880 = vmatmul.mubr.f32.vlgmr.msra.gmra.mrb[50].mxu0 %v13324_v20 }
0x334a   :  { %17942 = vmatpush3.bf16.msra.mxu0 %v18809_v14  ;;  %16890 = vmatprep.mubr.msk.f32.mxu0 %vm18525_vm0, %v18526_v1 }
0x334b   :  { %17943 = vmatprep.subr.bf16.mxu0 %v18524_v0 }
0x334e   :  { %17945 = vmatpush3.bf16.msra.mxu0 %v18811_v17 }
0x334f   :  { %17946 = vmatprep.subr.bf16.mxu0 %v18524_v0 }
0x3351   :  { %16891 = vmatmul.mubr.f32.vlgmr.msra.gmra.mrb[50].mxu0 %v13325_v50 }
0x3352   :  { %17948 = vmatpush3.bf16.msra.mxu0 %v18795_v46  ;;  %16901 = vmatprep.mubr.msk.f32.mxu0 %vm18525_vm0, %v18526_v1 }
0x3353   :  { %17949 = vmatprep.subr.bf16.mxu0 %v18524_v0 }
0x3356   :  { %17951 = vmatpush3.bf16.msra.mxu0 %v18799_v55 }
0x3357   :  { %17952 = vmatprep.subr.bf16.mxu0 %v18524_v0 }
0x3359   :  { %16902 = vmatmul.mubr.f32.vlgmr.msra.gmra.mrb[50].mxu0 %v13326_v42 }
0x335a   :  { %17954 = vmatpush3.bf16.msra.mxu0 %v18813_v18  ;;  %16912 = vmatprep.mubr.msk.f32.mxu0 %vm18525_vm0, %v18526_v1 }
0x335b   :  { %17955 = vmatprep.subr.bf16.mxu0 %v18524_v0 }
0x335e   :  { %17957 = vmatpush3.bf16.msra.mxu0 %v18815_v19 }
0x335f   :  { %17958 = vmatprep.subr.bf16.mxu0 %v18524_v0 }
0x3361   :  { %16913 = vmatmul.mubr.f32.vlgmr.msra.gmra.mrb[50].mxu0 %v13324_v20 }
0x3362   :  { %17960 = vmatpush3.bf16.msra.mxu0 %v18795_v46  ;;  %16923 = vmatprep.mubr.msk.f32.mxu0 %vm18525_vm0, %v18526_v1 }
0x3363   :  { %17961 = vmatprep.subr.bf16.mxu0 %v18524_v0 }
0x3366   :  { %17963 = vmatpush3.bf16.msra.mxu0 %v18799_v55 }
0x3369   :  { %16924 = vmatmul.mubr.f32.vlgmr.msra.gmra.mrb[50].mxu0 %v13324_v20 }
0x343c   :  { %v13736_v4 = vpop.f32.mrb[50].mxu0 }
0x343d   :  { %v18008_v13 = vadd.f32 %v19810_v53, %v13736_v4  ;;  %v16925_v14 = vpop.f32.mrb[51].mxu0 }
0x343f   :  { %18367 = vtanh.f32 %v18008_v13  ;;  %v14302_v18 = vmul.f32 -1.442695, %v18008_v13 }
0x3441   :  { %18369 = vpow2.f32 %v14302_v18 }
0x3449   :  { %v18368_v17 = vpop.eup %18367 }
0x344a   :  { %13750 = vrot.lane.b32.xlu0 %v18368_v17, %s18527_s5 }
0x344b   :  { %v18370_v19 = vpop.eup %18369 }
0x344c   :  { %v13744_v46 = vadd.f32 1.0, %v18370_v19 }
0x344e   :  { %18371 = vrcp.f32 %v13744_v46 }
0x3458   :  { %v18372_v7 = vpop.eup %18371 }
0x3459   :  { %v13748_v55 = vmul.f32 %v18372_v7, %v19973_v2  ;;  %v13791_v2 = vand.u32 4294901760, %v13768_v8 }
0x345b   :  { %v17968_v26 = vpack.c.bf16 %v13791_v2, %v13788_v63  ;;  %v13883_v10 = vsub.f32 %v13768_v8, %v13791_v2 }
0x345d   :  { %17969 = vmatpush3.bf16.msra.mxu1 %v17968_v26  ;;  %v13884_v33 = vand.u32 4294901760, %v13883_v10  ;;  %v17980_v22 = vpack.c.bf16 %v13883_v10, %v13876_v62 }
0x345e   :  { %17970 = vmatprep.subr.bf16.mxu1 %v18524_v0 }
0x345f   :  { %v13885_v37 = vsub.f32 %v13883_v10, %v13884_v33  ;;  %v17992_v25 = vpack.c.bf16 %v13884_v33, %v13877_v32 }
0x3461   :  { %v13886_v41 = vand.u32 4294901760, %v13885_v37 }
0x3463   :  { %v17974_v12 = vpack.c.bf16 %v13886_v41, %v13879_v40 }
0x34bc   :  { %v13751_v23 = vpop.permute.xlu0 %13750 }
0x34bd   :  { %v13753_v49 = vmul.f32 %v18372_v7, %v13751_v23 }
0x34bf   :  { %13755 = vrot.lane.b32.xlu1 %v13753_v49, %s18528_s13 }
0x3531   :  { %v13756_v52 = vpop.permute.xlu1 %13755 }
0x3532   :  { %v13758_v58 = vadd.f32 %v13756_v52, %v13748_v55 }
0x3534   :  { %18373 = vtanh.f32 %v13758_v58 }
0x353e   :  { %v18374_v53 = vpop.eup %18373 }
0x353f   :  { %13761 = vrot.lane.b32.xlu0 %v18374_v53, %s18527_s5 }
0x35b1   :  { %v13762_v16 = vpop.permute.xlu0 %13761 }
0x35b2   :  { %v13764_v38 = vmul.f32 %v18372_v7, %v13762_v16 }
0x35b4   :  { %13777 = vrot.lane.b32.xlu1 %v13764_v38, %s18528_s13 }
0x3626   :  { %v13778_v21 = vpop.permute.xlu1 %13777 }
0x3627   :  { %v13779_v43 = vsel %vm114_vm1, %v13778_v21, 0 }
0x3628   :  { %v13850_v34 = vand.u32 4294901760, %v13779_v43 }
0x362a   :  { %v13851_v57 = vsub.f32 %v13779_v43, %v13850_v34 }
0x362c   :  { %v13852_v28 = vand.u32 4294901760, %v13851_v57 }
0x362e   :  { %v13853_v29 = vsub.f32 %v13851_v57, %v13852_v28 }
0x3630   :  { %v13854_v44 = vand.u32 4294901760, %v13853_v29 }
0x3632   :  { %16935 = vmatmul.mubr.f32.vlgmr.msra.gmra.mrb[68].mxu1 %v13854_v44 }
0x3633   :  { %17972 = vmatpush3.bf16.msra.mxu1 %v17971_v39  ;;  %16945 = vmatprep.mubr.msk.f32.mxu1 %vm18525_vm0, %v18526_v1 }
0x3634   :  { %17973 = vmatprep.subr.bf16.mxu1 %v18524_v0 }
0x3637   :  { %17975 = vmatpush3.bf16.msra.mxu1 %v17974_v12 }
0x3638   :  { %17976 = vmatprep.subr.bf16.mxu1 %v18524_v0 }
0x363a   :  { %16946 = vmatmul.mubr.f32.vlgmr.msra.gmra.mrb[68].mxu1 %v13850_v34 }
0x363b   :  { %17978 = vmatpush3.bf16.msra.mxu1 %v17977_v24  ;;  %16956 = vmatprep.mubr.msk.f32.mxu1 %vm18525_vm0, %v18526_v1 }
0x363c   :  { %17979 = vmatprep.subr.bf16.mxu1 %v18524_v0 }
0x363f   :  { %17981 = vmatpush3.bf16.msra.mxu1 %v17980_v22 }
0x3640   :  { %17982 = vmatprep.subr.bf16.mxu1 %v18524_v0 }
0x3642   :  { %16957 = vmatmul.mubr.f32.vlgmr.msra.gmra.mrb[68].mxu1 %v13851_v57 }
0x3643   :  { %17984 = vmatpush3.bf16.msra.mxu1 %v20079_v54  ;;  %16967 = vmatprep.mubr.msk.f32.mxu1 %vm18525_vm0, %v18526_v1 }
0x3644   :  { %17985 = vmatprep.subr.bf16.mxu1 %v18524_v0 }
0x3647   :  { %17987 = vmatpush3.bf16.msra.mxu1 %v17968_v26 }
0x3648   :  { %17988 = vmatprep.subr.bf16.mxu1 %v18524_v0 }
0x364a   :  { %16968 = vmatmul.mubr.f32.vlgmr.msra.gmra.mrb[68].mxu1 %v13852_v28 }
0x364b   :  { %17990 = vmatpush3.bf16.msra.mxu1 %v17989_v27  ;;  %16978 = vmatprep.mubr.msk.f32.mxu1 %vm18525_vm0, %v18526_v1 }
0x364c   :  { %17991 = vmatprep.subr.bf16.mxu1 %v18524_v0 }
0x364f   :  { %17993 = vmatpush3.bf16.msra.mxu1 %v17992_v25 }
0x3650   :  { %17994 = vmatprep.subr.bf16.mxu1 %v18524_v0 }
0x3652   :  { %16979 = vmatmul.mubr.f32.vlgmr.msra.gmra.mrb[68].mxu1 %v13850_v34 }
0x3653   :  { %17996 = vmatpush3.bf16.msra.mxu1 %v20079_v54  ;;  %16989 = vmatprep.mubr.msk.f32.mxu1 %vm18525_vm0, %v18526_v1 }
0x3654   :  { %17997 = vmatprep.subr.bf16.mxu1 %v18524_v0 }
0x3657   :  { %17999 = vmatpush3.bf16.msra.mxu1 %v17968_v26 }
0x365a   :  { %16990 = vmatmul.mubr.f32.vlgmr.msra.gmra.mrb[68].mxu1 %v13850_v34 }
0x372d   :  { %v14262_v47 = vpop.f32.mrb[68].mxu1 }
0x372e   :  { %v18009_v20 = vadd.f32 %v14303_v35, %v14262_v47  ;;  %v16991_v50 = vpop.f32.mrb[69].mxu1 }
0x3730   :  { %14266 = vst [vmem:[#allocation11] sm:$0xff] %v18009_v20 }
0x3731   :  { %18498 = shalt.err (!%p18495_p2)
}
0x3732   :  { %s18499_s0 = scalar_lea.hbm %s20129_s7, 128 }
0x3733   :  { %p18500_p3 = scmp.ne.s32.totalorder %s20129_s7, %s18499_s0  ;;  %p18503_p4 = scmp.lt.u32.totalorder %s18499_s0, %s20129_s7 }
0x3735   :  { %p18505_p5 = pnand %p18503_p4, %p18500_p3 }
0x3737   :  { %18508 = shalt.err (!%p18505_p5)
}
0x3738   :  { %14276 = dma.vmem_to_hbm [thread:$0]  %s14274_s22, 128, %s20129_s7, [#allocation4]  }
0x3739   :  { %18515 = dma.done.wait [#allocation4], 128  }
0x373a   :  { %18516 = vsyncadd [#allocation4], 4294967168 }
0x373b   :  { %14280 = vsyncpa [#allocation3], 1 }
0x373c   :  { %14281 = vsyncpa [#allocation6], 1 }
0x373d   :  { %14282 = vsyncpa [#allocation9], 1 }
0x373e   :  { %14283 = vsyncpa [#allocation4], 1 }

</bundles_post_ra>
